<compile_context>
chip_gen: v5e
topology: v5e:2x2
jax: 0.10.0
libtpu: 0.0.40
codegen_flags: <defaults>
</compile_context>

<pallas_src>
import math
import functools

import jax
import jax.numpy as jnp
from jax.experimental import pallas as pl
from jax.experimental.pallas import tpu as pltpu


# ------------------------- generation-aware tuning --------------------------

def _vmem_limit_bytes():
    """~3/4 of physical VMEM (96 MiB on v5e/v6e, 48 MiB on v7x); safe default."""
    try:
        info = pltpu.get_tpu_info()
        cap = getattr(info, "vmem_capacity_bytes", None)
        if cap:
            return min(int(cap) * 3 // 4, 96 * 1024 * 1024)
    except Exception:
        pass
    return 48 * 1024 * 1024


_VMEM_LIMIT_BYTES = _vmem_limit_bytes()

if _VMEM_LIMIT_BYTES >= 64 * 1024 * 1024:      # v5e / v6e: 128 MiB physical VMEM
    _TM_TGT, _TN_TGT, _TK_TGT = 512, 1024, 512
else:                                          # v7x: 64 MiB physical VMEM
    _TM_TGT, _TN_TGT, _TK_TGT = 256, 512, 512


def _pick_tile(dim, target, multiple):
    """Largest tile <= target that divides `dim`; prefers 128-multiples (dense
    MXU feed / unmasked stores), then `multiple`; falls back to the full dim
    (always a legal block since it equals the array extent)."""
    if dim <= target:
        return dim
    steps = (128, multiple) if multiple < 128 else (multiple,)
    for step in steps:
        t = (target // step) * step
        while t >= step:
            if dim % t == 0:
                return t
            t -= step
    return dim


def _pad_rows(x2d, mult=8):
    """Pad the row dim up to a multiple of `mult` (keeps matmul grids exact)."""
    pad = (-x2d.shape[0]) % mult
    if pad:
        x2d = jnp.pad(x2d, ((0, pad), (0, 0)))
    return x2d, pad


def _gelu(x):
    # Reference fused_gelu: literal 1.41421 constant.
    return x * 0.5 * (1.0 + jax.lax.erf(x / 1.41421))


# --------------------------- tiled linear kernels ---------------------------

def _make_linear_kernel(activation):
    def kernel(x_ref, w_ref, o_ref, acc_ref):
        k = pl.program_id(2)

        @pl.when(k == 0)
        def _():
            acc_ref[...] = jnp.zeros_like(acc_ref)

        acc_ref[...] += jnp.dot(x_ref[...], w_ref[...],
                                preferred_element_type=jnp.float32)

        @pl.when(k == pl.num_programs(2) - 1)
        def _():
            acc = acc_ref[...]
            if activation == "gelu":
                acc = _gelu(acc)
            o_ref[...] = acc.astype(o_ref.dtype)

    return kernel


def linear(x2d, w, activation=None, out_dtype=jnp.bfloat16):
    """x2d: [M, K] bf16, w: [K, N] bf16.  Optional fused GELU epilogue."""
    M0, K = x2d.shape
    x2d, pad = _pad_rows(x2d)
    M = x2d.shape[0]
    K2, N = w.shape
    assert K == K2
    tm = _pick_tile(M, _TM_TGT, 8)
    tn = _pick_tile(N, _TN_TGT, 128)
    tk = _pick_tile(K, _TK_TGT, 128)
    grid = (M // tm, N // tn, K // tk)
    flops = 2 * M * N * K
    transcendentals = M * N if activation == "gelu" else 0
    bytes_accessed = 2 * M * K + 2 * K * N + 2 * M * N
    out = pl.pallas_call(
        _make_linear_kernel(activation),
        out_shape=jax.ShapeDtypeStruct((M, N), out_dtype),
        grid=grid,
        in_specs=[pl.BlockSpec((tm, tk), lambda i, j, k: (i, k)),
                  pl.BlockSpec((tk, tn), lambda i, j, k: (k, j))],
        out_specs=pl.BlockSpec((tm, tn), lambda i, j, k: (i, j)),
        scratch_shapes=[pltpu.VMEM((tm, tn), jnp.float32)],
        compiler_params=pltpu.CompilerParams(
            dimension_semantics=("parallel", "parallel", "arbitrary"),
            vmem_limit_bytes=_VMEM_LIMIT_BYTES),
        cost_estimate=pl.CostEstimate(flops=flops,
                                      transcendentals=transcendentals,
                                      bytes_accessed=bytes_accessed),
    )(x2d, w)
    return out[:M0] if pad else out


def _make_linear_ln_kernel(activation):
    """Matmul with a fused LayerNorm *prologue* on the x tile (full K block)."""
    def kernel(x_ref, g_ref, b_ref, w_ref, o_ref):
        x = x_ref[...].astype(jnp.float32)
        mean = jnp.mean(x, axis=-1, keepdims=True)
        var = jnp.mean(jnp.square(x - mean), axis=-1, keepdims=True)
        xn = ((x - mean) * jax.lax.rsqrt(var + 1e-5) * g_ref[...] + b_ref[...]
              ).astype(jnp.bfloat16)
        acc = jnp.dot(xn, w_ref[...], preferred_element_type=jnp.float32)
        if activation == "gelu":
            acc = _gelu(acc)
        o_ref[...] = acc.astype(o_ref.dtype)
    return kernel


def linear_ln(x, gamma, beta, w, activation=None, *, batch0_of_3d=False,
              out_dtype=jnp.bfloat16):
    """LayerNorm(x) @ w with the LN fused as a prologue (K fits one block).

    If batch0_of_3d, x is [B, S, K] and only batch 0 is read (via index_map —
    no materialized slice); output is [S, N].  Otherwise x is [M, K]."""
    pad = 0
    if batch0_of_3d:
        _, S, K = x.shape
        M0 = M = S
    else:
        M0, K = x.shape
        x, pad = _pad_rows(x)
        M = x.shape[0]
    K2, N = w.shape
    assert K == K2
    tm = _pick_tile(M, 256, 8)
    tn = _pick_tile(N, _TN_TGT, 128)
    if batch0_of_3d:
        x_spec = pl.BlockSpec((None, tm, K), lambda i, j: (0, i, 0))
    else:
        x_spec = pl.BlockSpec((tm, K), lambda i, j: (i, 0))
    g = gamma.reshape(1, K)
    b = beta.reshape(1, K)
    out = pl.pallas_call(
        _make_linear_ln_kernel(activation),
        out_shape=jax.ShapeDtypeStruct((M, N), out_dtype),
        grid=(M // tm, N // tn),
        in_specs=[x_spec,
                  pl.BlockSpec((1, K), lambda i, j: (0, 0)),
                  pl.BlockSpec((1, K), lambda i, j: (0, 0)),
                  pl.BlockSpec((K, tn), lambda i, j: (0, j))],
        out_specs=pl.BlockSpec((tm, tn), lambda i, j: (i, j)),
        compiler_params=pltpu.CompilerParams(
            dimension_semantics=("parallel", "parallel"),
            vmem_limit_bytes=_VMEM_LIMIT_BYTES),
        cost_estimate=pl.CostEstimate(
            flops=2 * M * N * K,
            transcendentals=(M * N if activation == "gelu" else 0),
            bytes_accessed=2 * M * K + 2 * K * N + 2 * M * N),
    )(x, g, b, w)
    return out[:M0] if pad else out


def _linear_ln_relu_kernel(x_ref, w_ref, g_ref, b_ref, o_ref, acc_ref):
    k = pl.program_id(1)

    @pl.when(k == 0)
    def _():
        acc_ref[...] = jnp.zeros_like(acc_ref)

    acc_ref[...] += jnp.dot(x_ref[...], w_ref[...],
                            preferred_element_type=jnp.float32)

    @pl.when(k == pl.num_programs(1) - 1)
    def _():
        acc = acc_ref[...]
        mean = jnp.mean(acc, axis=-1, keepdims=True)
        var = jnp.mean(jnp.square(acc - mean), axis=-1, keepdims=True)
        y = (acc - mean) * jax.lax.rsqrt(var + 1e-5) * g_ref[...] + b_ref[...]
        o_ref[...] = jnp.maximum(y, 0.0).astype(o_ref.dtype)


def linear_ln_relu(x2d, w, gamma, beta):
    """Classifier first stage: matmul with fused LayerNorm + ReLU epilogue.
    Requires the full N in one block (needed for the row-wise LayerNorm)."""
    M0, K = x2d.shape
    x2d, pad = _pad_rows(x2d)
    M = x2d.shape[0]
    _, N = w.shape
    tm = _pick_tile(M, 256, 8)
    tk = _pick_tile(K, _TK_TGT, 128)
    g = gamma.reshape(1, N)
    b = beta.reshape(1, N)
    out = pl.pallas_call(
        _linear_ln_relu_kernel,
        out_shape=jax.ShapeDtypeStruct((M, N), jnp.bfloat16),
        grid=(M // tm, K // tk),
        in_specs=[pl.BlockSpec((tm, tk), lambda i, k: (i, k)),
                  pl.BlockSpec((tk, N), lambda i, k: (k, 0)),
                  pl.BlockSpec((1, N), lambda i, k: (0, 0)),
                  pl.BlockSpec((1, N), lambda i, k: (0, 0))],
        out_specs=pl.BlockSpec((tm, N), lambda i, k: (i, 0)),
        scratch_shapes=[pltpu.VMEM((tm, N), jnp.float32)],
        compiler_params=pltpu.CompilerParams(
            dimension_semantics=("parallel", "arbitrary"),
            vmem_limit_bytes=_VMEM_LIMIT_BYTES),
        cost_estimate=pl.CostEstimate(flops=2 * M * N * K, transcendentals=0,
                                      bytes_accessed=2 * M * K + 2 * K * N + 2 * M * N),
    )(x2d, w, g, b)
    return out[:M0] if pad else out


# ----------------------- fused residual-add / LayerNorm ----------------------

def _add_ln_kernel(x_ref, r_ref, g_ref, b_ref, o_ref):
    s = x_ref[...].astype(jnp.float32) + r_ref[...].astype(jnp.float32)
    mean = jnp.mean(s, axis=-1, keepdims=True)
    var = jnp.mean(jnp.square(s - mean), axis=-1, keepdims=True)
    o_ref[...] = ((s - mean) * jax.lax.rsqrt(var + 1e-5) * g_ref[...]
                  + b_ref[...]).astype(o_ref.dtype)


def add_layernorm(x, res, gamma, beta, *, broadcast_res=False):
    """Fused (x + res) -> LayerNorm -> bf16.  If broadcast_res, batch 0 of
    `res` is added to every batch element (positional-encoding broadcast)."""
    B, S, E = x.shape
    ts = _pick_tile(S, 512, 8)
    g = gamma.reshape(1, E)
    b = beta.reshape(1, E)
    x_spec = pl.BlockSpec((1, ts, E), lambda bi, i: (bi, i, 0))
    r_spec = (pl.BlockSpec((1, ts, E), lambda bi, i: (0, i, 0))
              if broadcast_res else x_spec)
    vec_spec = pl.BlockSpec((1, E), lambda bi, i: (0, 0))
    return pl.pallas_call(
        _add_ln_kernel,
        out_shape=jax.ShapeDtypeStruct((B, S, E), jnp.bfloat16),
        grid=(B, S // ts),
        in_specs=[x_spec, r_spec, vec_spec, vec_spec],
        out_specs=x_spec,
        compiler_params=pltpu.CompilerParams(
            dimension_semantics=("parallel", "parallel"),
            vmem_limit_bytes=_VMEM_LIMIT_BYTES),
    )(x, res, g, b)


def _add_bcast_kernel(x_ref, r_ref, o_ref):
    o_ref[...] = (x_ref[...].astype(jnp.float32)
                  + r_ref[...].astype(jnp.float32)[None]).astype(o_ref.dtype)


def add_broadcast(x, res2d):
    """out[b] = x[b] + res2d  (reference `X = X + attention_block(_X)[0]`)."""
    B, S, E = x.shape
    ts = _pick_tile(S, 512, 8)
    x_spec = pl.BlockSpec((1, ts, E), lambda bi, i: (bi, i, 0))
    r_spec = pl.BlockSpec((ts, E), lambda bi, i: (i, 0))
    return pl.pallas_call(
        _add_bcast_kernel,
        out_shape=jax.ShapeDtypeStruct((B, S, E), jnp.bfloat16),
        grid=(B, S // ts),
        in_specs=[x_spec, r_spec],
        out_specs=x_spec,
        compiler_params=pltpu.CompilerParams(
            dimension_semantics=("parallel", "parallel"),
            vmem_limit_bytes=_VMEM_LIMIT_BYTES),
    )(x, res2d)


# --------------------------------- attention ---------------------------------

def _make_attention_kernel(num_heads, head_dim, embed_dims, packed, scale):
    def kernel(q_ref, k_ref, v_ref, o_ref):
        for h in range(num_heads):
            q_off = h * head_dim
            k_off = (embed_dims if packed else 0) + h * head_dim
            v_off = (2 * embed_dims if packed else 0) + h * head_dim
            q = q_ref[:, q_off:q_off + head_dim]          # [tq, hd] bf16
            k = k_ref[:, k_off:k_off + head_dim]          # [S,  hd] bf16
            v = v_ref[:, v_off:v_off + head_dim]          # [S,  hd] bf16
            # QK^T contracting head_dim (no explicit transpose), f32 accumulate.
            logits = jax.lax.dot_general(
                q, k, dimension_numbers=(((1,), (1,)), ((), ())),
                preferred_element_type=jnp.float32) * scale
            m = jnp.max(logits, axis=-1, keepdims=True)
            p = jnp.exp(logits - m)
            l = jnp.sum(p, axis=-1, keepdims=True)
            pv = jnp.dot(p.astype(jnp.bfloat16), v,
                         preferred_element_type=jnp.float32)
            # Exact f32 normalization; stream this head straight to the output
            # so only one head's intermediates stay live.
            o_ref[:, h * head_dim:(h + 1) * head_dim] = (pv / l).astype(o_ref.dtype)
    return kernel


def multi_head_attention(qkv2d, num_heads):
    """qkv2d: [S, 3E] bf16 in [Q | K | V] column layout -> [S, E] bf16."""
    S, E3 = qkv2d.shape
    E = E3 // 3
    hd = E // num_heads
    tq = _pick_tile(S, 256, 8)
    # Lane-aligned E-wide K / V slabs when E is a 128 multiple; otherwise fall
    # back to full-width blocks (only hit at toy sizes).
    packed = (E % 128) != 0
    if packed:
        q_spec = pl.BlockSpec((tq, E3), lambda i: (i, 0))
        k_spec = pl.BlockSpec((S, E3), lambda i: (0, 0))
        v_spec = pl.BlockSpec((S, E3), lambda i: (0, 0))
    else:
        q_spec = pl.BlockSpec((tq, E), lambda i: (i, 0))
        k_spec = pl.BlockSpec((S, E), lambda i: (0, 1))
        v_spec = pl.BlockSpec((S, E), lambda i: (0, 2))
    kernel = _make_attention_kernel(num_heads, hd, E, packed, 1.0 / math.sqrt(hd))
    # NOTE: the K/V slab block index never changes across the grid, so Pallas
    # only DMAs it once; for very long S on v7x a flash-style KV-tiled grid
    # would be needed (see module TODO).
    return pl.pallas_call(
        kernel,
        out_shape=jax.ShapeDtypeStruct((S, E), jnp.bfloat16),
        grid=(S // tq,),
        in_specs=[q_spec, k_spec, v_spec],
        out_specs=pl.BlockSpec((tq, E), lambda i: (i, 0)),
        compiler_params=pltpu.CompilerParams(
            dimension_semantics=("parallel",),
            vmem_limit_bytes=_VMEM_LIMIT_BYTES),
        cost_estimate=pl.CostEstimate(
            flops=4 * num_heads * S * S * hd,
            transcendentals=num_heads * S * S,
            bytes_accessed=2 * (S * E3 + S * E)),
    )(qkv2d, qkv2d, qkv2d)


# ------------------------------ model pieces --------------------------------

def encoder_block(X, p, num_heads):
    B, S, E = X.shape
    # Attention path: reference quirk `X = X + attention_block(_X)[0]` consumes
    # only batch 0 of the attention output, so the whole path is computed on
    # batch 0 only.  attention_norm is fused as a prologue of the qkv matmul.
    qkv = linear_ln(X, p["ln_attn_g"], p["ln_attn_b"], p["w_qkv"],
                    batch0_of_3d=True)                       # [S, 3E] bf16
    attn = multi_head_attention(qkv, num_heads)              # [S, E] bf16
    attn = linear(attn, p["w_out"])                          # [S, E] bf16
    X = add_broadcast(X, attn)                               # [B, S, E] bf16
    # MLP: mlp_norm fused as a prologue of fc1; GELU after BOTH fc1 and fc2
    # (as in the reference); Dropout1d(p=0) layers are identities.
    h = linear_ln(X.reshape(B * S, E), p["ln_mlp_g"], p["ln_mlp_b"],
                  p["w_fc1"], activation="gelu")             # [B*S, 4E] bf16
    h = linear(h, p["w_fc2"], activation="gelu").reshape(B, S, E)
    # Residual add fused with final_norm (checkpoint() is an identity in fwd).
    X = add_layernorm(X, h, p["ln_final_g"], p["ln_final_b"])
    return X


def input_embedding(tokens, p):
    X = jnp.take(p["emb"], tokens, axis=0)        # embedding gather (plain-JAX glue)
    pos = p["pos_enc"][None, :, :]                # [1, S, E]
    # pos-add fused with embed_norm; output is the bf16 residual stream.
    return add_layernorm(X, pos, p["emb_ln_g"], p["emb_ln_b"], broadcast_res=True)


def classifier_head(X, p):
    B, S, E = X.shape
    h = linear_ln_relu(X.reshape(B * S, E), p["w_cls1"], p["cls_ln_g"], p["cls_ln_b"])
    logits = linear(h, p["w_cls2"], out_dtype=jnp.float32)   # Dropout1d(p=0) identity
    return logits.reshape(B, S, -1)


def cramming_transformer(tokens, params, num_heads):
    X = input_embedding(tokens, params)
    for blk in params["blocks"]:
        X = encoder_block(X, blk, num_heads)
    return classifier_head(X, params)


# ------------------------------ param init ----------------------------------

def init_params(key, vocab_size, seq_length, embed_dims, num_heads, n_blocks, mlp_factor):
    mlp_hidden = mlp_factor * embed_dims
    keys = iter(jax.random.split(key, 4 + 4 * n_blocks))

    def w(k, shape, scale=0.02):
        # Weights stored in bf16 (MXU-native inputs; f32 accumulation in-kernel).
        return (scale * jax.random.normal(k, shape)).astype(jnp.bfloat16)

    # sinusoidal positional encoding (as in the reference InputEmbedding)
    pos = jnp.arange(seq_length, dtype=jnp.float32)[:, None]
    inv = jnp.exp(jnp.arange(0, embed_dims, 2, dtype=jnp.float32)
                  * (-math.log(10000.0) / embed_dims))
    enc = jnp.zeros((seq_length, embed_dims), dtype=jnp.float32)
    enc = enc.at[:, 0::2].set(jnp.sin(pos * inv))
    enc = enc.at[:, 1::2].set(jnp.cos(pos * inv))

    params = {
        "emb": jax.random.normal(next(keys), (vocab_size, embed_dims)).astype(jnp.float32),
        "pos_enc": enc,
        "emb_ln_g": jnp.ones((embed_dims,), jnp.float32),
        "emb_ln_b": jnp.zeros((embed_dims,), jnp.float32),
        "w_cls1": w(next(keys), (embed_dims, mlp_hidden)),
        "cls_ln_g": jnp.ones((mlp_hidden,), jnp.float32),
        "cls_ln_b": jnp.zeros((mlp_hidden,), jnp.float32),
        "w_cls2": w(next(keys), (mlp_hidden, vocab_size)),
        "blocks": [],
    }
    for _ in range(n_blocks):
        blk = {
            "ln_attn_g": jnp.ones((embed_dims,), jnp.float32),
            "ln_attn_b": jnp.zeros((embed_dims,), jnp.float32),
            # [Q | K | V] column layout (lane-aligned E-wide slabs per tensor).
            "w_qkv": w(next(keys), (embed_dims, 3 * embed_dims)),
            "w_out": w(next(keys), (embed_dims, embed_dims)),
            "ln_mlp_g": jnp.ones((embed_dims,), jnp.float32),
            "ln_mlp_b": jnp.zeros((embed_dims,), jnp.float32),
            "w_fc1": w(next(keys), (embed_dims, mlp_hidden)),
            "w_fc2": w(next(keys), (mlp_hidden, embed_dims)),
            "ln_final_g": jnp.ones((embed_dims,), jnp.float32),
            "ln_final_b": jnp.zeros((embed_dims,), jnp.float32),
        }
        params["blocks"].append(blk)
    return params


# --------------------------------- main --------------------------------------

if __name__ == "__main__":
    # Small but layout-friendly shapes (E a multiple of 128 keeps every
    # BlockSpec lane-dense, as in realistic configs).
    B, S, E, H, V = 2, 8, 128, 4, 32
    N_BLOCKS, MLP_FACTOR = 2, 4

    key = jax.random.PRNGKey(0)
    k_param, k_tok = jax.random.split(key)
    params = init_params(k_param, V, S, E, H, N_BLOCKS, MLP_FACTOR)
    tokens = jax.random.randint(k_tok, (B, S), 0, V)

    fwd = jax.jit(functools.partial(cramming_transformer, num_heads=H))
    logits = fwd(tokens, params)
    jax.block_until_ready(logits)
    assert logits.shape == (B, S, V)
    assert logits.dtype == jnp.float32
    print("KERNEL_OK")
</pallas_src>

<mosaic_0001>
module attributes {stable_mosaic.version = 11 : i64} {
  func.func @kernel(%arg0: i32, %arg1: memref<8x128xbf16, #tpu.memory_space<vmem>>, %arg2: memref<8x128xbf16, #tpu.memory_space<vmem>>, %arg3: memref<8x128xbf16, #tpu.memory_space<vmem>>, %arg4: memref<8x128xbf16, #tpu.memory_space<vmem>>) attributes {dimension_semantics = [#tpu.dimension_semantics<parallel>], iteration_bounds = array<i64: 1>, scalar_prefetch = 0 : i64, scratch_operands = 0 : i64, tpu.core_type = #tpu.core_type<tc>, window_params = [{transform_indices = @transform_0, window_bounds = array<i64: 8, 128>}, {transform_indices = @transform_1, window_bounds = array<i64: 8, 128>}, {transform_indices = @transform_2, window_bounds = array<i64: 8, 128>}, {transform_indices = @transform_3, window_bounds = array<i64: 8, 128>}]} {
    %c0 = arith.constant 0 : index
    %c0_0 = arith.constant 0 : index
    %0 = vector.load %arg1[%c0, %c0_0] : memref<8x128xbf16, #tpu.memory_space<vmem>>, vector<8x32xbf16>
    %c0_1 = arith.constant 0 : index
    %c0_2 = arith.constant 0 : index
    %1 = vector.load %arg2[%c0_1, %c0_2] : memref<8x128xbf16, #tpu.memory_space<vmem>>, vector<8x32xbf16>
    %c0_3 = arith.constant 0 : index
    %c0_4 = arith.constant 0 : index
    %2 = vector.load %arg3[%c0_3, %c0_4] : memref<8x128xbf16, #tpu.memory_space<vmem>>, vector<8x32xbf16>
    %cst = arith.constant dense<0.000000e+00> : vector<8x8xf32>
    %3 = tpu.matmul %0, %1, %cst {dimension_numbers = #tpu.dot_dimension_numbers<[1], [1], [0], [0], [0, 0, 1, 0], [], []>} : vector<8x32xbf16>, vector<8x32xbf16>, vector<8x8xf32> -> vector<8x8xf32>
    %cst_5 = arith.constant 0.176776692 : f32
    %4 = vector.broadcast %cst_5 : f32 to vector<8x8xf32>
    %5 = arith.mulf %3, %4 : vector<8x8xf32>
    %cst_6 = arith.constant dense<0xFF800000> : vector<8xf32>
    %6 = vector.multi_reduction <maximumf>, %5, %cst_6 [1] : vector<8x8xf32> to vector<8xf32>
    %7 = vector.shape_cast %6 : vector<8xf32> to vector<8x1xf32>
    %8 = vector.broadcast %7 : vector<8x1xf32> to vector<8x8xf32>
    %9 = arith.subf %5, %8 : vector<8x8xf32>
    %10 = math.exp %9 : vector<8x8xf32>
    %cst_7 = arith.constant dense<0.000000e+00> : vector<8xf32>
    %11 = vector.multi_reduction <add>, %10, %cst_7 [1] : vector<8x8xf32> to vector<8xf32>
    %12 = vector.shape_cast %11 : vector<8xf32> to vector<8x1xf32>
    %13 = arith.truncf %10 : vector<8x8xf32> to vector<8x8xbf16>
    %cst_8 = arith.constant dense<0.000000e+00> : vector<8x32xf32>
    %14 = tpu.matmul %13, %2, %cst_8 {dimension_numbers = #tpu.dot_dimension_numbers<[1], [0], [0], [1], [0, 0, 1, 1], [], []>} : vector<8x8xbf16>, vector<8x32xbf16>, vector<8x32xf32> -> vector<8x32xf32>
    %15 = vector.broadcast %12 : vector<8x1xf32> to vector<8x32xf32>
    %16 = arith.divf %14, %15 : vector<8x32xf32>
    %17 = arith.truncf %16 : vector<8x32xf32> to vector<8x32xbf16>
    %c0_9 = arith.constant 0 : index
    %c0_10 = arith.constant 0 : index
    %18 = vector.load %arg4[%c0_9, %c0_10] : memref<8x128xbf16, #tpu.memory_space<vmem>>, vector<8x32xbf16>
    tpu.vector_store %arg4[%c0_9, %c0_10], %17 {strides = array<i32>} : memref<8x128xbf16, #tpu.memory_space<vmem>>, vector<8x32xbf16>,
    %c0_11 = arith.constant 0 : index
    %c32 = arith.constant 32 : index
    %19 = vector.load %arg1[%c0_11, %c32] : memref<8x128xbf16, #tpu.memory_space<vmem>>, vector<8x32xbf16>
    %c0_12 = arith.constant 0 : index
    %c32_13 = arith.constant 32 : index
    %20 = vector.load %arg2[%c0_12, %c32_13] : memref<8x128xbf16, #tpu.memory_space<vmem>>, vector<8x32xbf16>
    %c0_14 = arith.constant 0 : index
    %c32_15 = arith.constant 32 : index
    %21 = vector.load %arg3[%c0_14, %c32_15] : memref<8x128xbf16, #tpu.memory_space<vmem>>, vector<8x32xbf16>
    %cst_16 = arith.constant dense<0.000000e+00> : vector<8x8xf32>
    %22 = tpu.matmul %19, %20, %cst_16 {dimension_numbers = #tpu.dot_dimension_numbers<[1], [1], [0], [0], [0, 0, 1, 0], [], []>} : vector<8x32xbf16>, vector<8x32xbf16>, vector<8x8xf32> -> vector<8x8xf32>
    %cst_17 = arith.constant 0.176776692 : f32
    %23 = vector.broadcast %cst_17 : f32 to vector<8x8xf32>
    %24 = arith.mulf %22, %23 : vector<8x8xf32>
    %cst_18 = arith.constant dense<0xFF800000> : vector<8xf32>
    %25 = vector.multi_reduction <maximumf>, %24, %cst_18 [1] : vector<8x8xf32> to vector<8xf32>
    %26 = vector.shape_cast %25 : vector<8xf32> to vector<8x1xf32>
    %27 = vector.broadcast %26 : vector<8x1xf32> to vector<8x8xf32>
    %28 = arith.subf %24, %27 : vector<8x8xf32>
    %29 = math.exp %28 : vector<8x8xf32>
    %cst_19 = arith.constant dense<0.000000e+00> : vector<8xf32>
    %30 = vector.multi_reduction <add>, %29, %cst_19 [1] : vector<8x8xf32> to vector<8xf32>
    %31 = vector.shape_cast %30 : vector<8xf32> to vector<8x1xf32>
    %32 = arith.truncf %29 : vector<8x8xf32> to vector<8x8xbf16>
    %cst_20 = arith.constant dense<0.000000e+00> : vector<8x32xf32>
    %33 = tpu.matmul %32, %21, %cst_20 {dimension_numbers = #tpu.dot_dimension_numbers<[1], [0], [0], [1], [0, 0, 1, 1], [], []>} : vector<8x8xbf16>, vector<8x32xbf16>, vector<8x32xf32> -> vector<8x32xf32>
    %34 = vector.broadcast %31 : vector<8x1xf32> to vector<8x32xf32>
    %35 = arith.divf %33, %34 : vector<8x32xf32>
    %36 = arith.truncf %35 : vector<8x32xf32> to vector<8x32xbf16>
    %c0_21 = arith.constant 0 : index
    %c32_22 = arith.constant 32 : index
    %37 = vector.load %arg4[%c0_21, %c32_22] : memref<8x128xbf16, #tpu.memory_space<vmem>>, vector<8x32xbf16>
    tpu.vector_store %arg4[%c0_21, %c32_22], %36 {strides = array<i32>} : memref<8x128xbf16, #tpu.memory_space<vmem>>, vector<8x32xbf16>,
    %c0_23 = arith.constant 0 : index
    %c64 = arith.constant 64 : index
    %38 = vector.load %arg1[%c0_23, %c64] : memref<8x128xbf16, #tpu.memory_space<vmem>>, vector<8x32xbf16>
    %c0_24 = arith.constant 0 : index
    %c64_25 = arith.constant 64 : index
    %39 = vector.load %arg2[%c0_24, %c64_25] : memref<8x128xbf16, #tpu.memory_space<vmem>>, vector<8x32xbf16>
    %c0_26 = arith.constant 0 : index
    %c64_27 = arith.constant 64 : index
    %40 = vector.load %arg3[%c0_26, %c64_27] : memref<8x128xbf16, #tpu.memory_space<vmem>>, vector<8x32xbf16>
    %cst_28 = arith.constant dense<0.000000e+00> : vector<8x8xf32>
    %41 = tpu.matmul %38, %39, %cst_28 {dimension_numbers = #tpu.dot_dimension_numbers<[1], [1], [0], [0], [0, 0, 1, 0], [], []>} : vector<8x32xbf16>, vector<8x32xbf16>, vector<8x8xf32> -> vector<8x8xf32>
    %cst_29 = arith.constant 0.176776692 : f32
    %42 = vector.broadcast %cst_29 : f32 to vector<8x8xf32>
    %43 = arith.mulf %41, %42 : vector<8x8xf32>
    %cst_30 = arith.constant dense<0xFF800000> : vector<8xf32>
    %44 = vector.multi_reduction <maximumf>, %43, %cst_30 [1] : vector<8x8xf32> to vector<8xf32>
    %45 = vector.shape_cast %44 : vector<8xf32> to vector<8x1xf32>
    %46 = vector.broadcast %45 : vector<8x1xf32> to vector<8x8xf32>
    %47 = arith.subf %43, %46 : vector<8x8xf32>
    %48 = math.exp %47 : vector<8x8xf32>
    %cst_31 = arith.constant dense<0.000000e+00> : vector<8xf32>
    %49 = vector.multi_reduction <add>, %48, %cst_31 [1] : vector<8x8xf32> to vector<8xf32>
    %50 = vector.shape_cast %49 : vector<8xf32> to vector<8x1xf32>
    %51 = arith.truncf %48 : vector<8x8xf32> to vector<8x8xbf16>
    %cst_32 = arith.constant dense<0.000000e+00> : vector<8x32xf32>
    %52 = tpu.matmul %51, %40, %cst_32 {dimension_numbers = #tpu.dot_dimension_numbers<[1], [0], [0], [1], [0, 0, 1, 1], [], []>} : vector<8x8xbf16>, vector<8x32xbf16>, vector<8x32xf32> -> vector<8x32xf32>
    %53 = vector.broadcast %50 : vector<8x1xf32> to vector<8x32xf32>
    %54 = arith.divf %52, %53 : vector<8x32xf32>
    %55 = arith.truncf %54 : vector<8x32xf32> to vector<8x32xbf16>
    %c0_33 = arith.constant 0 : index
    %c64_34 = arith.constant 64 : index
    %56 = vector.load %arg4[%c0_33, %c64_34] : memref<8x128xbf16, #tpu.memory_space<vmem>>, vector<8x32xbf16>
    tpu.vector_store %arg4[%c0_33, %c64_34], %55 {strides = array<i32>} : memref<8x128xbf16, #tpu.memory_space<vmem>>, vector<8x32xbf16>,
    %c0_35 = arith.constant 0 : index
    %c96 = arith.constant 96 : index
    %57 = vector.load %arg1[%c0_35, %c96] : memref<8x128xbf16, #tpu.memory_space<vmem>>, vector<8x32xbf16>
    %c0_36 = arith.constant 0 : index
    %c96_37 = arith.constant 96 : index
    %58 = vector.load %arg2[%c0_36, %c96_37] : memref<8x128xbf16, #tpu.memory_space<vmem>>, vector<8x32xbf16>
    %c0_38 = arith.constant 0 : index
    %c96_39 = arith.constant 96 : index
    %59 = vector.load %arg3[%c0_38, %c96_39] : memref<8x128xbf16, #tpu.memory_space<vmem>>, vector<8x32xbf16>
    %cst_40 = arith.constant dense<0.000000e+00> : vector<8x8xf32>
    %60 = tpu.matmul %57, %58, %cst_40 {dimension_numbers = #tpu.dot_dimension_numbers<[1], [1], [0], [0], [0, 0, 1, 0], [], []>} : vector<8x32xbf16>, vector<8x32xbf16>, vector<8x8xf32> -> vector<8x8xf32>
    %cst_41 = arith.constant 0.176776692 : f32
    %61 = vector.broadcast %cst_41 : f32 to vector<8x8xf32>
    %62 = arith.mulf %60, %61 : vector<8x8xf32>
    %cst_42 = arith.constant dense<0xFF800000> : vector<8xf32>
    %63 = vector.multi_reduction <maximumf>, %62, %cst_42 [1] : vector<8x8xf32> to vector<8xf32>
    %64 = vector.shape_cast %63 : vector<8xf32> to vector<8x1xf32>
    %65 = vector.broadcast %64 : vector<8x1xf32> to vector<8x8xf32>
    %66 = arith.subf %62, %65 : vector<8x8xf32>
    %67 = math.exp %66 : vector<8x8xf32>
    %cst_43 = arith.constant dense<0.000000e+00> : vector<8xf32>
    %68 = vector.multi_reduction <add>, %67, %cst_43 [1] : vector<8x8xf32> to vector<8xf32>
    %69 = vector.shape_cast %68 : vector<8xf32> to vector<8x1xf32>
    %70 = arith.truncf %67 : vector<8x8xf32> to vector<8x8xbf16>
    %cst_44 = arith.constant dense<0.000000e+00> : vector<8x32xf32>
    %71 = tpu.matmul %70, %59, %cst_44 {dimension_numbers = #tpu.dot_dimension_numbers<[1], [0], [0], [1], [0, 0, 1, 1], [], []>} : vector<8x8xbf16>, vector<8x32xbf16>, vector<8x32xf32> -> vector<8x32xf32>
    %72 = vector.broadcast %69 : vector<8x1xf32> to vector<8x32xf32>
    %73 = arith.divf %71, %72 : vector<8x32xf32>
    %74 = arith.truncf %73 : vector<8x32xf32> to vector<8x32xbf16>
    %c0_45 = arith.constant 0 : index
    %c96_46 = arith.constant 96 : index
    %75 = vector.load %arg4[%c0_45, %c96_46] : memref<8x128xbf16, #tpu.memory_space<vmem>>, vector<8x32xbf16>
    tpu.vector_store %arg4[%c0_45, %c96_46], %74 {strides = array<i32>} : memref<8x128xbf16, #tpu.memory_space<vmem>>, vector<8x32xbf16>,
    return
  }
  func.func @transform_0(%arg0: i32) -> (i32, i32) {
    %c0_i32 = arith.constant 0 : i32
    %c0_i32_0 = arith.constant 0 : i32
    return %arg0, %c0_i32 : i32, i32
  }
  func.func @transform_1(%arg0: i32) -> (i32, i32) {
    %c0_i32 = arith.constant 0 : i32
    %c1_i32 = arith.constant 1 : i32
    %c0_i32_0 = arith.constant 0 : i32
    return %c0_i32, %c1_i32 : i32, i32
  }
  func.func @transform_2(%arg0: i32) -> (i32, i32) {
    %c0_i32 = arith.constant 0 : i32
    %c2_i32 = arith.constant 2 : i32
    %c0_i32_0 = arith.constant 0 : i32
    return %c0_i32, %c2_i32 : i32, i32
  }
  func.func @transform_3(%arg0: i32) -> (i32, i32) {
    %c0_i32 = arith.constant 0 : i32
    %c0_i32_0 = arith.constant 0 : i32
    return %arg0, %c0_i32 : i32, i32
  }
}

module attributes {stable_mosaic.version = 11 : i64} {
  func.func @_add_ln_kernel(%arg0: i32, %arg1: i32, %arg2: memref<1x8x128xf32, #tpu.memory_space<vmem>>, %arg3: memref<1x8x128xf32, #tpu.memory_space<vmem>>, %arg4: memref<1x128xf32, #tpu.memory_space<vmem>>, %arg5: memref<1x128xf32, #tpu.memory_space<vmem>>, %arg6: memref<1x8x128xbf16, #tpu.memory_space<vmem>>) attributes {dimension_semantics = [#tpu.dimension_semantics<parallel>, #tpu.dimension_semantics<parallel>], iteration_bounds = array<i64: 2, 1>, scalar_prefetch = 0 : i64, scratch_operands = 0 : i64, tpu.core_type = #tpu.core_type<tc>, window_params = [{transform_indices = @transform_0, window_bounds = array<i64: 1, 8, 128>}, {transform_indices = @transform_1, window_bounds = array<i64: 1, 8, 128>}, {pipeline_mode = #tpu.pipeline_mode<synchronous>, transform_indices = @transform_2, window_bounds = array<i64: 1, 128>}, {pipeline_mode = #tpu.pipeline_mode<synchronous>, transform_indices = @transform_3, window_bounds = array<i64: 1, 128>}, {transform_indices = @transform_4, window_bounds = array<i64: 1, 8, 128>}]} {
    %c0 = arith.constant 0 : index
    %c0_0 = arith.constant 0 : index
    %c0_1 = arith.constant 0 : index
    %0 = vector.load %arg2[%c0, %c0_0, %c0_1] : memref<1x8x128xf32, #tpu.memory_space<vmem>>, vector<1x8x128xf32>
    %c0_2 = arith.constant 0 : index
    %c0_3 = arith.constant 0 : index
    %c0_4 = arith.constant 0 : index
    %1 = vector.load %arg3[%c0_2, %c0_3, %c0_4] : memref<1x8x128xf32, #tpu.memory_space<vmem>>, vector<1x8x128xf32>
    %2 = arith.addf %0, %1 : vector<1x8x128xf32>
    %cst = arith.constant dense<0.000000e+00> : vector<1x8xf32>
    %3 = vector.multi_reduction <add>, %2, %cst [2] : vector<1x8x128xf32> to vector<1x8xf32>
    %4 = vector.shape_cast %3 : vector<1x8xf32> to vector<1x8x1xf32>
    %cst_5 = arith.constant 1.280000e+02 : f32
    %5 = vector.broadcast %cst_5 : f32 to vector<1x8x1xf32>
    %6 = arith.divf %4, %5 : vector<1x8x1xf32>
    %7 = vector.broadcast %6 : vector<1x8x1xf32> to vector<1x8x128xf32>
    %8 = arith.subf %2, %7 : vector<1x8x128xf32>
    %9 = arith.mulf %8, %8 : vector<1x8x128xf32>
    %cst_6 = arith.constant dense<0.000000e+00> : vector<1x8xf32>
    %10 = vector.multi_reduction <add>, %9, %cst_6 [2] : vector<1x8x128xf32> to vector<1x8xf32>
    %11 = vector.shape_cast %10 : vector<1x8xf32> to vector<1x8x1xf32>
    %cst_7 = arith.constant 1.280000e+02 : f32
    %12 = vector.broadcast %cst_7 : f32 to vector<1x8x1xf32>
    %13 = arith.divf %11, %12 : vector<1x8x1xf32>
    %14 = vector.broadcast %6 : vector<1x8x1xf32> to vector<1x8x128xf32>
    %15 = arith.subf %2, %14 : vector<1x8x128xf32>
    %cst_8 = arith.constant 9.99999974E-6 : f32
    %16 = vector.broadcast %cst_8 : f32 to vector<1x8x1xf32>
    %17 = arith.addf %13, %16 : vector<1x8x1xf32>
    %18 = math.rsqrt %17 : vector<1x8x1xf32>
    %19 = vector.broadcast %18 : vector<1x8x1xf32> to vector<1x8x128xf32>
    %20 = arith.mulf %15, %19 : vector<1x8x128xf32>
    %c0_9 = arith.constant 0 : index
    %c0_10 = arith.constant 0 : index
    %21 = vector.load %arg4[%c0_9, %c0_10] : memref<1x128xf32, #tpu.memory_space<vmem>>, vector<1x128xf32>
    %22 = vector.shape_cast %21 : vector<1x128xf32> to vector<1x1x128xf32>
    %23 = vector.broadcast %22 : vector<1x1x128xf32> to vector<1x8x128xf32>
    %24 = arith.mulf %20, %23 : vector<1x8x128xf32>
    %c0_11 = arith.constant 0 : index
    %c0_12 = arith.constant 0 : index
    %25 = vector.load %arg5[%c0_11, %c0_12] : memref<1x128xf32, #tpu.memory_space<vmem>>, vector<1x128xf32>
    %26 = vector.shape_cast %25 : vector<1x128xf32> to vector<1x1x128xf32>
    %27 = vector.broadcast %26 : vector<1x1x128xf32> to vector<1x8x128xf32>
    %28 = arith.addf %24, %27 : vector<1x8x128xf32>
    %29 = arith.truncf %28 : vector<1x8x128xf32> to vector<1x8x128xbf16>
    %c0_13 = arith.constant 0 : index
    %c0_14 = arith.constant 0 : index
    %c0_15 = arith.constant 0 : index
    %30 = vector.load %arg6[%c0_13, %c0_14, %c0_15] : memref<1x8x128xbf16, #tpu.memory_space<vmem>>, vector<1x8x128xbf16>
    tpu.vector_store %arg6[%c0_13, %c0_14, %c0_15], %29 {strides = array<i32>} : memref<1x8x128xbf16, #tpu.memory_space<vmem>>, vector<1x8x128xbf16>,
    return
  }
  func.func @transform_0(%arg0: i32, %arg1: i32) -> (i32, i32, i32) {
    %c0_i32 = arith.constant 0 : i32
    %c0_i32_0 = arith.constant 0 : i32
    return %arg0, %arg1, %c0_i32 : i32, i32, i32
  }
  func.func @transform_1(%arg0: i32, %arg1: i32) -> (i32, i32, i32) {
    %c0_i32 = arith.constant 0 : i32
    %c0_i32_0 = arith.constant 0 : i32
    %c0_i32_1 = arith.constant 0 : i32
    return %c0_i32, %arg1, %c0_i32_0 : i32, i32, i32
  }
  func.func @transform_2(%arg0: i32, %arg1: i32) -> (i32, i32) {
    %c0_i32 = arith.constant 0 : i32
    %c0_i32_0 = arith.constant 0 : i32
    %c0_i32_1 = arith.constant 0 : i32
    return %c0_i32, %c0_i32_0 : i32, i32
  }
  func.func @transform_3(%arg0: i32, %arg1: i32) -> (i32, i32) {
    %c0_i32 = arith.constant 0 : i32
    %c0_i32_0 = arith.constant 0 : i32
    %c0_i32_1 = arith.constant 0 : i32
    return %c0_i32, %c0_i32_0 : i32, i32
  }
  func.func @transform_4(%arg0: i32, %arg1: i32) -> (i32, i32, i32) {
    %c0_i32 = arith.constant 0 : i32
    %c0_i32_0 = arith.constant 0 : i32
    return %arg0, %arg1, %c0_i32 : i32, i32, i32
  }
}

module attributes {stable_mosaic.version = 11 : i64} {
  func.func @kernel(%arg0: i32, %arg1: i32, %arg2: memref<1x8x128xbf16, #tpu.memory_space<vmem>>, %arg3: memref<1x128xf32, #tpu.memory_space<vmem>>, %arg4: memref<1x128xf32, #tpu.memory_space<vmem>>, %arg5: memref<128x384xbf16, #tpu.memory_space<vmem>>, %arg6: memref<8x384xbf16, #tpu.memory_space<vmem>>) attributes {dimension_semantics = [#tpu.dimension_semantics<parallel>, #tpu.dimension_semantics<parallel>], iteration_bounds = array<i64: 1, 1>, scalar_prefetch = 0 : i64, scratch_operands = 0 : i64, tpu.core_type = #tpu.core_type<tc>, window_params = [{transform_indices = @transform_0, window_bounds = array<i64: 1, 8, 128>}, {pipeline_mode = #tpu.pipeline_mode<synchronous>, transform_indices = @transform_1, window_bounds = array<i64: 1, 128>}, {pipeline_mode = #tpu.pipeline_mode<synchronous>, transform_indices = @transform_2, window_bounds = array<i64: 1, 128>}, {transform_indices = @transform_3, window_bounds = array<i64: 128, 384>}, {transform_indices = @transform_4, window_bounds = array<i64: 8, 384>}]} {
    %c0 = arith.constant 0 : index
    %c0_0 = arith.constant 0 : index
    %c0_1 = arith.constant 0 : index
    %0 = vector.load %arg2[%c0, %c0_0, %c0_1] : memref<1x8x128xbf16, #tpu.memory_space<vmem>>, vector<1x8x128xbf16>
    %1 = vector.shape_cast %0 : vector<1x8x128xbf16> to vector<8x128xbf16>
    %2 = arith.extf %1 : vector<8x128xbf16> to vector<8x128xf32>
    %cst = arith.constant dense<0.000000e+00> : vector<8xf32>
    %3 = vector.multi_reduction <add>, %2, %cst [1] : vector<8x128xf32> to vector<8xf32>
    %4 = vector.shape_cast %3 : vector<8xf32> to vector<8x1xf32>
    %cst_2 = arith.constant 1.280000e+02 : f32
    %5 = vector.broadcast %cst_2 : f32 to vector<8x1xf32>
    %6 = arith.divf %4, %5 : vector<8x1xf32>
    %7 = vector.broadcast %6 : vector<8x1xf32> to vector<8x128xf32>
    %8 = arith.subf %2, %7 : vector<8x128xf32>
    %9 = arith.mulf %8, %8 : vector<8x128xf32>
    %cst_3 = arith.constant dense<0.000000e+00> : vector<8xf32>
    %10 = vector.multi_reduction <add>, %9, %cst_3 [1] : vector<8x128xf32> to vector<8xf32>
    %11 = vector.shape_cast %10 : vector<8xf32> to vector<8x1xf32>
    %cst_4 = arith.constant 1.280000e+02 : f32
    %12 = vector.broadcast %cst_4 : f32 to vector<8x1xf32>
    %13 = arith.divf %11, %12 : vector<8x1xf32>
    %14 = vector.broadcast %6 : vector<8x1xf32> to vector<8x128xf32>
    %15 = arith.subf %2, %14 : vector<8x128xf32>
    %cst_5 = arith.constant 9.99999974E-6 : f32
    %16 = vector.broadcast %cst_5 : f32 to vector<8x1xf32>
    %17 = arith.addf %13, %16 : vector<8x1xf32>
    %18 = math.rsqrt %17 : vector<8x1xf32>
    %19 = vector.broadcast %18 : vector<8x1xf32> to vector<8x128xf32>
    %20 = arith.mulf %15, %19 : vector<8x128xf32>
    %c0_6 = arith.constant 0 : index
    %c0_7 = arith.constant 0 : index
    %21 = vector.load %arg3[%c0_6, %c0_7] : memref<1x128xf32, #tpu.memory_space<vmem>>, vector<1x128xf32>
    %22 = vector.broadcast %21 : vector<1x128xf32> to vector<8x128xf32>
    %23 = arith.mulf %20, %22 : vector<8x128xf32>
    %c0_8 = arith.constant 0 : index
    %c0_9 = arith.constant 0 : index
    %24 = vector.load %arg4[%c0_8, %c0_9] : memref<1x128xf32, #tpu.memory_space<vmem>>, vector<1x128xf32>
    %25 = vector.broadcast %24 : vector<1x128xf32> to vector<8x128xf32>
    %26 = arith.addf %23, %25 : vector<8x128xf32>
    %27 = arith.truncf %26 : vector<8x128xf32> to vector<8x128xbf16>
    %c0_10 = arith.constant 0 : index
    %c0_11 = arith.constant 0 : index
    %28 = vector.load %arg5[%c0_10, %c0_11] : memref<128x384xbf16, #tpu.memory_space<vmem>>, vector<128x384xbf16>
    %cst_12 = arith.constant dense<0.000000e+00> : vector<8x384xf32>
    %29 = tpu.matmul %27, %28, %cst_12 {dimension_numbers = #tpu.dot_dimension_numbers<[1], [0], [0], [1], [0, 0, 1, 1], [], []>} : vector<8x128xbf16>, vector<128x384xbf16>, vector<8x384xf32> -> vector<8x384xf32>
    %30 = arith.truncf %29 : vector<8x384xf32> to vector<8x384xbf16>
    %c0_13 = arith.constant 0 : index
    %c0_14 = arith.constant 0 : index
    %31 = vector.load %arg6[%c0_13, %c0_14] : memref<8x384xbf16, #tpu.memory_space<vmem>>, vector<8x384xbf16>
    tpu.vector_store %arg6[%c0_13, %c0_14], %30 {strides = array<i32>} : memref<8x384xbf16, #tpu.memory_space<vmem>>, vector<8x384xbf16>,
    return
  }
  func.func @transform_0(%arg0: i32, %arg1: i32) -> (i32, i32, i32) {
    %c0_i32 = arith.constant 0 : i32
    %c0_i32_0 = arith.constant 0 : i32
    %c0_i32_1 = arith.constant 0 : i32
    return %c0_i32, %arg0, %c0_i32_0 : i32, i32, i32
  }
  func.func @transform_1(%arg0: i32, %arg1: i32) -> (i32, i32) {
    %c0_i32 = arith.constant 0 : i32
    %c0_i32_0 = arith.constant 0 : i32
    %c0_i32_1 = arith.constant 0 : i32
    return %c0_i32, %c0_i32_0 : i32, i32
  }
  func.func @transform_2(%arg0: i32, %arg1: i32) -> (i32, i32) {
    %c0_i32 = arith.constant 0 : i32
    %c0_i32_0 = arith.constant 0 : i32
    %c0_i32_1 = arith.constant 0 : i32
    return %c0_i32, %c0_i32_0 : i32, i32
  }
  func.func @transform_3(%arg0: i32, %arg1: i32) -> (i32, i32) {
    %c0_i32 = arith.constant 0 : i32
    %c0_i32_0 = arith.constant 0 : i32
    return %c0_i32, %arg1 : i32, i32
  }
  func.func @transform_4(%arg0: i32, %arg1: i32) -> (i32, i32) {
    %c0_i32 = arith.constant 0 : i32
    return %arg0, %arg1 : i32, i32
  }
}

module attributes {stable_mosaic.version = 11 : i64} {
  func.func @kernel(%arg0: i32, %arg1: i32, %arg2: i32, %arg3: memref<8x128xbf16, #tpu.memory_space<vmem>>, %arg4: memref<128x128xbf16, #tpu.memory_space<vmem>>, %arg5: memref<8x128xbf16, #tpu.memory_space<vmem>>, %arg6: memref<8x128xf32, #tpu.memory_space<vmem>>) attributes {dimension_semantics = [#tpu.dimension_semantics<parallel>, #tpu.dimension_semantics<parallel>, #tpu.dimension_semantics<arbitrary>], iteration_bounds = array<i64: 1, 1, 1>, scalar_prefetch = 0 : i64, scratch_operands = 1 : i64, tpu.core_type = #tpu.core_type<tc>, window_params = [{transform_indices = @transform_0, window_bounds = array<i64: 8, 128>}, {transform_indices = @transform_1, window_bounds = array<i64: 128, 128>}, {transform_indices = @transform_2, window_bounds = array<i64: 8, 128>}]} {
    %c0_i32 = arith.constant 0 : i32
    %0 = arith.cmpi eq, %arg2, %c0_i32 : i32
    %1 = arith.extui %0 : i1 to i32
    %c0_i32_0 = arith.constant 0 : i32
    %2 = arith.cmpi ne, %1, %c0_i32_0 : i32
    scf.if %2 {
      %cst_10 = arith.constant 0.000000e+00 : f32
      %12 = vector.broadcast %cst_10 : f32 to vector<8x128xf32>
      %c0_11 = arith.constant 0 : index
      %c0_12 = arith.constant 0 : index
      %13 = vector.load %arg6[%c0_11, %c0_12] : memref<8x128xf32, #tpu.memory_space<vmem>>, vector<8x128xf32>
      tpu.vector_store %arg6[%c0_11, %c0_12], %12 {strides = array<i32>} : memref<8x128xf32, #tpu.memory_space<vmem>>, vector<8x128xf32>,
    } else {
    }
    %c0 = arith.constant 0 : index
    %c0_1 = arith.constant 0 : index
    %3 = vector.load %arg6[%c0, %c0_1] : memref<8x128xf32, #tpu.memory_space<vmem>>, vector<8x128xf32>
    %c0_2 = arith.constant 0 : index
    %c0_3 = arith.constant 0 : index
    %4 = vector.load %arg3[%c0_2, %c0_3] : memref<8x128xbf16, #tpu.memory_space<vmem>>, vector<8x128xbf16>
    %c0_4 = arith.constant 0 : index
    %c0_5 = arith.constant 0 : index
    %5 = vector.load %arg4[%c0_4, %c0_5] : memref<128x128xbf16, #tpu.memory_space<vmem>>, vector<128x128xbf16>
    %cst = arith.constant dense<0.000000e+00> : vector<8x128xf32>
    %6 = tpu.matmul %4, %5, %cst {dimension_numbers = #tpu.dot_dimension_numbers<[1], [0], [0], [1], [0, 0, 1, 1], [], []>} : vector<8x128xbf16>, vector<128x128xbf16>, vector<8x128xf32> -> vector<8x128xf32>
    %7 = arith.addf %3, %6 : vector<8x128xf32>
    %c0_6 = arith.constant 0 : index
    %c0_7 = arith.constant 0 : index
    %8 = vector.load %arg6[%c0_6, %c0_7] : memref<8x128xf32, #tpu.memory_space<vmem>>, vector<8x128xf32>
    tpu.vector_store %arg6[%c0_6, %c0_7], %7 {strides = array<i32>} : memref<8x128xf32, #tpu.memory_space<vmem>>, vector<8x128xf32>,
    %c0_i32_8 = arith.constant 0 : i32
    %9 = arith.cmpi eq, %arg2, %c0_i32_8 : i32
    %10 = arith.extui %9 : i1 to i32
    %c0_i32_9 = arith.constant 0 : i32
    %11 = arith.cmpi ne, %10, %c0_i32_9 : i32
    scf.if %11 {
      %c0_10 = arith.constant 0 : index
      %c0_11 = arith.constant 0 : index
      %12 = vector.load %arg6[%c0_10, %c0_11] : memref<8x128xf32, #tpu.memory_space<vmem>>, vector<8x128xf32>
      %13 = arith.truncf %12 : vector<8x128xf32> to vector<8x128xbf16>
      %c0_12 = arith.constant 0 : index
      %c0_13 = arith.constant 0 : index
      %14 = vector.load %arg5[%c0_12, %c0_13] : memref<8x128xbf16, #tpu.memory_space<vmem>>, vector<8x128xbf16>
      tpu.vector_store %arg5[%c0_12, %c0_13], %13 {strides = array<i32>} : memref<8x128xbf16, #tpu.memory_space<vmem>>, vector<8x128xbf16>,
    } else {
    }
    return
  }
  func.func @transform_0(%arg0: i32, %arg1: i32, %arg2: i32) -> (i32, i32) {
    %c0_i32 = arith.constant 0 : i32
    return %arg0, %arg2 : i32, i32
  }
  func.func @transform_1(%arg0: i32, %arg1: i32, %arg2: i32) -> (i32, i32) {
    %c0_i32 = arith.constant 0 : i32
    return %arg2, %arg1 : i32, i32
  }
  func.func @transform_2(%arg0: i32, %arg1: i32, %arg2: i32) -> (i32, i32) {
    %c0_i32 = arith.constant 0 : i32
    return %arg0, %arg1 : i32, i32
  }
}

module attributes {stable_mosaic.version = 11 : i64} {
  func.func @kernel(%arg0: i32, %arg1: i32, %arg2: i32, %arg3: memref<16x512xbf16, #tpu.memory_space<vmem>>, %arg4: memref<512x128xbf16, #tpu.memory_space<vmem>>, %arg5: memref<16x128xbf16, #tpu.memory_space<vmem>>, %arg6: memref<16x128xf32, #tpu.memory_space<vmem>>) attributes {dimension_semantics = [#tpu.dimension_semantics<parallel>, #tpu.dimension_semantics<parallel>, #tpu.dimension_semantics<arbitrary>], iteration_bounds = array<i64: 1, 1, 1>, scalar_prefetch = 0 : i64, scratch_operands = 1 : i64, tpu.core_type = #tpu.core_type<tc>, window_params = [{transform_indices = @transform_0, window_bounds = array<i64: 16, 512>}, {transform_indices = @transform_1, window_bounds = array<i64: 512, 128>}, {transform_indices = @transform_2, window_bounds = array<i64: 16, 128>}]} {
    %c0_i32 = arith.constant 0 : i32
    %0 = arith.cmpi eq, %arg2, %c0_i32 : i32
    %1 = arith.extui %0 : i1 to i32
    %c0_i32_0 = arith.constant 0 : i32
    %2 = arith.cmpi ne, %1, %c0_i32_0 : i32
    scf.if %2 {
      %cst_10 = arith.constant 0.000000e+00 : f32
      %12 = vector.broadcast %cst_10 : f32 to vector<16x128xf32>
      %c0_11 = arith.constant 0 : index
      %c0_12 = arith.constant 0 : index
      %13 = vector.load %arg6[%c0_11, %c0_12] : memref<16x128xf32, #tpu.memory_space<vmem>>, vector<16x128xf32>
      tpu.vector_store %arg6[%c0_11, %c0_12], %12 {strides = array<i32>} : memref<16x128xf32, #tpu.memory_space<vmem>>, vector<16x128xf32>,
    } else {
    }
    %c0 = arith.constant 0 : index
    %c0_1 = arith.constant 0 : index
    %3 = vector.load %arg6[%c0, %c0_1] : memref<16x128xf32, #tpu.memory_space<vmem>>, vector<16x128xf32>
    %c0_2 = arith.constant 0 : index
    %c0_3 = arith.constant 0 : index
    %4 = vector.load %arg3[%c0_2, %c0_3] : memref<16x512xbf16, #tpu.memory_space<vmem>>, vector<16x512xbf16>
    %c0_4 = arith.constant 0 : index
    %c0_5 = arith.constant 0 : index
    %5 = vector.load %arg4[%c0_4, %c0_5] : memref<512x128xbf16, #tpu.memory_space<vmem>>, vector<512x128xbf16>
    %cst = arith.constant dense<0.000000e+00> : vector<16x128xf32>
    %6 = tpu.matmul %4, %5, %cst {dimension_numbers = #tpu.dot_dimension_numbers<[1], [0], [0], [1], [0, 0, 1, 1], [], []>} : vector<16x512xbf16>, vector<512x128xbf16>, vector<16x128xf32> -> vector<16x128xf32>
    %7 = arith.addf %3, %6 : vector<16x128xf32>
    %c0_6 = arith.constant 0 : index
    %c0_7 = arith.constant 0 : index
    %8 = vector.load %arg6[%c0_6, %c0_7] : memref<16x128xf32, #tpu.memory_space<vmem>>, vector<16x128xf32>
    tpu.vector_store %arg6[%c0_6, %c0_7], %7 {strides = array<i32>} : memref<16x128xf32, #tpu.memory_space<vmem>>, vector<16x128xf32>,
    %c0_i32_8 = arith.constant 0 : i32
    %9 = arith.cmpi eq, %arg2, %c0_i32_8 : i32
    %10 = arith.extui %9 : i1 to i32
    %c0_i32_9 = arith.constant 0 : i32
    %11 = arith.cmpi ne, %10, %c0_i32_9 : i32
    scf.if %11 {
      %c0_10 = arith.constant 0 : index
      %c0_11 = arith.constant 0 : index
      %12 = vector.load %arg6[%c0_10, %c0_11] : memref<16x128xf32, #tpu.memory_space<vmem>>, vector<16x128xf32>
      %cst_12 = arith.constant 5.000000e-01 : f32
      %13 = vector.broadcast %cst_12 : f32 to vector<16x128xf32>
      %14 = arith.mulf %12, %13 : vector<16x128xf32>
      %cst_13 = arith.constant 1.414210e+00 : f32
      %15 = vector.broadcast %cst_13 : f32 to vector<16x128xf32>
      %16 = arith.divf %12, %15 : vector<16x128xf32>
      %17 = math.erf %16 : vector<16x128xf32>
      %cst_14 = arith.constant 1.000000e+00 : f32
      %18 = vector.broadcast %cst_14 : f32 to vector<16x128xf32>
      %19 = arith.addf %18, %17 : vector<16x128xf32>
      %20 = arith.mulf %14, %19 : vector<16x128xf32>
      %21 = arith.truncf %20 : vector<16x128xf32> to vector<16x128xbf16>
      %c0_15 = arith.constant 0 : index
      %c0_16 = arith.constant 0 : index
      %22 = vector.load %arg5[%c0_15, %c0_16] : memref<16x128xbf16, #tpu.memory_space<vmem>>, vector<16x128xbf16>
      tpu.vector_store %arg5[%c0_15, %c0_16], %21 {strides = array<i32>} : memref<16x128xbf16, #tpu.memory_space<vmem>>, vector<16x128xbf16>,
    } else {
    }
    return
  }
  func.func @transform_0(%arg0: i32, %arg1: i32, %arg2: i32) -> (i32, i32) {
    %c0_i32 = arith.constant 0 : i32
    return %arg0, %arg2 : i32, i32
  }
  func.func @transform_1(%arg0: i32, %arg1: i32, %arg2: i32) -> (i32, i32) {
    %c0_i32 = arith.constant 0 : i32
    return %arg2, %arg1 : i32, i32
  }
  func.func @transform_2(%arg0: i32, %arg1: i32, %arg2: i32) -> (i32, i32) {
    %c0_i32 = arith.constant 0 : i32
    return %arg0, %arg1 : i32, i32
  }
}

module attributes {stable_mosaic.version = 11 : i64} {
  func.func @kernel(%arg0: i32, %arg1: i32, %arg2: memref<16x128xbf16, #tpu.memory_space<vmem>>, %arg3: memref<1x128xf32, #tpu.memory_space<vmem>>, %arg4: memref<1x128xf32, #tpu.memory_space<vmem>>, %arg5: memref<128x512xbf16, #tpu.memory_space<vmem>>, %arg6: memref<16x512xbf16, #tpu.memory_space<vmem>>) attributes {dimension_semantics = [#tpu.dimension_semantics<parallel>, #tpu.dimension_semantics<parallel>], iteration_bounds = array<i64: 1, 1>, scalar_prefetch = 0 : i64, scratch_operands = 0 : i64, tpu.core_type = #tpu.core_type<tc>, window_params = [{transform_indices = @transform_0, window_bounds = array<i64: 16, 128>}, {pipeline_mode = #tpu.pipeline_mode<synchronous>, transform_indices = @transform_1, window_bounds = array<i64: 1, 128>}, {pipeline_mode = #tpu.pipeline_mode<synchronous>, transform_indices = @transform_2, window_bounds = array<i64: 1, 128>}, {transform_indices = @transform_3, window_bounds = array<i64: 128, 512>}, {transform_indices = @transform_4, window_bounds = array<i64: 16, 512>}]} {
    %c0 = arith.constant 0 : index
    %c0_0 = arith.constant 0 : index
    %0 = vector.load %arg2[%c0, %c0_0] : memref<16x128xbf16, #tpu.memory_space<vmem>>, vector<16x128xbf16>
    %1 = arith.extf %0 : vector<16x128xbf16> to vector<16x128xf32>
    %cst = arith.constant dense<0.000000e+00> : vector<16xf32>
    %2 = vector.multi_reduction <add>, %1, %cst [1] : vector<16x128xf32> to vector<16xf32>
    %3 = vector.shape_cast %2 : vector<16xf32> to vector<16x1xf32>
    %cst_1 = arith.constant 1.280000e+02 : f32
    %4 = vector.broadcast %cst_1 : f32 to vector<16x1xf32>
    %5 = arith.divf %3, %4 : vector<16x1xf32>
    %6 = vector.broadcast %5 : vector<16x1xf32> to vector<16x128xf32>
    %7 = arith.subf %1, %6 : vector<16x128xf32>
    %8 = arith.mulf %7, %7 : vector<16x128xf32>
    %cst_2 = arith.constant dense<0.000000e+00> : vector<16xf32>
    %9 = vector.multi_reduction <add>, %8, %cst_2 [1] : vector<16x128xf32> to vector<16xf32>
    %10 = vector.shape_cast %9 : vector<16xf32> to vector<16x1xf32>
    %cst_3 = arith.constant 1.280000e+02 : f32
    %11 = vector.broadcast %cst_3 : f32 to vector<16x1xf32>
    %12 = arith.divf %10, %11 : vector<16x1xf32>
    %13 = vector.broadcast %5 : vector<16x1xf32> to vector<16x128xf32>
    %14 = arith.subf %1, %13 : vector<16x128xf32>
    %cst_4 = arith.constant 9.99999974E-6 : f32
    %15 = vector.broadcast %cst_4 : f32 to vector<16x1xf32>
    %16 = arith.addf %12, %15 : vector<16x1xf32>
    %17 = math.rsqrt %16 : vector<16x1xf32>
    %18 = vector.broadcast %17 : vector<16x1xf32> to vector<16x128xf32>
    %19 = arith.mulf %14, %18 : vector<16x128xf32>
    %c0_5 = arith.constant 0 : index
    %c0_6 = arith.constant 0 : index
    %20 = vector.load %arg3[%c0_5, %c0_6] : memref<1x128xf32, #tpu.memory_space<vmem>>, vector<1x128xf32>
    %21 = vector.broadcast %20 : vector<1x128xf32> to vector<16x128xf32>
    %22 = arith.mulf %19, %21 : vector<16x128xf32>
    %c0_7 = arith.constant 0 : index
    %c0_8 = arith.constant 0 : index
    %23 = vector.load %arg4[%c0_7, %c0_8] : memref<1x128xf32, #tpu.memory_space<vmem>>, vector<1x128xf32>
    %24 = vector.broadcast %23 : vector<1x128xf32> to vector<16x128xf32>
    %25 = arith.addf %22, %24 : vector<16x128xf32>
    %26 = arith.truncf %25 : vector<16x128xf32> to vector<16x128xbf16>
    %c0_9 = arith.constant 0 : index
    %c0_10 = arith.constant 0 : index
    %27 = vector.load %arg5[%c0_9, %c0_10] : memref<128x512xbf16, #tpu.memory_space<vmem>>, vector<128x512xbf16>
    %cst_11 = arith.constant dense<0.000000e+00> : vector<16x512xf32>
    %28 = tpu.matmul %26, %27, %cst_11 {dimension_numbers = #tpu.dot_dimension_numbers<[1], [0], [0], [1], [0, 0, 1, 1], [], []>} : vector<16x128xbf16>, vector<128x512xbf16>, vector<16x512xf32> -> vector<16x512xf32>
    %cst_12 = arith.constant 5.000000e-01 : f32
    %29 = vector.broadcast %cst_12 : f32 to vector<16x512xf32>
    %30 = arith.mulf %28, %29 : vector<16x512xf32>
    %cst_13 = arith.constant 1.414210e+00 : f32
    %31 = vector.broadcast %cst_13 : f32 to vector<16x512xf32>
    %32 = arith.divf %28, %31 : vector<16x512xf32>
    %33 = math.erf %32 : vector<16x512xf32>
    %cst_14 = arith.constant 1.000000e+00 : f32
    %34 = vector.broadcast %cst_14 : f32 to vector<16x512xf32>
    %35 = arith.addf %34, %33 : vector<16x512xf32>
    %36 = arith.mulf %30, %35 : vector<16x512xf32>
    %37 = arith.truncf %36 : vector<16x512xf32> to vector<16x512xbf16>
    %c0_15 = arith.constant 0 : index
    %c0_16 = arith.constant 0 : index
    %38 = vector.load %arg6[%c0_15, %c0_16] : memref<16x512xbf16, #tpu.memory_space<vmem>>, vector<16x512xbf16>
    tpu.vector_store %arg6[%c0_15, %c0_16], %37 {strides = array<i32>} : memref<16x512xbf16, #tpu.memory_space<vmem>>, vector<16x512xbf16>,
    return
  }
  func.func @transform_0(%arg0: i32, %arg1: i32) -> (i32, i32) {
    %c0_i32 = arith.constant 0 : i32
    %c0_i32_0 = arith.constant 0 : i32
    return %arg0, %c0_i32 : i32, i32
  }
  func.func @transform_1(%arg0: i32, %arg1: i32) -> (i32, i32) {
    %c0_i32 = arith.constant 0 : i32
    %c0_i32_0 = arith.constant 0 : i32
    %c0_i32_1 = arith.constant 0 : i32
    return %c0_i32, %c0_i32_0 : i32, i32
  }
  func.func @transform_2(%arg0: i32, %arg1: i32) -> (i32, i32) {
    %c0_i32 = arith.constant 0 : i32
    %c0_i32_0 = arith.constant 0 : i32
    %c0_i32_1 = arith.constant 0 : i32
    return %c0_i32, %c0_i32_0 : i32, i32
  }
  func.func @transform_3(%arg0: i32, %arg1: i32) -> (i32, i32) {
    %c0_i32 = arith.constant 0 : i32
    %c0_i32_0 = arith.constant 0 : i32
    return %c0_i32, %arg1 : i32, i32
  }
  func.func @transform_4(%arg0: i32, %arg1: i32) -> (i32, i32) {
    %c0_i32 = arith.constant 0 : i32
    return %arg0, %arg1 : i32, i32
  }
}

module attributes {stable_mosaic.version = 11 : i64} {
  func.func @_add_ln_kernel(%arg0: i32, %arg1: i32, %arg2: memref<1x8x128xbf16, #tpu.memory_space<vmem>>, %arg3: memref<1x8x128xbf16, #tpu.memory_space<vmem>>, %arg4: memref<1x128xf32, #tpu.memory_space<vmem>>, %arg5: memref<1x128xf32, #tpu.memory_space<vmem>>, %arg6: memref<1x8x128xbf16, #tpu.memory_space<vmem>>) attributes {dimension_semantics = [#tpu.dimension_semantics<parallel>, #tpu.dimension_semantics<parallel>], iteration_bounds = array<i64: 2, 1>, scalar_prefetch = 0 : i64, scratch_operands = 0 : i64, tpu.core_type = #tpu.core_type<tc>, window_params = [{transform_indices = @transform_0, window_bounds = array<i64: 1, 8, 128>}, {transform_indices = @transform_1, window_bounds = array<i64: 1, 8, 128>}, {pipeline_mode = #tpu.pipeline_mode<synchronous>, transform_indices = @transform_2, window_bounds = array<i64: 1, 128>}, {pipeline_mode = #tpu.pipeline_mode<synchronous>, transform_indices = @transform_3, window_bounds = array<i64: 1, 128>}, {transform_indices = @transform_4, window_bounds = array<i64: 1, 8, 128>}]} {
    %c0 = arith.constant 0 : index
    %c0_0 = arith.constant 0 : index
    %c0_1 = arith.constant 0 : index
    %0 = vector.load %arg2[%c0, %c0_0, %c0_1] : memref<1x8x128xbf16, #tpu.memory_space<vmem>>, vector<1x8x128xbf16>
    %1 = arith.extf %0 : vector<1x8x128xbf16> to vector<1x8x128xf32>
    %c0_2 = arith.constant 0 : index
    %c0_3 = arith.constant 0 : index
    %c0_4 = arith.constant 0 : index
    %2 = vector.load %arg3[%c0_2, %c0_3, %c0_4] : memref<1x8x128xbf16, #tpu.memory_space<vmem>>, vector<1x8x128xbf16>
    %3 = arith.extf %2 : vector<1x8x128xbf16> to vector<1x8x128xf32>
    %4 = arith.addf %1, %3 : vector<1x8x128xf32>
    %cst = arith.constant dense<0.000000e+00> : vector<1x8xf32>
    %5 = vector.multi_reduction <add>, %4, %cst [2] : vector<1x8x128xf32> to vector<1x8xf32>
    %6 = vector.shape_cast %5 : vector<1x8xf32> to vector<1x8x1xf32>
    %cst_5 = arith.constant 1.280000e+02 : f32
    %7 = vector.broadcast %cst_5 : f32 to vector<1x8x1xf32>
    %8 = arith.divf %6, %7 : vector<1x8x1xf32>
    %9 = vector.broadcast %8 : vector<1x8x1xf32> to vector<1x8x128xf32>
    %10 = arith.subf %4, %9 : vector<1x8x128xf32>
    %11 = arith.mulf %10, %10 : vector<1x8x128xf32>
    %cst_6 = arith.constant dense<0.000000e+00> : vector<1x8xf32>
    %12 = vector.multi_reduction <add>, %11, %cst_6 [2] : vector<1x8x128xf32> to vector<1x8xf32>
    %13 = vector.shape_cast %12 : vector<1x8xf32> to vector<1x8x1xf32>
    %cst_7 = arith.constant 1.280000e+02 : f32
    %14 = vector.broadcast %cst_7 : f32 to vector<1x8x1xf32>
    %15 = arith.divf %13, %14 : vector<1x8x1xf32>
    %16 = vector.broadcast %8 : vector<1x8x1xf32> to vector<1x8x128xf32>
    %17 = arith.subf %4, %16 : vector<1x8x128xf32>
    %cst_8 = arith.constant 9.99999974E-6 : f32
    %18 = vector.broadcast %cst_8 : f32 to vector<1x8x1xf32>
    %19 = arith.addf %15, %18 : vector<1x8x1xf32>
    %20 = math.rsqrt %19 : vector<1x8x1xf32>
    %21 = vector.broadcast %20 : vector<1x8x1xf32> to vector<1x8x128xf32>
    %22 = arith.mulf %17, %21 : vector<1x8x128xf32>
    %c0_9 = arith.constant 0 : index
    %c0_10 = arith.constant 0 : index
    %23 = vector.load %arg4[%c0_9, %c0_10] : memref<1x128xf32, #tpu.memory_space<vmem>>, vector<1x128xf32>
    %24 = vector.shape_cast %23 : vector<1x128xf32> to vector<1x1x128xf32>
    %25 = vector.broadcast %24 : vector<1x1x128xf32> to vector<1x8x128xf32>
    %26 = arith.mulf %22, %25 : vector<1x8x128xf32>
    %c0_11 = arith.constant 0 : index
    %c0_12 = arith.constant 0 : index
    %27 = vector.load %arg5[%c0_11, %c0_12] : memref<1x128xf32, #tpu.memory_space<vmem>>, vector<1x128xf32>
    %28 = vector.shape_cast %27 : vector<1x128xf32> to vector<1x1x128xf32>
    %29 = vector.broadcast %28 : vector<1x1x128xf32> to vector<1x8x128xf32>
    %30 = arith.addf %26, %29 : vector<1x8x128xf32>
    %31 = arith.truncf %30 : vector<1x8x128xf32> to vector<1x8x128xbf16>
    %c0_13 = arith.constant 0 : index
    %c0_14 = arith.constant 0 : index
    %c0_15 = arith.constant 0 : index
    %32 = vector.load %arg6[%c0_13, %c0_14, %c0_15] : memref<1x8x128xbf16, #tpu.memory_space<vmem>>, vector<1x8x128xbf16>
    tpu.vector_store %arg6[%c0_13, %c0_14, %c0_15], %31 {strides = array<i32>} : memref<1x8x128xbf16, #tpu.memory_space<vmem>>, vector<1x8x128xbf16>,
    return
  }
  func.func @transform_0(%arg0: i32, %arg1: i32) -> (i32, i32, i32) {
    %c0_i32 = arith.constant 0 : i32
    %c0_i32_0 = arith.constant 0 : i32
    return %arg0, %arg1, %c0_i32 : i32, i32, i32
  }
  func.func @transform_1(%arg0: i32, %arg1: i32) -> (i32, i32, i32) {
    %c0_i32 = arith.constant 0 : i32
    %c0_i32_0 = arith.constant 0 : i32
    return %arg0, %arg1, %c0_i32 : i32, i32, i32
  }
  func.func @transform_2(%arg0: i32, %arg1: i32) -> (i32, i32) {
    %c0_i32 = arith.constant 0 : i32
    %c0_i32_0 = arith.constant 0 : i32
    %c0_i32_1 = arith.constant 0 : i32
    return %c0_i32, %c0_i32_0 : i32, i32
  }
  func.func @transform_3(%arg0: i32, %arg1: i32) -> (i32, i32) {
    %c0_i32 = arith.constant 0 : i32
    %c0_i32_0 = arith.constant 0 : i32
    %c0_i32_1 = arith.constant 0 : i32
    return %c0_i32, %c0_i32_0 : i32, i32
  }
  func.func @transform_4(%arg0: i32, %arg1: i32) -> (i32, i32, i32) {
    %c0_i32 = arith.constant 0 : i32
    %c0_i32_0 = arith.constant 0 : i32
    return %arg0, %arg1, %c0_i32 : i32, i32, i32
  }
}

module attributes {stable_mosaic.version = 11 : i64} {
  func.func @_add_bcast_kernel(%arg0: i32, %arg1: i32, %arg2: memref<1x8x128xbf16, #tpu.memory_space<vmem>>, %arg3: memref<8x128xbf16, #tpu.memory_space<vmem>>, %arg4: memref<1x8x128xbf16, #tpu.memory_space<vmem>>) attributes {dimension_semantics = [#tpu.dimension_semantics<parallel>, #tpu.dimension_semantics<parallel>], iteration_bounds = array<i64: 2, 1>, scalar_prefetch = 0 : i64, scratch_operands = 0 : i64, tpu.core_type = #tpu.core_type<tc>, window_params = [{transform_indices = @transform_0, window_bounds = array<i64: 1, 8, 128>}, {transform_indices = @transform_1, window_bounds = array<i64: 8, 128>}, {transform_indices = @transform_2, window_bounds = array<i64: 1, 8, 128>}]} {
    %c0 = arith.constant 0 : index
    %c0_0 = arith.constant 0 : index
    %c0_1 = arith.constant 0 : index
    %0 = vector.load %arg2[%c0, %c0_0, %c0_1] : memref<1x8x128xbf16, #tpu.memory_space<vmem>>, vector<1x8x128xbf16>
    %1 = arith.extf %0 : vector<1x8x128xbf16> to vector<1x8x128xf32>
    %c0_2 = arith.constant 0 : index
    %c0_3 = arith.constant 0 : index
    %2 = vector.load %arg3[%c0_2, %c0_3] : memref<8x128xbf16, #tpu.memory_space<vmem>>, vector<8x128xbf16>
    %3 = arith.extf %2 : vector<8x128xbf16> to vector<8x128xf32>
    %4 = vector.shape_cast %3 : vector<8x128xf32> to vector<1x8x128xf32>
    %5 = arith.addf %1, %4 : vector<1x8x128xf32>
    %6 = arith.truncf %5 : vector<1x8x128xf32> to vector<1x8x128xbf16>
    %c0_4 = arith.constant 0 : index
    %c0_5 = arith.constant 0 : index
    %c0_6 = arith.constant 0 : index
    %7 = vector.load %arg4[%c0_4, %c0_5, %c0_6] : memref<1x8x128xbf16, #tpu.memory_space<vmem>>, vector<1x8x128xbf16>
    tpu.vector_store %arg4[%c0_4, %c0_5, %c0_6], %6 {strides = array<i32>} : memref<1x8x128xbf16, #tpu.memory_space<vmem>>, vector<1x8x128xbf16>,
    return
  }
  func.func @transform_0(%arg0: i32, %arg1: i32) -> (i32, i32, i32) {
    %c0_i32 = arith.constant 0 : i32
    %c0_i32_0 = arith.constant 0 : i32
    return %arg0, %arg1, %c0_i32 : i32, i32, i32
  }
  func.func @transform_1(%arg0: i32, %arg1: i32) -> (i32, i32) {
    %c0_i32 = arith.constant 0 : i32
    %c0_i32_0 = arith.constant 0 : i32
    return %arg1, %c0_i32 : i32, i32
  }
  func.func @transform_2(%arg0: i32, %arg1: i32) -> (i32, i32, i32) {
    %c0_i32 = arith.constant 0 : i32
    %c0_i32_0 = arith.constant 0 : i32
    return %arg0, %arg1, %c0_i32 : i32, i32, i32
  }
}

module attributes {stable_mosaic.version = 11 : i64} {
  func.func @kernel(%arg0: i32, %arg1: i32, %arg2: memref<1x8x128xbf16, #tpu.memory_space<vmem>>, %arg3: memref<1x128xf32, #tpu.memory_space<vmem>>, %arg4: memref<1x128xf32, #tpu.memory_space<vmem>>, %arg5: memref<128x384xbf16, #tpu.memory_space<vmem>>, %arg6: memref<8x384xbf16, #tpu.memory_space<vmem>>) attributes {dimension_semantics = [#tpu.dimension_semantics<parallel>, #tpu.dimension_semantics<parallel>], iteration_bounds = array<i64: 1, 1>, scalar_prefetch = 0 : i64, scratch_operands = 0 : i64, tpu.core_type = #tpu.core_type<tc>, window_params = [{transform_indices = @transform_0, window_bounds = array<i64: 1, 8, 128>}, {pipeline_mode = #tpu.pipeline_mode<synchronous>, transform_indices = @transform_1, window_bounds = array<i64: 1, 128>}, {pipeline_mode = #tpu.pipeline_mode<synchronous>, transform_indices = @transform_2, window_bounds = array<i64: 1, 128>}, {transform_indices = @transform_3, window_bounds = array<i64: 128, 384>}, {transform_indices = @transform_4, window_bounds = array<i64: 8, 384>}]} {
    %c0 = arith.constant 0 : index
    %c0_0 = arith.constant 0 : index
    %c0_1 = arith.constant 0 : index
    %0 = vector.load %arg2[%c0, %c0_0, %c0_1] : memref<1x8x128xbf16, #tpu.memory_space<vmem>>, vector<1x8x128xbf16>
    %1 = vector.shape_cast %0 : vector<1x8x128xbf16> to vector<8x128xbf16>
    %2 = arith.extf %1 : vector<8x128xbf16> to vector<8x128xf32>
    %cst = arith.constant dense<0.000000e+00> : vector<8xf32>
    %3 = vector.multi_reduction <add>, %2, %cst [1] : vector<8x128xf32> to vector<8xf32>
    %4 = vector.shape_cast %3 : vector<8xf32> to vector<8x1xf32>
    %cst_2 = arith.constant 1.280000e+02 : f32
    %5 = vector.broadcast %cst_2 : f32 to vector<8x1xf32>
    %6 = arith.divf %4, %5 : vector<8x1xf32>
    %7 = vector.broadcast %6 : vector<8x1xf32> to vector<8x128xf32>
    %8 = arith.subf %2, %7 : vector<8x128xf32>
    %9 = arith.mulf %8, %8 : vector<8x128xf32>
    %cst_3 = arith.constant dense<0.000000e+00> : vector<8xf32>
    %10 = vector.multi_reduction <add>, %9, %cst_3 [1] : vector<8x128xf32> to vector<8xf32>
    %11 = vector.shape_cast %10 : vector<8xf32> to vector<8x1xf32>
    %cst_4 = arith.constant 1.280000e+02 : f32
    %12 = vector.broadcast %cst_4 : f32 to vector<8x1xf32>
    %13 = arith.divf %11, %12 : vector<8x1xf32>
    %14 = vector.broadcast %6 : vector<8x1xf32> to vector<8x128xf32>
    %15 = arith.subf %2, %14 : vector<8x128xf32>
    %cst_5 = arith.constant 9.99999974E-6 : f32
    %16 = vector.broadcast %cst_5 : f32 to vector<8x1xf32>
    %17 = arith.addf %13, %16 : vector<8x1xf32>
    %18 = math.rsqrt %17 : vector<8x1xf32>
    %19 = vector.broadcast %18 : vector<8x1xf32> to vector<8x128xf32>
    %20 = arith.mulf %15, %19 : vector<8x128xf32>
    %c0_6 = arith.constant 0 : index
    %c0_7 = arith.constant 0 : index
    %21 = vector.load %arg3[%c0_6, %c0_7] : memref<1x128xf32, #tpu.memory_space<vmem>>, vector<1x128xf32>
    %22 = vector.broadcast %21 : vector<1x128xf32> to vector<8x128xf32>
    %23 = arith.mulf %20, %22 : vector<8x128xf32>
    %c0_8 = arith.constant 0 : index
    %c0_9 = arith.constant 0 : index
    %24 = vector.load %arg4[%c0_8, %c0_9] : memref<1x128xf32, #tpu.memory_space<vmem>>, vector<1x128xf32>
    %25 = vector.broadcast %24 : vector<1x128xf32> to vector<8x128xf32>
    %26 = arith.addf %23, %25 : vector<8x128xf32>
    %27 = arith.truncf %26 : vector<8x128xf32> to vector<8x128xbf16>
    %c0_10 = arith.constant 0 : index
    %c0_11 = arith.constant 0 : index
    %28 = vector.load %arg5[%c0_10, %c0_11] : memref<128x384xbf16, #tpu.memory_space<vmem>>, vector<128x384xbf16>
    %cst_12 = arith.constant dense<0.000000e+00> : vector<8x384xf32>
    %29 = tpu.matmul %27, %28, %cst_12 {dimension_numbers = #tpu.dot_dimension_numbers<[1], [0], [0], [1], [0, 0, 1, 1], [], []>} : vector<8x128xbf16>, vector<128x384xbf16>, vector<8x384xf32> -> vector<8x384xf32>
    %30 = arith.truncf %29 : vector<8x384xf32> to vector<8x384xbf16>
    %c0_13 = arith.constant 0 : index
    %c0_14 = arith.constant 0 : index
    %31 = vector.load %arg6[%c0_13, %c0_14] : memref<8x384xbf16, #tpu.memory_space<vmem>>, vector<8x384xbf16>
    tpu.vector_store %arg6[%c0_13, %c0_14], %30 {strides = array<i32>} : memref<8x384xbf16, #tpu.memory_space<vmem>>, vector<8x384xbf16>,
    return
  }
  func.func @transform_0(%arg0: i32, %arg1: i32) -> (i32, i32, i32) {
    %c0_i32 = arith.constant 0 : i32
    %c0_i32_0 = arith.constant 0 : i32
    %c0_i32_1 = arith.constant 0 : i32
    return %c0_i32, %arg0, %c0_i32_0 : i32, i32, i32
  }
  func.func @transform_1(%arg0: i32, %arg1: i32) -> (i32, i32) {
    %c0_i32 = arith.constant 0 : i32
    %c0_i32_0 = arith.constant 0 : i32
    %c0_i32_1 = arith.constant 0 : i32
    return %c0_i32, %c0_i32_0 : i32, i32
  }
  func.func @transform_2(%arg0: i32, %arg1: i32) -> (i32, i32) {
    %c0_i32 = arith.constant 0 : i32
    %c0_i32_0 = arith.constant 0 : i32
    %c0_i32_1 = arith.constant 0 : i32
    return %c0_i32, %c0_i32_0 : i32, i32
  }
  func.func @transform_3(%arg0: i32, %arg1: i32) -> (i32, i32) {
    %c0_i32 = arith.constant 0 : i32
    %c0_i32_0 = arith.constant 0 : i32
    return %c0_i32, %arg1 : i32, i32
  }
  func.func @transform_4(%arg0: i32, %arg1: i32) -> (i32, i32) {
    %c0_i32 = arith.constant 0 : i32
    return %arg0, %arg1 : i32, i32
  }
}

module attributes {stable_mosaic.version = 11 : i64} {
  func.func @_linear_ln_relu_kernel(%arg0: i32, %arg1: i32, %arg2: memref<16x128xbf16, #tpu.memory_space<vmem>>, %arg3: memref<128x512xbf16, #tpu.memory_space<vmem>>, %arg4: memref<1x512xf32, #tpu.memory_space<vmem>>, %arg5: memref<1x512xf32, #tpu.memory_space<vmem>>, %arg6: memref<16x512xbf16, #tpu.memory_space<vmem>>, %arg7: memref<16x512xf32, #tpu.memory_space<vmem>>) attributes {dimension_semantics = [#tpu.dimension_semantics<parallel>, #tpu.dimension_semantics<arbitrary>], iteration_bounds = array<i64: 1, 1>, scalar_prefetch = 0 : i64, scratch_operands = 1 : i64, tpu.core_type = #tpu.core_type<tc>, window_params = [{transform_indices = @transform_0, window_bounds = array<i64: 16, 128>}, {transform_indices = @transform_1, window_bounds = array<i64: 128, 512>}, {pipeline_mode = #tpu.pipeline_mode<synchronous>, transform_indices = @transform_2, window_bounds = array<i64: 1, 512>}, {pipeline_mode = #tpu.pipeline_mode<synchronous>, transform_indices = @transform_3, window_bounds = array<i64: 1, 512>}, {transform_indices = @transform_4, window_bounds = array<i64: 16, 512>}]} {
    %c0_i32 = arith.constant 0 : i32
    %0 = arith.cmpi eq, %arg1, %c0_i32 : i32
    %1 = arith.extui %0 : i1 to i32
    %c0_i32_0 = arith.constant 0 : i32
    %2 = arith.cmpi ne, %1, %c0_i32_0 : i32
    scf.if %2 {
      %cst_10 = arith.constant 0.000000e+00 : f32
      %12 = vector.broadcast %cst_10 : f32 to vector<16x512xf32>
      %c0_11 = arith.constant 0 : index
      %c0_12 = arith.constant 0 : index
      %13 = vector.load %arg7[%c0_11, %c0_12] : memref<16x512xf32, #tpu.memory_space<vmem>>, vector<16x512xf32>
      tpu.vector_store %arg7[%c0_11, %c0_12], %12 {strides = array<i32>} : memref<16x512xf32, #tpu.memory_space<vmem>>, vector<16x512xf32>,
    } else {
    }
    %c0 = arith.constant 0 : index
    %c0_1 = arith.constant 0 : index
    %3 = vector.load %arg7[%c0, %c0_1] : memref<16x512xf32, #tpu.memory_space<vmem>>, vector<16x512xf32>
    %c0_2 = arith.constant 0 : index
    %c0_3 = arith.constant 0 : index
    %4 = vector.load %arg2[%c0_2, %c0_3] : memref<16x128xbf16, #tpu.memory_space<vmem>>, vector<16x128xbf16>
    %c0_4 = arith.constant 0 : index
    %c0_5 = arith.constant 0 : index
    %5 = vector.load %arg3[%c0_4, %c0_5] : memref<128x512xbf16, #tpu.memory_space<vmem>>, vector<128x512xbf16>
    %cst = arith.constant dense<0.000000e+00> : vector<16x512xf32>
    %6 = tpu.matmul %4, %5, %cst {dimension_numbers = #tpu.dot_dimension_numbers<[1], [0], [0], [1], [0, 0, 1, 1], [], []>} : vector<16x128xbf16>, vector<128x512xbf16>, vector<16x512xf32> -> vector<16x512xf32>
    %7 = arith.addf %3, %6 : vector<16x512xf32>
    %c0_6 = arith.constant 0 : index
    %c0_7 = arith.constant 0 : index
    %8 = vector.load %arg7[%c0_6, %c0_7] : memref<16x512xf32, #tpu.memory_space<vmem>>, vector<16x512xf32>
    tpu.vector_store %arg7[%c0_6, %c0_7], %7 {strides = array<i32>} : memref<16x512xf32, #tpu.memory_space<vmem>>, vector<16x512xf32>,
    %c0_i32_8 = arith.constant 0 : i32
    %9 = arith.cmpi eq, %arg1, %c0_i32_8 : i32
    %10 = arith.extui %9 : i1 to i32
    %c0_i32_9 = arith.constant 0 : i32
    %11 = arith.cmpi ne, %10, %c0_i32_9 : i32
    scf.if %11 {
      %c0_10 = arith.constant 0 : index
      %c0_11 = arith.constant 0 : index
      %12 = vector.load %arg7[%c0_10, %c0_11] : memref<16x512xf32, #tpu.memory_space<vmem>>, vector<16x512xf32>
      %cst_12 = arith.constant dense<0.000000e+00> : vector<16xf32>
      %13 = vector.multi_reduction <add>, %12, %cst_12 [1] : vector<16x512xf32> to vector<16xf32>
      %14 = vector.shape_cast %13 : vector<16xf32> to vector<16x1xf32>
      %cst_13 = arith.constant 5.120000e+02 : f32
      %15 = vector.broadcast %cst_13 : f32 to vector<16x1xf32>
      %16 = arith.divf %14, %15 : vector<16x1xf32>
      %17 = vector.broadcast %16 : vector<16x1xf32> to vector<16x512xf32>
      %18 = arith.subf %12, %17 : vector<16x512xf32>
      %19 = arith.mulf %18, %18 : vector<16x512xf32>
      %cst_14 = arith.constant dense<0.000000e+00> : vector<16xf32>
      %20 = vector.multi_reduction <add>, %19, %cst_14 [1] : vector<16x512xf32> to vector<16xf32>
      %21 = vector.shape_cast %20 : vector<16xf32> to vector<16x1xf32>
      %cst_15 = arith.constant 5.120000e+02 : f32
      %22 = vector.broadcast %cst_15 : f32 to vector<16x1xf32>
      %23 = arith.divf %21, %22 : vector<16x1xf32>
      %24 = vector.broadcast %16 : vector<16x1xf32> to vector<16x512xf32>
      %25 = arith.subf %12, %24 : vector<16x512xf32>
      %cst_16 = arith.constant 9.99999974E-6 : f32
      %26 = vector.broadcast %cst_16 : f32 to vector<16x1xf32>
      %27 = arith.addf %23, %26 : vector<16x1xf32>
      %28 = math.rsqrt %27 : vector<16x1xf32>
      %29 = vector.broadcast %28 : vector<16x1xf32> to vector<16x512xf32>
      %30 = arith.mulf %25, %29 : vector<16x512xf32>
      %c0_17 = arith.constant 0 : index
      %c0_18 = arith.constant 0 : index
      %31 = vector.load %arg4[%c0_17, %c0_18] : memref<1x512xf32, #tpu.memory_space<vmem>>, vector<1x512xf32>
      %32 = vector.broadcast %31 : vector<1x512xf32> to vector<16x512xf32>
      %33 = arith.mulf %30, %32 : vector<16x512xf32>
      %c0_19 = arith.constant 0 : index
      %c0_20 = arith.constant 0 : index
      %34 = vector.load %arg5[%c0_19, %c0_20] : memref<1x512xf32, #tpu.memory_space<vmem>>, vector<1x512xf32>
      %35 = vector.broadcast %34 : vector<1x512xf32> to vector<16x512xf32>
      %36 = arith.addf %33, %35 : vector<16x512xf32>
      %cst_21 = arith.constant 0.000000e+00 : f32
      %37 = vector.broadcast %cst_21 : f32 to vector<16x512xf32>
      %38 = arith.maximumf %36, %37 : vector<16x512xf32>
      %39 = arith.truncf %38 : vector<16x512xf32> to vector<16x512xbf16>
      %c0_22 = arith.constant 0 : index
      %c0_23 = arith.constant 0 : index
      %40 = vector.load %arg6[%c0_22, %c0_23] : memref<16x512xbf16, #tpu.memory_space<vmem>>, vector<16x512xbf16>
      tpu.vector_store %arg6[%c0_22, %c0_23], %39 {strides = array<i32>} : memref<16x512xbf16, #tpu.memory_space<vmem>>, vector<16x512xbf16>,
    } else {
    }
    return
  }
  func.func @transform_0(%arg0: i32, %arg1: i32) -> (i32, i32) {
    %c0_i32 = arith.constant 0 : i32
    return %arg0, %arg1 : i32, i32
  }
  func.func @transform_1(%arg0: i32, %arg1: i32) -> (i32, i32) {
    %c0_i32 = arith.constant 0 : i32
    %c0_i32_0 = arith.constant 0 : i32
    return %arg1, %c0_i32 : i32, i32
  }
  func.func @transform_2(%arg0: i32, %arg1: i32) -> (i32, i32) {
    %c0_i32 = arith.constant 0 : i32
    %c0_i32_0 = arith.constant 0 : i32
    %c0_i32_1 = arith.constant 0 : i32
    return %c0_i32, %c0_i32_0 : i32, i32
  }
  func.func @transform_3(%arg0: i32, %arg1: i32) -> (i32, i32) {
    %c0_i32 = arith.constant 0 : i32
    %c0_i32_0 = arith.constant 0 : i32
    %c0_i32_1 = arith.constant 0 : i32
    return %c0_i32, %c0_i32_0 : i32, i32
  }
  func.func @transform_4(%arg0: i32, %arg1: i32) -> (i32, i32) {
    %c0_i32 = arith.constant 0 : i32
    %c0_i32_0 = arith.constant 0 : i32
    return %arg0, %c0_i32 : i32, i32
  }
}

module attributes {stable_mosaic.version = 11 : i64} {
  func.func @kernel(%arg0: i32, %arg1: i32, %arg2: i32, %arg3: memref<16x512xbf16, #tpu.memory_space<vmem>>, %arg4: memref<512x32xbf16, #tpu.memory_space<vmem>>, %arg5: memref<16x32xf32, #tpu.memory_space<vmem>>, %arg6: memref<16x32xf32, #tpu.memory_space<vmem>>) attributes {dimension_semantics = [#tpu.dimension_semantics<parallel>, #tpu.dimension_semantics<parallel>, #tpu.dimension_semantics<arbitrary>], iteration_bounds = array<i64: 1, 1, 1>, scalar_prefetch = 0 : i64, scratch_operands = 1 : i64, tpu.core_type = #tpu.core_type<tc>, window_params = [{transform_indices = @transform_0, window_bounds = array<i64: 16, 512>}, {transform_indices = @transform_1, window_bounds = array<i64: 512, 32>}, {transform_indices = @transform_2, window_bounds = array<i64: 16, 32>}]} {
    %c0_i32 = arith.constant 0 : i32
    %0 = arith.cmpi eq, %arg2, %c0_i32 : i32
    %1 = arith.extui %0 : i1 to i32
    %c0_i32_0 = arith.constant 0 : i32
    %2 = arith.cmpi ne, %1, %c0_i32_0 : i32
    scf.if %2 {
      %cst_10 = arith.constant 0.000000e+00 : f32
      %12 = vector.broadcast %cst_10 : f32 to vector<16x32xf32>
      %c0_11 = arith.constant 0 : index
      %c0_12 = arith.constant 0 : index
      %13 = vector.load %arg6[%c0_11, %c0_12] : memref<16x32xf32, #tpu.memory_space<vmem>>, vector<16x32xf32>
      tpu.vector_store %arg6[%c0_11, %c0_12], %12 {strides = array<i32>} : memref<16x32xf32, #tpu.memory_space<vmem>>, vector<16x32xf32>,
    } else {
    }
    %c0 = arith.constant 0 : index
    %c0_1 = arith.constant 0 : index
    %3 = vector.load %arg6[%c0, %c0_1] : memref<16x32xf32, #tpu.memory_space<vmem>>, vector<16x32xf32>
    %c0_2 = arith.constant 0 : index
    %c0_3 = arith.constant 0 : index
    %4 = vector.load %arg3[%c0_2, %c0_3] : memref<16x512xbf16, #tpu.memory_space<vmem>>, vector<16x512xbf16>
    %c0_4 = arith.constant 0 : index
    %c0_5 = arith.constant 0 : index
    %5 = vector.load %arg4[%c0_4, %c0_5] : memref<512x32xbf16, #tpu.memory_space<vmem>>, vector<512x32xbf16>
    %cst = arith.constant dense<0.000000e+00> : vector<16x32xf32>
    %6 = tpu.matmul %4, %5, %cst {dimension_numbers = #tpu.dot_dimension_numbers<[1], [0], [0], [1], [0, 0, 1, 1], [], []>} : vector<16x512xbf16>, vector<512x32xbf16>, vector<16x32xf32> -> vector<16x32xf32>
    %7 = arith.addf %3, %6 : vector<16x32xf32>
    %c0_6 = arith.constant 0 : index
    %c0_7 = arith.constant 0 : index
    %8 = vector.load %arg6[%c0_6, %c0_7] : memref<16x32xf32, #tpu.memory_space<vmem>>, vector<16x32xf32>
    tpu.vector_store %arg6[%c0_6, %c0_7], %7 {strides = array<i32>} : memref<16x32xf32, #tpu.memory_space<vmem>>, vector<16x32xf32>,
    %c0_i32_8 = arith.constant 0 : i32
    %9 = arith.cmpi eq, %arg2, %c0_i32_8 : i32
    %10 = arith.extui %9 : i1 to i32
    %c0_i32_9 = arith.constant 0 : i32
    %11 = arith.cmpi ne, %10, %c0_i32_9 : i32
    scf.if %11 {
      %c0_10 = arith.constant 0 : index
      %c0_11 = arith.constant 0 : index
      %12 = vector.load %arg6[%c0_10, %c0_11] : memref<16x32xf32, #tpu.memory_space<vmem>>, vector<16x32xf32>
      %c0_12 = arith.constant 0 : index
      %c0_13 = arith.constant 0 : index
      %13 = vector.load %arg5[%c0_12, %c0_13] : memref<16x32xf32, #tpu.memory_space<vmem>>, vector<16x32xf32>
      tpu.vector_store %arg5[%c0_12, %c0_13], %12 {strides = array<i32>} : memref<16x32xf32, #tpu.memory_space<vmem>>, vector<16x32xf32>,
    } else {
    }
    return
  }
  func.func @transform_0(%arg0: i32, %arg1: i32, %arg2: i32) -> (i32, i32) {
    %c0_i32 = arith.constant 0 : i32
    return %arg0, %arg2 : i32, i32
  }
  func.func @transform_1(%arg0: i32, %arg1: i32, %arg2: i32) -> (i32, i32) {
    %c0_i32 = arith.constant 0 : i32
    return %arg2, %arg1 : i32, i32
  }
  func.func @transform_2(%arg0: i32, %arg1: i32, %arg2: i32) -> (i32, i32) {
    %c0_i32 = arith.constant 0 : i32
    return %arg0, %arg1 : i32, i32
  }
}

</mosaic_0001>

<bundles_post_ra>
// kernel: cramming_transformer.17
= control target key start
LH: loop header
LB: loop body
LE: loop exit
PB: predicated region body
PF: predicated region fallthrough
CT: control target
= control target key end

     0   :  { %s464_s15 = smov 0   ;;  %s466_s16 = smov 0   ;;  %s510_s0 = inlined_call_operand.vmem [shape: f32[2,8,128], index: 0, kind: input, shape index: {}]   ;;  %s511_s1 = inlined_call_operand.vmem [shape: f32[1,8,128], index: 1, kind: input, shape index: {}]   ;;  %s512_s2 = inlined_call_operand.vmem [shape: f32[1,128], index: 2, kind: input, shape index: {}]   ;;  %s513_s3 = inlined_call_operand.vmem [shape: f32[1,128], index: 3, kind: input, shape index: {}]   ;;  %s514_s4 = inlined_call_operand.vmem [shape: bf16[2,8,128], index: 4, kind: output, shape index: {}]  }
   0x1   :  { %s468_s17 = smov 0  }
   0x2 LB: > { %s26_s18 = sadd.s32 1, %s432_s16  ;;  %p378_p0 = scmp.ge.s32.totalorder %s436_s17, 1  ;;  %s436_s17 = sphi %s468_s17, %s14_s17   ;;  %s432_s16 = sphi %s466_s16, %s516_s16   ;;  %s428_s15 = sphi %s464_s15, %s515_s15  }
   0x3   : > { %p28_p1 = scmp.ge.s32.totalorder %s26_s18, 2  ;;  %p189_p2 = scmp.lt.s32.totalorder %s436_s17, 3 }
   0x5   : > { %s518_s18 = smov (%p28_p1, %s26_s18), 0  ;;  %p190_p3 = pnand %p378_p0, %p189_p2 }
   0x6   : > { %p223_p4 = scmp.lt.s32.totalorder (!%p190_p3), %s428_s15, 1 }
   0x7   : > { %193 = sbr.rel (%p190_p3) target bundleno = 287 (0x11f), region = 36 }
   0xc   : > { %s520_s15 = smov (!%p223_p4, %s428_s15), 1  ;;  %v242_v0 = vld [vmem:[%s511_s1] sm:$0xff]  ;;  %v438_v3 = vmov 128.0  }
   0xd   : > { %s379_s19 = sshll.u32 %s520_s15, 3  ;;  %410 = vrcp.f32 %v438_v3  ;;  %v408_v23 = vld [vmem:[%s512_s2] ss:$0 sm:$0xff]  ;;  %s380_s29 = sshll.u32 %s520_s15, 2 }
   0xe   : > { %s229_s24 = scalar_lea.vmem %s510_s0, %s379_s19  ;;  %v409_v25 = vld [vmem:[%s513_s3] ss:$0 sm:$0xff]  ;;  %s240_s6 = scalar_lea.vmem %s514_s4, %s380_s29 }
   0xf   : > { %v241_v1 = vld [vmem:[%s229_s24] sm:$0xff] }
  0x10   : > { %v243_v2 = vadd.f32 %v242_v0, %v241_v1 }
  0x12   : > { %244 = vadd.xlane.f32.xlu0 %v243_v2 }
  0x13   : > { %v411_v4 = vpop.eup %410 }
  0x14   : > { %v247_v5 = vmul.f32 128.0, %v411_v4  ;;  %vm251_vm0 = vweird.f32 %v411_v4 }
  0x16   : > { %v248_v6 = vsub.f32 1.0, %v247_v5 }
  0x18   : > { %v249_v7 = vmul.f32 %v411_v4, %v248_v6 }
  0x1a   : > { %v250_v8 = vadd.f32 %v411_v4, %v249_v7 }
  0x1c   : > { %v252_v9 = vsel %vm251_vm0, %v411_v4, %v250_v8 }
  0x85   : > { %v245_v10 = vpop.xlane.xlu0 %244 }
  0x86   : > { %v253_v11 = vmul.f32 %v252_v9, %v245_v10 }
  0x88   : > { %v254_v12 = vsub.f32 %v243_v2, %v253_v11 }
  0x8a   : > { %v255_v13 = vmul.f32 %v254_v12, %v254_v12 }
  0x8c   : > { %256 = vadd.xlane.f32.xlu0 %v255_v13 }
  0xff   : > { %v257_v14 = vpop.xlane.xlu0 %256 }
 0x100   : > { %v258_v15 = vmul.f32 %v257_v14, %v252_v9 }
 0x102   : > { %v259_v16 = vadd.f32 1e-05, %v258_v15 }
 0x104   : > { %412 = vrsqrt.f32 %v259_v16  ;;  %vm266_vm2 = vweird.f32 %v259_v16 }
 0x10a   : > { %v413_v17 = vpop.eup %412 }
 0x10b   : > { %v261_v18 = vmul.f32 %v413_v17, %v259_v16  ;;  %vm267_vm1 = vweird.f32 %v413_v17 }
 0x10c   : > { %vm268_vm3 = vmor %vm266_vm2, %vm267_vm1 }
 0x10d   : > { %v262_v19 = vmul.f32 %v413_v17, %v261_v18 }
 0x10f   : > { %v263_v20 = vmul.f32 0.5, %v262_v19 }
 0x111   : > { %v264_v21 = vsub.f32 1.5, %v263_v20 }
 0x113   : > { %v265_v22 = vmul.f32 %v413_v17, %v264_v21 }
 0x115   : > { %v269_v24 = vsel %vm268_vm3, %v413_v17, %v265_v22 }
 0x116   : > { %v270_v26 = vmul.f32 %v269_v24, %v254_v12 }
 0x118   : > { %v275_v27 = vmul.f32 %v408_v23, %v270_v26 }
 0x11a   : > { %v280_v28 = vadd.f32 %v409_v25, %v275_v27 }
 0x11c   : > { %v281_v29 = vpack.c.bf16 %v280_v28, %v280_v28 }
 0x11e   : > { %282 = vst [vmem:[%s240_s6] sm:$0xf] %v281_v29 }
 0x11f PF: > { %s14_s17 = sadd.s32 1, %s436_s17   ;;  %s515_s15 = smov %s432_s16 }
 0x120   : > { %p11_p5 = scmp.ge.s32.totalorder %s14_s17, 4   ;;  %s516_s16 = smov %s518_s18 }
 0x122   :  { %13 = sbr.rel (!%p11_p5) target bundleno = 2 (0x2), region = 69 }

// kernel: cramming_transformer.20
= control target key start
LH: loop header
LB: loop body
LE: loop exit
PB: predicated region body
PF: predicated region fallthrough
CT: control target
= control target key end

     0   :  { %s192_s1 = inlined_call_operand.vmem [shape: bf16[128,128], index: 1, kind: input, shape index: {}]   ;;  %s193_s0 = inlined_call_operand.vmem [shape: bf16[8,128], index: 0, kind: input, shape index: {}]   ;;  %s194_s2 = inlined_call_operand.vmem [shape: bf16[8,128], index: 2, kind: output, shape index: {}]  }
   0x1   :  { %v146_v0 = vld [vmem:[%s192_s1 + $0x38] sm:$0xff]  ;;  %v145_v1 = vld [vmem:[%s192_s1 + $0x30] sm:$0xff]  ;;  %v144_v2 = vld [vmem:[%s192_s1 + $0x28] sm:$0xff] }
   0x2   :  { %82 = vmatpush.bf16.msra.mxu0 %v146_v0  ;;  %v143_v3 = vld [vmem:[%s192_s1 + $0x20] sm:$0xff]  ;;  %v142_v4 = vld [vmem:[%s192_s1 + $0x18] sm:$0xff]  ;;  %v141_v5 = vld [vmem:[%s192_s1 + $0x10] sm:$0xff] }
   0x3   :  { %v140_v6 = vld [vmem:[%s192_s1 + $0x8] sm:$0xff]  ;;  %v139_v7 = vld [vmem:[%s192_s1] sm:$0xff] }
   0x4   :  { %v17_v8 = vld [vmem:[%s193_s0] sm:$0xf] }
   0x6   :  { %83 = vmatpush.bf16.msra.mxu0 %v145_v1 }
   0xa   :  { %84 = vmatpush.bf16.msra.mxu0 %v144_v2 }
   0xe   :  { %85 = vmatpush.bf16.msra.mxu0 %v143_v3 }
  0x12   :  { %86 = vmatpush.bf16.msra.mxu0 %v142_v4 }
  0x16   :  { %87 = vmatpush.bf16.msra.mxu0 %v141_v5 }
  0x1a   :  { %88 = vmatpush.bf16.msra.mxu0 %v140_v6 }
  0x1e   :  { %89 = vmatpush.bf16.msra.mxu0 %v139_v7 }
  0x21   :  { %90 = vmatmul.bf16.vlgmr.msra.gmra.mxu0 %v17_v8 }
  0x9e   :  { %v91_v9 = vpop.f32.mrf.mxu0 }
  0x9f   :  { %v101_v10 = vpack.c.bf16 %v91_v9, %v91_v9 }
  0xa1   :  { %102 = vst [vmem:[%s194_s2] sm:$0xf] %v101_v10 }
  0xa6   :  { %v93_v11 = vpop.f32.mrf.mxu0 }

// kernel: cramming_transformer.19
= control target key start
LH: loop header
LB: loop body
LE: loop exit
PB: predicated region body
PF: predicated region fallthrough
CT: control target
= control target key end

     0   :  { %vm24_vm0 = vcmask 261120   ;;  %s400_s20 = smov 96   ;;  %s401_s23 = smov 32   ;;  %vm45_vm1 = vcmask 64512   ;;  %vm59_vm2 = vcmask 1043456   ;;  %vm92_vm7 = vcmask 257024   ;;  %s510_s1 = inlined_call_operand.vmem [shape: bf16[8,384], index: 1, kind: input, shape index: {}, may-alias: {0,1,2}]   ;;  %s511_s0 = inlined_call_operand.vmem [shape: bf16[8,384], index: 0, kind: input, shape index: {}, may-alias: {0,1,2}]   ;;  %s512_s2 = inlined_call_operand.vmem [shape: bf16[8,384], index: 2, kind: input, shape index: {}, may-alias: {0,1,2}]   ;;  %s513_s3 = inlined_call_operand.vmem [shape: bf16[8,128], index: 3, kind: output, shape index: {}]  }
   0x1   :  { %v365_v0 = vld [vmem:[%s510_s1 + $0x4] sm:$0xf]  ;;  %v94_v1 = vld [vmem:[%s511_s0] sm:$0xf]  ;;  %s402_s26 = smov 64  }
   0x2   :  { %v29_v2 = vsel %vm24_vm0, %v365_v0, 0  ;;  %v98_v3 = vunpack.c.l.b16 %v94_v1  ;;  %v373_v4 = vld [vmem:[%s510_s1 + $0x4] sm:$0xf]  ;;  %v21_v10 = vld [vmem:[%s511_s0] sm:$0xf] }
   0x3   :  { %38 = vmatpush.bf16.xpose.msra.mxu0 %v29_v2  ;;  %v377_v5 = vld [vmem:[%s510_s1 + $0x4] sm:$0xf]  ;;  %v192_v8 = vunpack.c.l.b16 %v373_v4  ;;  %v272_v12 = vld [vmem:[%s511_s0] sm:$0xf]  ;;  %v366_v30 = vld [vmem:[%s512_s2 + $0x8] sm:$0xf] }
   0x4   :  { %v99_v6 = vpack.c.b16 %v98_v3, %v98_v3  ;;  %v281_v7 = vunpack.c.l.b16 %v377_v5  ;;  %v276_v13 = vunpack.c.l.b16 %v272_v12  ;;  %v183_v15 = vld [vmem:[%s511_s0] sm:$0xf]  ;;  %v369_v27 = vld [vmem:[%s510_s1 + $0x4] sm:$0xf]  ;;  %v61_v31 = vsel %vm59_vm2, %v366_v30, 0 }
   0x5   :  { %v193_v11 = vpack.c.b16 %v192_v8, %v192_v8  ;;  %v187_v18 = vunpack.c.l.b16 %v183_v15  ;;  %v103_v28 = vunpack.c.l.b16 %v369_v27  ;;  %70 = vmatpush.bf16.msra.mxu1 %v61_v31  ;;  %v370_v33 = vld [vmem:[%s512_s2 + $0x8] sm:$0xf] }
   0x6   :  { %100 = vrot.lane.b32.xlu1 %v99_v6, %s400_s20  ;;  %v282_v9 = vpack.c.b16 %v281_v7, %v281_v7  ;;  %v277_v14 = vpack.c.b16 %v276_v13, %v276_v13  ;;  %v138_v34 = vunpack.c.l.b16 %v370_v33  ;;  %v378_v58 = vld [vmem:[%s512_s2 + $0x8] sm:$0xf] }
   0x7   :  { %v188_v20 = vpack.c.b16 %v187_v18, %v187_v18  ;;  %v104_v29 = vpack.c.b16 %v103_v28, %v103_v28  ;;  %v316_v59 = vunpack.c.l.b16 %v378_v58  ;;  %v374_v61 = vld [vmem:[%s512_s2 + $0x8] sm:$0xf] }
   0x8   :  { %283 = vrot.lane.b32.xlu2 %v282_v9, %s401_s23  ;;  %v139_v37 = vpack.c.b16 %v138_v34, %v138_v34  ;;  %v227_v62 = vunpack.c.l.b16 %v374_v61 }
   0x9   :  { %v317_v60 = vpack.c.b16 %v316_v59, %v316_v59 }
   0xa   :  { %367 = vmatmul.msk.bf16.vlgmr.msra.gmra.mxu0 %vm24_vm0, %v21_v10  ;;  %v228_v63 = vpack.c.b16 %v227_v62, %v227_v62 }
   0xe   :  { %194 = vrot.lane.b32.xlu1 %v193_v11, %s402_s26 }
  0x10   :  { %189 = vrot.lane.b32.xlu2 %v188_v20, %s402_s26 }
  0x16   :  { %278 = vrot.lane.b32.xlu1 %v277_v14, %s401_s23 }
  0x1e   :  { %140 = vrot.lane.b32.xlu1 %v139_v37, %s400_s20 }
  0x62   :  { %v284_v17 = vpop.permute.xlu2 %283 }
  0x63   :  { %v289_v19 = vsel %vm24_vm0, %v284_v17, 0 }
  0x64   :  { %298 = vmatpush.bf16.xpose.msrb.mxu0 %v289_v19 }
  0x6a   :  { %v190_v45 = vpop.permute.xlu2 %189 }
  0x78   :  { %v101_v16 = vpop.permute.xlu1 %100 }
  0x80   :  { %v195_v22 = vpop.permute.xlu1 %194 }
  0x81   :  { %v200_v32 = vsel %vm24_vm0, %v195_v22, 0 }
  0x82   :  { %209 = vmatpush.bf16.xpose.msrb.mxu1 %v200_v32 }
  0x87   :  { %v40_v21 = vpop.f32.mrf.mxu0 }
  0x88   :  { %v44_v23 = vmul.f32 0.17677669, %v40_v21  ;;  %v279_v26 = vpop.permute.xlu1 %278 }
  0x89   :  { %379 = vmatmul.msk.bf16.vlgmr.msrb.gmra.mxu0 %vm24_vm0, %v279_v26 }
  0x8a   :  { %v46_v24 = vsel %vm45_vm1, %v44_v23, -inf }
  0x8b   :  { %47 = vmax.xlane.f32.xlu0 %v46_v24 }
  0x8f   :  { %v42_v25 = vpop.f32.mrf.mxu0 }
  0x90   :  { %v141_v1 = vpop.permute.xlu1 %140 }
  0x91   :  { %v146_v2 = vsel %vm59_vm2, %v141_v1, 0 }
  0x92   :  { %155 = vmatpush.bf16.msra.mxu3 %v146_v2 }
  0x9f   :  { %105 = vrot.lane.b32.xlu0 %v104_v29, %s400_s20 }
  0xfe   :  { %v48_v35 = vpop.xlane.xlu0 %47 }
  0xff   :  { %v49_v36 = vsub.f32 %v44_v23, %v48_v35 }
 0x101   :  { %v50_v38 = vmul.f32 1.442695, %v49_v36 }
 0x103   :  { %384 = vpow2.f32 %v50_v38 }
 0x106   :  { %v300_v41 = vpop.f32.mrf.mxu0 }
 0x107   :  { %v304_v46 = vmul.f32 0.17677669, %v300_v41 }
 0x109   :  { %v385_v39 = vpop.eup %384  ;;  %v305_v47 = vsel %vm45_vm1, %v304_v46, -inf }
 0x10a   :  { %v55_v40 = vpack.c.bf16 %v385_v39, %v385_v39  ;;  %306 = vmax.xlane.f32.xlu1 %v305_v47  ;;  %v52_v0 = vsel %vm45_vm1, %v385_v39, 0.0 }
 0x10c   :  { %368 = vmatmul.msk.bf16.vlgmr.msra.gmra.mxu1 %vm45_vm1, %v55_v40 }
 0x10e   :  { %v302_v44 = vpop.f32.mrf.mxu0 }
 0x111   :  { %v106_v42 = vpop.permute.xlu0 %105 }
 0x112   :  { %v111_v43 = vsel %vm24_vm0, %v106_v42, 0 }
 0x113   :  { %120 = vmatpush.bf16.xpose.msra.mxu2 %v111_v43 }
 0x11a   :  { %371 = vmatmul.msk.bf16.vlgmr.msra.gmra.mxu2 %vm24_vm0, %v101_v16 }
 0x11c   :  { %375 = vmatmul.msk.bf16.vlgmr.msrb.gmra.mxu1 %vm24_vm0, %v190_v45 }
 0x17d   :  { %v307_v5 = vpop.xlane.xlu1 %306 }
 0x17e   :  { %v308_v8 = vsub.f32 %v304_v46, %v307_v5 }
 0x180   :  { %v309_v11 = vmul.f32 1.442695, %v308_v8 }
 0x189   :  { %v472_v48 = vpop.f32.mrf.mxu1 }
 0x191   :  { %v74_v49 = vpop.f32.mrf.mxu1 }
 0x199   :  { %v211_v50 = vpop.f32.mrf.mxu1 }
 0x19a   :  { %v215_v51 = vmul.f32 0.17677669, %v211_v50 }
 0x19c   :  { %v216_v52 = vsel %vm45_vm1, %v215_v51, -inf }
 0x19d   :  { %217 = vmax.xlane.f32.xlu0 %v216_v52  ;;  %v122_v53 = vpop.f32.mrf.mxu2 }
 0x19e   :  { %v126_v54 = vmul.f32 0.17677669, %v122_v53 }
 0x1a0   :  { %v127_v55 = vsel %vm45_vm1, %v126_v54, -inf }
 0x1a1   :  { %128 = vmax.xlane.f32.xlu2 %v127_v55  ;;  %v213_v56 = vpop.f32.mrf.mxu1 }
 0x1a5   :  { %v124_v57 = vpop.f32.mrf.mxu2 }
 0x1b1   :  { %318 = vrot.lane.b32.xlu0 %v317_v60, %s401_s23 }
 0x1b9   :  { %229 = vrot.lane.b32.xlu2 %v228_v63, %s402_s26 }
 0x1db   :  { %53 = vadd.xlane.f32.xlu0 %v52_v0 }
 0x210   :  { %v218_v3 = vpop.xlane.xlu0 %217 }
 0x211   :  { %v219_v4 = vsub.f32 %v215_v51, %v218_v3 }
 0x213   :  { %v220_v6 = vmul.f32 1.442695, %v219_v4 }
 0x214   :  { %v129_v7 = vpop.xlane.xlu2 %128 }
 0x215   :  { %386 = vpow2.f32 %v220_v6  ;;  %v130_v9 = vsub.f32 %v126_v54, %v129_v7 }
 0x217   :  { %v131_v10 = vmul.f32 1.442695, %v130_v9 }
 0x219   :  { %388 = vpow2.f32 %v131_v10 }
 0x21a   :  { %390 = vpow2.f32 %v309_v11 }
 0x21b   :  { %v387_v12 = vpop.eup %386 }
 0x21c   :  { %v222_v13 = vsel %vm45_vm1, %v387_v12, 0.0  ;;  %v230_v14 = vpop.permute.xlu2 %229  ;;  %v225_v24 = vpack.c.bf16 %v387_v12, %v387_v12 }
 0x21d   :  { %223 = vadd.xlane.f32.xlu2 %v222_v13  ;;  %v235_v15 = vsel %vm59_vm2, %v230_v14, 0 }
 0x21e   :  { %244 = vmatpush.bf16.msrb.mxu3 %v235_v15 }
 0x21f   :  { %v389_v16 = vpop.eup %388 }
 0x220   :  { %v133_v17 = vsel %vm45_vm1, %v389_v16, 0.0  ;;  %v136_v18 = vpack.c.bf16 %v389_v16, %v389_v16  ;;  %v391_v19 = vpop.eup %390 }
 0x221   :  { %134 = vadd.xlane.f32.xlu1 %v133_v17  ;;  %v314_v22 = vpack.c.bf16 %v391_v19, %v391_v19  ;;  %v311_v23 = vsel %vm45_vm1, %v391_v19, 0.0 }
 0x222   :  { %372 = vmatmul.msk.bf16.vlgmr.msra.gmra.mxu3 %vm45_vm1, %v136_v18 }
 0x223   :  { %v319_v20 = vpop.permute.xlu0 %318 }
 0x224   :  { %v324_v21 = vsel %vm59_vm2, %v319_v20, 0 }
 0x225   :  { %333 = vmatpush.bf16.msrb.mxu2 %v324_v21 }
 0x228   :  { %380 = vmatmul.msk.bf16.vlgmr.msrb.gmra.mxu2 %vm45_vm1, %v314_v22 }
 0x229   :  { %312 = vadd.xlane.f32.xlu1 %v311_v23 }
 0x232   :  { %376 = vmatmul.msk.bf16.vlgmr.msrb.gmra.mxu3 %vm45_vm1, %v225_v24 }
 0x24e   :  { %v54_v25 = vpop.xlane.xlu0 %53 }
 0x24f   :  { %392 = vrcp.f32 %v54_v25  ;;  %v87_v29 = vand.u32 2147483648, %v54_v25  ;;  %v85_v31 = vand.u32 2147483647, %v54_v25  ;;  %vm81_vm4 = vweird.f32 %v54_v25 }
 0x251   :  { %v88_v33 = vor.u32 1.1754944e-38, %v87_v29  ;;  %vm86_vm6 = vcmp.eq.f32.partialorder %v85_v31, 8.507059e+37 }
 0x255   :  { %v393_v26 = vpop.eup %392 }
 0x256   :  { %v77_v27 = vmul.f32 %v393_v26, %v54_v25  ;;  %vm82_vm3 = vweird.f32 %v393_v26 }
 0x257   :  { %vm83_vm5 = vmor %vm81_vm4, %vm82_vm3  ;;  %vm181_vm4 = vcmask 519424  }
 0x258   :  { %v78_v28 = vsub.f32 1.0, %v77_v27 }
 0x25a   :  { %v79_v30 = vmul.f32 %v393_v26, %v78_v28 }
 0x25c   :  { %v80_v32 = vadd.f32 %v393_v26, %v79_v30 }
 0x25e   :  { %v84_v34 = vsel %vm83_vm5, %v393_v26, %v80_v32  ;;  %vm270_vm5 = vcmask 781824  }
 0x25f   :  { %v89_v35 = vsel %vm86_vm6, %v88_v33, %v84_v34  ;;  %vm359_vm6 = vcmask 1044224  }
 0x260   :  { %v90_v36 = vmul.f32 %v89_v35, %v472_v48 }
 0x262   :  { %v91_v37 = vpack.c.bf16 %v90_v36, %v90_v36 }
 0x264   :  { %93 = vst.msk [vmem:[%s513_s3] sm:$0xf] %vm92_vm7, %v91_v37 }
 0x290   :  { %v224_v39 = vpop.xlane.xlu2 %223 }
 0x291   :  { %v261_v8 = vand.u32 2147483648, %v224_v39  ;;  %vm255_vm1 = vweird.f32 %v224_v39  ;;  %v259_v10 = vand.u32 2147483647, %v224_v39 }
 0x293   :  { %v262_v13 = vor.u32 1.1754944e-38, %v261_v8  ;;  %vm260_vm3 = vcmp.eq.f32.partialorder %v259_v10, 8.507059e+37 }
 0x294   :  { %v135_v38 = vpop.xlane.xlu1 %134 }
 0x295   :  { %394 = vrcp.f32 %v135_v38  ;;  %v172_v45 = vand.u32 2147483648, %v135_v38  ;;  %v170_v47 = vand.u32 2147483647, %v135_v38  ;;  %vm166_vm9 = vweird.f32 %v135_v38 }
 0x296   :  { %396 = vrcp.f32 %v224_v39 }
 0x297   :  { %v173_v51 = vor.u32 1.1754944e-38, %v172_v45  ;;  %vm171_vm11 = vcmp.eq.f32.partialorder %v170_v47, 8.507059e+37 }
 0x29b   :  { %v395_v40 = vpop.eup %394 }
 0x29c   :  { %v162_v41 = vmul.f32 %v395_v40, %v135_v38  ;;  %v313_v42 = vpop.xlane.xlu1 %312  ;;  %v397_v44 = vpop.eup %396  ;;  %vm167_vm8 = vweird.f32 %v395_v40 }
 0x29d   :  { %398 = vrcp.f32 %v313_v42  ;;  %v251_v48 = vmul.f32 %v397_v44, %v224_v39  ;;  %vm168_vm10 = vmor %vm166_vm9, %vm167_vm8  ;;  %v350_v59 = vand.u32 2147483648, %v313_v42  ;;  %v348_v62 = vand.u32 2147483647, %v313_v42 }
 0x29e   :  { %v163_v43 = vsub.f32 1.0, %v162_v41  ;;  %vm344_vm13 = vweird.f32 %v313_v42  ;;  %vm256_vm0 = vweird.f32 %v397_v44 }
 0x29f   :  { %v252_v56 = vsub.f32 1.0, %v251_v48  ;;  %v351_v2 = vor.u32 1.1754944e-38, %v350_v59  ;;  %vm349_vm15 = vcmp.eq.f32.partialorder %v348_v62, 8.507059e+37  ;;  %vm257_vm2 = vmor %vm255_vm1, %vm256_vm0 }
 0x2a0   :  { %v164_v46 = vmul.f32 %v395_v40, %v163_v43 }
 0x2a1   :  { %v253_v0 = vmul.f32 %v397_v44, %v252_v56 }
 0x2a2   :  { %v165_v49 = vadd.f32 %v395_v40, %v164_v46 }
 0x2a3   :  { %v399_v50 = vpop.eup %398  ;;  %v254_v7 = vadd.f32 %v397_v44, %v253_v0 }
 0x2a4   :  { %v340_v52 = vmul.f32 %v399_v50, %v313_v42  ;;  %v169_v53 = vsel %vm168_vm10, %v395_v40, %v165_v49  ;;  %vm345_vm12 = vweird.f32 %v399_v50 }
 0x2a5   :  { %v157_v54 = vpop.f32.mrf.mxu3  ;;  %v174_v55 = vsel %vm171_vm11, %v173_v51, %v169_v53  ;;  %vm346_vm14 = vmor %vm344_vm13, %vm345_vm12  ;;  %v258_v11 = vsel %vm257_vm2, %v397_v44, %v254_v7 }
 0x2a6   :  { %v341_v57 = vsub.f32 1.0, %v340_v52  ;;  %v175_v58 = vmul.f32 %v174_v55, %v157_v54  ;;  %v263_v15 = vsel %vm260_vm3, %v262_v13, %v258_v11 }
 0x2a8   :  { %v176_v60 = vpack.c.bf16 %v175_v58, %v175_v58  ;;  %v342_v61 = vmul.f32 %v399_v50, %v341_v57 }
 0x2aa   :  { %178 = vrot.lane.b32.xlu1 %v176_v60, %s401_s23  ;;  %v343_v63 = vadd.f32 %v399_v50, %v342_v61 }
 0x2ab   :  { %v335_v1 = vpop.f32.mrf.mxu2 }
 0x2ac   :  { %v347_v3 = vsel %vm346_vm14, %v399_v50, %v343_v63 }
 0x2ad   :  { %v352_v4 = vsel %vm349_vm15, %v351_v2, %v347_v3  ;;  %v159_v5 = vpop.f32.mrf.mxu3 }
 0x2ae   :  { %v353_v6 = vmul.f32 %v352_v4, %v335_v1 }
 0x2b0   :  { %v354_v9 = vpack.c.bf16 %v353_v6, %v353_v6 }
 0x2b2   :  { %356 = vrot.lane.b32.xlu2 %v354_v9, %s400_s20 }
 0x2b3   :  { %v337_v12 = vpop.f32.mrf.mxu2 }
 0x2b5   :  { %v246_v14 = vpop.f32.mrf.mxu3 }
 0x2b6   :  { %v264_v16 = vmul.f32 %v263_v15, %v246_v14 }
 0x2b8   :  { %v265_v17 = vpack.c.bf16 %v264_v16, %v264_v16 }
 0x2ba   :  { %267 = vrot.lane.b32.xlu1 %v265_v17, %s402_s26 }
 0x2bd   :  { %v248_v18 = vpop.f32.mrf.mxu3 }
 0x30c   :  { %v357_v21 = vpop.permute.xlu2 %356 }
 0x31c   :  { %v179_v19 = vpop.permute.xlu1 %178 }
 0x31d   :  { %182 = vst.msk [vmem:[%s513_s3] sm:$0xf] %vm181_vm4, %v179_v19 }
 0x32c   :  { %v268_v20 = vpop.permute.xlu1 %267 }
 0x32d   :  { %271 = vst.msk [vmem:[%s513_s3] sm:$0xf] %vm270_vm5, %v268_v20 }
 0x32e   :  { %360 = vst.msk [vmem:[%s513_s3] sm:$0xf] %vm359_vm6, %v357_v21 }

// kernel: cramming_transformer.18
= control target key start
LH: loop header
LB: loop body
LE: loop exit
PB: predicated region body
PF: predicated region fallthrough
CT: control target
= control target key end

     0   :  { %9 = vsyncpa [#allocation3], 0  ;;  %s433_s18 = smov [#allocation2]   ;;  %s628_s0 = inlined_call_operand.vmem [shape: bf16[2,8,128], index: 0, kind: input, shape index: {}]   ;;  %s629_s1 = inlined_call_operand.vmem [shape: f32[1,128], index: 1, kind: input, shape index: {}]   ;;  %s630_s2 = inlined_call_operand.hbm [shape: f32[1,128], index: 2, kind: input, shape index: {}]   ;;  %s631_s3 = inlined_call_operand.vmem [shape: bf16[128,384], index: 3, kind: input, shape index: {}]   ;;  %s632_s4 = inlined_call_operand.vmem [shape: bf16[8,384], index: 4, kind: output, shape index: {}]  }
   0x1   :  { %s19_s17 = sshll.u32 %s630_s2, 4  ;;  %s21_s19 = sshll.u32 %s433_s18, 4  ;;  %s20_s17 = int_to_ptr.hbm [resolvable:$true] %s19_s17  ;;  %s22_s19 = int_to_ptr.vmem [resolvable:$true] %s21_s19 }
   0x2   :  { %24 = dma.hbm_to_vmem [thread:$0]  %s20_s17, 16, %s22_s19, [#allocation3]  }
   0x3   :  { %431 = dma.done.wait [#allocation3], 16  }
   0x4   :  { %432 = vsyncadd [#allocation3], 4294967280  ;;  %v31_v0 = vld [vmem:[%s628_s0] sm:$0xf]  ;;  %v434_v2 = vmov 128.0  }
   0x5   :  { %v32_v1 = vunpack.c.l.bf16 %v31_v0  ;;  %403 = vrcp.f32 %v434_v2  ;;  %v365_v3 = vld [vmem:[%s631_s3 + $0xa8] sm:$0xf]  ;;  %v397_v4 = vld [vmem:[%s631_s3 + $0xb0] sm:$0xf0]  ;;  %v396_v5 = vld [vmem:[%s631_s3 + $0xac] sm:$0xf] }
   0x6   :  { %v366_v6 = vor.u32 %v397_v4, %v365_v3  ;;  %v367_v7 = vld [vmem:[%s631_s3 + $0xb4] sm:$0xf0]  ;;  %v373_v8 = vld [vmem:[%s631_s3 + $0xb0] sm:$0xf]  ;;  %v398_v9 = vld [vmem:[%s631_s3 + $0xb8] sm:$0xf0] }
   0x7   :  { %33 = vadd.xlane.f32.xlu0 %v32_v1  ;;  %v370_v10 = vor.u32 %v396_v5, %v367_v7  ;;  %v374_v11 = vor.u32 %v398_v9, %v373_v8  ;;  %v353_v22 = vld [vmem:[%s631_s3 + $0x90] sm:$0xf]  ;;  %v394_v23 = vld [vmem:[%s631_s3 + $0x98] sm:$0xf0]  ;;  %v393_v24 = vld [vmem:[%s631_s3 + $0x94] sm:$0xf] }
   0x8   :  { %231 = vmatpush.bf16.msra.mxu0 %v366_v6  ;;  %v354_v25 = vor.u32 %v394_v23, %v353_v22  ;;  %v355_v26 = vld [vmem:[%s631_s3 + $0x9c] sm:$0xf0]  ;;  %v361_v27 = vld [vmem:[%s631_s3 + $0x98] sm:$0xf]  ;;  %v395_v28 = vld [vmem:[%s631_s3 + $0xa0] sm:$0xf0] }
   0x9   :  { %244 = vmatpush.bf16.msra.mxu1 %v370_v10  ;;  %257 = vmatpush.bf16.msra.mxu2 %v374_v11  ;;  %v358_v29 = vor.u32 %v393_v24, %v355_v26  ;;  %v362_v30 = vor.u32 %v395_v28, %v361_v27  ;;  %v341_v31 = vld [vmem:[%s631_s3 + $0x78] sm:$0xf]  ;;  %v391_v32 = vld [vmem:[%s631_s3 + $0x80] sm:$0xf0]  ;;  %v390_v33 = vld [vmem:[%s631_s3 + $0x7c] sm:$0xf] }
   0xa   :  { %v342_v34 = vor.u32 %v391_v32, %v341_v31  ;;  %v343_v35 = vld [vmem:[%s631_s3 + $0x84] sm:$0xf0]  ;;  %v349_v36 = vld [vmem:[%s631_s3 + $0x80] sm:$0xf]  ;;  %v392_v37 = vld [vmem:[%s631_s3 + $0x88] sm:$0xf0] }
   0xb   :  { %v404_v12 = vpop.eup %403  ;;  %v346_v38 = vor.u32 %v390_v33, %v343_v35  ;;  %v350_v39 = vor.u32 %v392_v37, %v349_v36  ;;  %v329_v40 = vld [vmem:[%s631_s3 + $0x60] sm:$0xf]  ;;  %v388_v41 = vld [vmem:[%s631_s3 + $0x68] sm:$0xf0]  ;;  %v387_v42 = vld [vmem:[%s631_s3 + $0x64] sm:$0xf] }
   0xc   :  { %v36_v13 = vmul.f32 128.0, %v404_v12  ;;  %vm40_vm0 = vweird.f32 %v404_v12  ;;  %232 = vmatpush.bf16.msra.mxu0 %v354_v25  ;;  %v330_v43 = vor.u32 %v388_v41, %v329_v40  ;;  %v331_v44 = vld [vmem:[%s631_s3 + $0x6c] sm:$0xf0]  ;;  %v337_v45 = vld [vmem:[%s631_s3 + $0x68] sm:$0xf] }
   0xd   :  { %245 = vmatpush.bf16.msra.mxu1 %v358_v29  ;;  %258 = vmatpush.bf16.msra.mxu2 %v362_v30  ;;  %v389_v46 = vld [vmem:[%s631_s3 + $0x70] sm:$0xf0]  ;;  %v334_v47 = vor.u32 %v387_v42, %v331_v44  ;;  %v317_v49 = vld [vmem:[%s631_s3 + $0x48] sm:$0xf]  ;;  %v384_v51 = vld [vmem:[%s631_s3 + $0x4c] sm:$0xf] }
   0xe   :  { %v37_v14 = vsub.f32 1.0, %v36_v13  ;;  %v338_v48 = vor.u32 %v389_v46, %v337_v45  ;;  %v385_v50 = vld [vmem:[%s631_s3 + $0x50] sm:$0xf0]  ;;  %v319_v53 = vld [vmem:[%s631_s3 + $0x54] sm:$0xf0] }
   0xf   :  { %v318_v52 = vor.u32 %v385_v50, %v317_v49  ;;  %v325_v54 = vld [vmem:[%s631_s3 + $0x50] sm:$0xf]  ;;  %v386_v55 = vld [vmem:[%s631_s3 + $0x58] sm:$0xf0]  ;;  %v322_v56 = vor.u32 %v384_v51, %v319_v53  ;;  %v381_v60 = vld [vmem:[%s631_s3 + $0x34] sm:$0xf] }
  0x10   :  { %v38_v15 = vmul.f32 %v404_v12, %v37_v14  ;;  %233 = vmatpush.bf16.msra.mxu0 %v342_v34  ;;  %v326_v57 = vor.u32 %v386_v55, %v325_v54  ;;  %v305_v58 = vld [vmem:[%s631_s3 + $0x30] sm:$0xf]  ;;  %v382_v59 = vld [vmem:[%s631_s3 + $0x38] sm:$0xf0]  ;;  %v307_v62 = vld [vmem:[%s631_s3 + $0x3c] sm:$0xf0] }
  0x11   :  { %246 = vmatpush.bf16.msra.mxu1 %v346_v38  ;;  %259 = vmatpush.bf16.msra.mxu2 %v350_v39  ;;  %v306_v61 = vor.u32 %v382_v59, %v305_v58  ;;  %v313_v63 = vld [vmem:[%s631_s3 + $0x38] sm:$0xf]  ;;  %v383_v0 = vld [vmem:[%s631_s3 + $0x40] sm:$0xf0]  ;;  %v378_v5 = vld [vmem:[%s631_s3 + $0x1c] sm:$0xf] }
  0x12   :  { %v39_v16 = vadd.f32 %v404_v12, %v38_v15  ;;  %v314_v2 = vor.u32 %v383_v0, %v313_v63  ;;  %v293_v3 = vld [vmem:[%s631_s3 + $0x18] sm:$0xf]  ;;  %v379_v4 = vld [vmem:[%s631_s3 + $0x20] sm:$0xf0]  ;;  %v295_v7 = vld [vmem:[%s631_s3 + $0x24] sm:$0xf0] }
  0x13   :  { %v294_v6 = vor.u32 %v379_v4, %v293_v3  ;;  %v301_v8 = vld [vmem:[%s631_s3 + $0x20] sm:$0xf]  ;;  %v380_v9 = vld [vmem:[%s631_s3 + $0x28] sm:$0xf0]  ;;  %v298_v10 = vor.u32 %v378_v5, %v295_v7  ;;  %v375_v14 = vld [vmem:[%s631_s3 + $0x4] sm:$0xf] }
  0x14   :  { %v484_v17 = vsel %vm40_vm0, %v404_v12, %v39_v16  ;;  %234 = vmatpush.bf16.msra.mxu0 %v330_v43  ;;  %v302_v11 = vor.u32 %v380_v9, %v301_v8  ;;  %v281_v12 = vld [vmem:[%s631_s3] sm:$0xf]  ;;  %v376_v13 = vld [vmem:[%s631_s3 + $0x8] sm:$0xf0]  ;;  %v283_v16 = vld [vmem:[%s631_s3 + $0xc] sm:$0xf0] }
  0x15   :  { %247 = vmatpush.bf16.msra.mxu1 %v334_v47  ;;  %260 = vmatpush.bf16.msra.mxu2 %v338_v48  ;;  %v282_v15 = vor.u32 %v376_v13, %v281_v12  ;;  %v401_v32 = vld [vmem:[%s629_s1] ss:$0 sm:$0xff] }
  0x16   :  { %v402_v35 = vld [vmem:[#allocation2] ss:$0 sm:$0xff] }
  0x18   :  { %235 = vmatpush.bf16.msra.mxu0 %v318_v52 }
  0x19   :  { %248 = vmatpush.bf16.msra.mxu1 %v322_v56  ;;  %261 = vmatpush.bf16.msra.mxu2 %v326_v57 }
  0x1c   :  { %236 = vmatpush.bf16.msra.mxu0 %v306_v61 }
  0x1d   :  { %262 = vmatpush.bf16.msra.mxu2 %v314_v2 }
  0x20   :  { %237 = vmatpush.bf16.msra.mxu0 %v294_v6 }
  0x21   :  { %263 = vmatpush.bf16.msra.mxu2 %v302_v11 }
  0x24   :  { %238 = vmatpush.bf16.msra.mxu0 %v282_v15 }
  0x7a   :  { %v34_v18 = vpop.xlane.xlu0 %33 }
  0x7b   :  { %v42_v19 = vmul.f32 %v484_v17, %v34_v18  ;;  %v289_v18 = vld [vmem:[%s631_s3 + $0x8] sm:$0xf] }
  0x7d   :  { %v487_v20 = vsub.f32 %v32_v1, %v42_v19  ;;  %v310_v1 = vor.u32 %v381_v60, %v307_v62  ;;  %v377_v19 = vld [vmem:[%s631_s3 + $0x10] sm:$0xf0] }
  0x7e   :  { %v290_v22 = vor.u32 %v377_v19, %v289_v18 }
  0x7f   :  { %v44_v21 = vmul.f32 %v487_v20, %v487_v20  ;;  %249 = vmatpush.bf16.msra.mxu1 %v310_v1 }
  0x80   :  { %264 = vmatpush.bf16.msra.mxu2 %v290_v22 }
  0x81   :  { %45 = vadd.xlane.f32.xlu0 %v44_v21  ;;  %v286_v21 = vor.u32 %v375_v14, %v283_v16 }
  0x83   :  { %250 = vmatpush.bf16.msra.mxu1 %v298_v10 }
  0x87   :  { %251 = vmatpush.bf16.msra.mxu1 %v286_v21 }
  0xf4   :  { %v46_v23 = vpop.xlane.xlu0 %45 }
  0xf5   :  { %v47_v24 = vmul.f32 %v46_v23, %v484_v17 }
  0xf7   :  { %v48_v25 = vadd.f32 1e-05, %v47_v24 }
  0xf9   :  { %405 = vrsqrt.f32 %v48_v25  ;;  %vm55_vm2 = vweird.f32 %v48_v25 }
  0xff   :  { %v406_v26 = vpop.eup %405 }
 0x100   :  { %v50_v27 = vmul.f32 %v406_v26, %v48_v25  ;;  %vm56_vm1 = vweird.f32 %v406_v26 }
 0x101   :  { %vm57_vm3 = vmor %vm55_vm2, %vm56_vm1 }
 0x102   :  { %v51_v28 = vmul.f32 %v406_v26, %v50_v27 }
 0x104   :  { %v52_v29 = vmul.f32 0.5, %v51_v28 }
 0x106   :  { %v53_v30 = vsub.f32 1.5, %v52_v29 }
 0x108   :  { %v54_v31 = vmul.f32 %v406_v26, %v53_v30 }
 0x10a   :  { %v58_v33 = vsel %vm57_vm3, %v406_v26, %v54_v31 }
 0x10b   :  { %v59_v34 = vmul.f32 %v58_v33, %v487_v20 }
 0x10d   :  { %v64_v17 = vmul.f32 %v401_v32, %v59_v34 }
 0x10f   :  { %v69_v36 = vadd.f32 %v402_v35, %v64_v17 }
 0x111   :  { %v70_v37 = vpack.c.bf16 %v69_v36, %v69_v36 }
 0x113   :  { %239 = vmatmul.bf16.vlgmr.msra.gmra.mxu0 %v70_v37  ;;  %252 = vmatmul.bf16.vlgmr.msra.gmra.mxu1 %v70_v37 }
 0x114   :  { %265 = vmatmul.bf16.vlgmr.msra.gmra.mxu2 %v70_v37 }
 0x190   :  { %v240_v38 = vpop.f32.mrf.mxu0  ;;  %v253_v39 = vpop.f32.mrf.mxu1 }
 0x191   :  { %v270_v40 = vpack.c.bf16 %v253_v39, %v240_v38 }
 0x193   :  { %272 = vst [vmem:[%s632_s4] sm:$0xff] %v270_v40 }
 0x197   :  { %v266_v41 = vpop.f32.mrf.mxu2 }
 0x198   :  { %v271_v42 = vpack.c.bf16 %v266_v41, %v266_v41  ;;  %v242_v43 = vpop.f32.mrf.mxu0  ;;  %v255_v44 = vpop.f32.mrf.mxu1 }
 0x19a   :  { %273 = vst [vmem:[%s632_s4 + $0x8] sm:$0xf] %v271_v42 }
 0x19f   :  { %v268_v20 = vpop.f32.mrf.mxu2 }
 0x1a0   :  { %278 = vsyncpa [#allocation3], 1 }

// kernel: cramming_transformer.23
= control target key start
LH: loop header
LB: loop body
LE: loop exit
PB: predicated region body
PF: predicated region fallthrough
CT: control target
= control target key end

     0   :  { %v661_v44 = vmov 1.41421   ;;  %s818_s1 = inlined_call_operand.vmem [shape: bf16[512,128], index: 1, kind: input, shape index: {}]   ;;  %s819_s0 = inlined_call_operand.vmem [shape: bf16[16,512], index: 0, kind: input, shape index: {}]   ;;  %s820_s2 = inlined_call_operand.vmem [shape: bf16[16,128], index: 2, kind: output, shape index: {}]  }
   0x1   :  { %v624_v0 = vld [vmem:[%s818_s1 + $0x38] sm:$0xff]  ;;  %v623_v4 = vld [vmem:[%s818_s1 + $0x30] sm:$0xff]  ;;  %v622_v8 = vld [vmem:[%s818_s1 + $0x28] sm:$0xff]  ;;  %655 = vrcp.f32 %v661_v44 }
   0x2   :  { %v632_v1 = vld [vmem:[%s818_s1 + $0x78] sm:$0xff]  ;;  %299 = vmatpush.bf16.msra.mxu0 %v624_v0  ;;  %v631_v5 = vld [vmem:[%s818_s1 + $0x70] sm:$0xff]  ;;  %v630_v9 = vld [vmem:[%s818_s1 + $0x68] sm:$0xff] }
   0x3   :  { %v640_v2 = vld [vmem:[%s818_s1 + $0xb8] sm:$0xff]  ;;  %313 = vmatpush.bf16.msra.mxu1 %v632_v1  ;;  %v639_v6 = vld [vmem:[%s818_s1 + $0xb0] sm:$0xff]  ;;  %v638_v10 = vld [vmem:[%s818_s1 + $0xa8] sm:$0xff] }
   0x4   :  { %v648_v3 = vld [vmem:[%s818_s1 + $0xf8] sm:$0xff]  ;;  %327 = vmatpush.bf16.msra.mxu2 %v640_v2  ;;  %v647_v7 = vld [vmem:[%s818_s1 + $0xf0] sm:$0xff]  ;;  %v646_v11 = vld [vmem:[%s818_s1 + $0xe8] sm:$0xff] }
   0x5   :  { %341 = vmatpush.bf16.msra.mxu3 %v648_v3  ;;  %v621_v12 = vld [vmem:[%s818_s1 + $0x20] sm:$0xff]  ;;  %v620_v16 = vld [vmem:[%s818_s1 + $0x18] sm:$0xff]  ;;  %v619_v20 = vld [vmem:[%s818_s1 + $0x10] sm:$0xff] }
   0x6   :  { %300 = vmatpush.bf16.msra.mxu0 %v623_v4  ;;  %v629_v13 = vld [vmem:[%s818_s1 + $0x60] sm:$0xff]  ;;  %v628_v17 = vld [vmem:[%s818_s1 + $0x58] sm:$0xff]  ;;  %v627_v21 = vld [vmem:[%s818_s1 + $0x50] sm:$0xff] }
   0x7   :  { %314 = vmatpush.bf16.msra.mxu1 %v631_v5  ;;  %v637_v14 = vld [vmem:[%s818_s1 + $0xa0] sm:$0xff]  ;;  %v636_v18 = vld [vmem:[%s818_s1 + $0x98] sm:$0xff]  ;;  %v635_v22 = vld [vmem:[%s818_s1 + $0x90] sm:$0xff]  ;;  %v656_v45 = vpop.eup %655 }
   0x8   :  { %328 = vmatpush.bf16.msra.mxu2 %v639_v6  ;;  %v645_v15 = vld [vmem:[%s818_s1 + $0xe0] sm:$0xff]  ;;  %v644_v19 = vld [vmem:[%s818_s1 + $0xd8] sm:$0xff]  ;;  %v643_v23 = vld [vmem:[%s818_s1 + $0xd0] sm:$0xff]  ;;  %v367_v46 = vmul.f32 1.41421, %v656_v45  ;;  %vm371_vm0 = vweird.f32 %v656_v45 }
   0x9   :  { %342 = vmatpush.bf16.msra.mxu3 %v647_v7  ;;  %v618_v24 = vld [vmem:[%s818_s1 + $0x8] sm:$0xff]  ;;  %v617_v28 = vld [vmem:[%s818_s1] sm:$0xff]  ;;  %v615_v33 = vld [vmem:[%s819_s0 + $0xc] sm:$0xf0] }
   0xa   :  { %301 = vmatpush.bf16.msra.mxu0 %v622_v8  ;;  %v626_v25 = vld [vmem:[%s818_s1 + $0x48] sm:$0xff]  ;;  %v625_v29 = vld [vmem:[%s818_s1 + $0x40] sm:$0xff]  ;;  %v471_v35 = vld [vmem:[%s819_s0 + $0x10] sm:$0xf0]  ;;  %v368_v47 = vsub.f32 1.0, %v367_v46 }
   0xb   :  { %315 = vmatpush.bf16.msra.mxu1 %v630_v9  ;;  %v634_v26 = vld [vmem:[%s818_s1 + $0x88] sm:$0xff]  ;;  %v633_v30 = vld [vmem:[%s818_s1 + $0x80] sm:$0xff]  ;;  %v616_v37 = vld [vmem:[%s819_s0 + $0x14] sm:$0xf0] }
   0xc   :  { %329 = vmatpush.bf16.msra.mxu2 %v638_v10  ;;  %v642_v27 = vld [vmem:[%s818_s1 + $0xc8] sm:$0xff]  ;;  %v641_v31 = vld [vmem:[%s818_s1 + $0xc0] sm:$0xff]  ;;  %v479_v39 = vld [vmem:[%s819_s0 + $0x18] sm:$0xf0]  ;;  %v369_v50 = vmul.f32 %v656_v45, %v368_v47 }
   0xd   :  { %343 = vmatpush.bf16.msra.mxu3 %v646_v11  ;;  %v469_v32 = vld [vmem:[%s819_s0] sm:$0xf]  ;;  %v613_v34 = vld [vmem:[%s819_s0 + $0x4] sm:$0xf]  ;;  %v477_v36 = vld [vmem:[%s819_s0 + $0x8] sm:$0xf] }
   0xe   :  { %302 = vmatpush.bf16.msra.mxu0 %v621_v12  ;;  %v614_v38 = vld [vmem:[%s819_s0 + $0xc] sm:$0xf]  ;;  %v470_v40 = vor.u32 %v615_v33, %v469_v32  ;;  %v474_v41 = vor.u32 %v613_v34, %v471_v35  ;;  %v478_v42 = vor.u32 %v616_v37, %v477_v36  ;;  %v370_v52 = vadd.f32 %v656_v45, %v369_v50 }
   0xf   :  { %316 = vmatpush.bf16.msra.mxu1 %v629_v13  ;;  %v482_v43 = vor.u32 %v614_v38, %v479_v39 }
  0x10   :  { %330 = vmatpush.bf16.msra.mxu2 %v637_v14  ;;  %v372_v56 = vsel %vm371_vm0, %v656_v45, %v370_v52 }
  0x11   :  { %344 = vmatpush.bf16.msra.mxu3 %v645_v15 }
  0x12   :  { %303 = vmatpush.bf16.msra.mxu0 %v620_v16 }
  0x13   :  { %317 = vmatpush.bf16.msra.mxu1 %v628_v17 }
  0x14   :  { %331 = vmatpush.bf16.msra.mxu2 %v636_v18 }
  0x15   :  { %345 = vmatpush.bf16.msra.mxu3 %v644_v19 }
  0x16   :  { %304 = vmatpush.bf16.msra.mxu0 %v619_v20 }
  0x17   :  { %318 = vmatpush.bf16.msra.mxu1 %v627_v21 }
  0x18   :  { %332 = vmatpush.bf16.msra.mxu2 %v635_v22 }
  0x19   :  { %346 = vmatpush.bf16.msra.mxu3 %v643_v23 }
  0x1a   :  { %305 = vmatpush.bf16.msra.mxu0 %v618_v24 }
  0x1b   :  { %319 = vmatpush.bf16.msra.mxu1 %v626_v25 }
  0x1c   :  { %333 = vmatpush.bf16.msra.mxu2 %v634_v26 }
  0x1d   :  { %347 = vmatpush.bf16.msra.mxu3 %v642_v27 }
  0x1e   :  { %306 = vmatpush.bf16.msra.mxu0 %v617_v28 }
  0x1f   :  { %320 = vmatpush.bf16.msra.mxu1 %v625_v29 }
  0x20   :  { %334 = vmatpush.bf16.msra.mxu2 %v633_v30 }
  0x21   :  { %348 = vmatpush.bf16.msra.mxu3 %v641_v31  ;;  %307 = vmatmul.bf16.vlgmr.msra.gmra.mxu0 %v470_v40 }
  0x22   :  { %321 = vmatmul.bf16.vlgmr.msra.gmra.mxu1 %v474_v41 }
  0x23   :  { %335 = vmatmul.bf16.vlgmr.msra.gmra.mxu2 %v478_v42 }
  0x24   :  { %349 = vmatmul.bf16.vlgmr.msra.gmra.mxu3 %v482_v43 }
  0x9e   :  { %v308_v48 = vpop.f32.mrf.mxu0 }
  0x9f   :  { %v322_v49 = vpop.f32.mrf.mxu1 }
  0xa0   :  { %v323_v51 = vadd.f32 %v322_v49, %v308_v48 }
  0xa6   :  { %v336_v53 = vpop.f32.mrf.mxu2  ;;  %v310_v58 = vpop.f32.mrf.mxu0 }
  0xa7   :  { %v350_v54 = vpop.f32.mrf.mxu3  ;;  %v337_v55 = vadd.f32 %v336_v53, %v323_v51  ;;  %v324_v59 = vpop.f32.mrf.mxu1 }
  0xa8   :  { %v325_v62 = vadd.f32 %v324_v59, %v310_v58 }
  0xa9   :  { %v797_v57 = vadd.f32 %v350_v54, %v337_v55 }
  0xab   :  { %v800_v60 = vmul.f32 %v372_v56, %v797_v57 }
  0xad   :  { %v375_v61 = vmul.f32 %v800_v60, %v800_v60 }
  0xae   :  { %v338_v63 = vpop.f32.mrf.mxu2 }
  0xaf   :  { %v376_v0 = vmin.f32 %v375_v61, 16.0  ;;  %v339_v1 = vadd.f32 %v338_v63, %v325_v62  ;;  %v352_v2 = vpop.f32.mrf.mxu3 }
  0xb1   :  { %v377_v3 = vmul.f32 2.1237322e-06, %v376_v0  ;;  %v388_v4 = vmul.f32 3.8918573e-05, %v376_v0  ;;  %v804_v5 = vadd.f32 %v352_v2, %v339_v1 }
  0xb3   :  { %v378_v6 = vadd.f32 0.00028619796, %v377_v3  ;;  %v389_v7 = vadd.f32 0.001143296, %v388_v4  ;;  %v807_v8 = vmul.f32 %v372_v56, %v804_v5 }
  0xb5   :  { %v390_v9 = vmul.f32 %v389_v7, %v376_v0  ;;  %v415_v10 = vmul.f32 %v807_v8, %v807_v8  ;;  %v379_v11 = vmul.f32 %v378_v6, %v376_v0 }
  0xb7   :  { %v391_v12 = vadd.f32 0.014752088, %v390_v9  ;;  %v416_v13 = vmin.f32 %v415_v10, 16.0  ;;  %v380_v17 = vadd.f32 0.0036580483, %v379_v11 }
  0xb9   :  { %v392_v14 = vmul.f32 %v391_v12, %v376_v0  ;;  %v417_v15 = vmul.f32 2.1237322e-06, %v416_v13  ;;  %v428_v16 = vmul.f32 3.8918573e-05, %v416_v13  ;;  %v381_v24 = vmul.f32 %v380_v17, %v376_v0 }
  0xbb   :  { %v393_v18 = vadd.f32 0.112945676, %v392_v14  ;;  %v418_v19 = vadd.f32 0.00028619796, %v417_v15  ;;  %v429_v20 = vadd.f32 0.001143296, %v428_v16 }
  0xbc   :  { %v382_v30 = vadd.f32 0.05243302, %v381_v24  ;;  %v365_v14 = vmul.f32 0.5, %v804_v5 }
  0xbd   :  { %v394_v21 = vmul.f32 %v393_v18, %v376_v0  ;;  %v419_v22 = vmul.f32 %v418_v19, %v416_v13  ;;  %v430_v23 = vmul.f32 %v429_v20, %v416_v13 }
  0xbe   :  { %v383_v35 = vmul.f32 %v382_v30, %v376_v0 }
  0xbf   :  { %v395_v25 = vadd.f32 0.4994258, %v394_v21  ;;  %v420_v26 = vadd.f32 0.0036580483, %v419_v22  ;;  %v431_v27 = vadd.f32 0.014752088, %v430_v23 }
  0xc0   :  { %v384_v40 = vadd.f32 0.18741608, %v383_v35 }
  0xc1   :  { %v396_v28 = vmul.f32 %v395_v25, %v376_v0  ;;  %v432_v29 = vmul.f32 %v431_v27, %v416_v13  ;;  %v421_v32 = vmul.f32 %v420_v26, %v416_v13 }
  0xc2   :  { %v385_v45 = vmul.f32 %v384_v40, %v376_v0 }
  0xc3   :  { %v397_v31 = vadd.f32 1.0, %v396_v28  ;;  %v433_v33 = vadd.f32 0.112945676, %v432_v29  ;;  %v422_v36 = vadd.f32 0.05243302, %v421_v32 }
  0xc4   :  { %v386_v51 = vadd.f32 1.1283791, %v385_v45 }
  0xc5   :  { %657 = vrcp.f32 %v397_v31  ;;  %v434_v34 = vmul.f32 %v433_v33, %v416_v13  ;;  %v423_v42 = vmul.f32 %v422_v36, %v416_v13  ;;  %v409_v47 = vand.u32 2147483648, %v397_v31 }
  0xc6   :  { %v407_v49 = vand.u32 2147483647, %v397_v31  ;;  %vm403_vm2 = vweird.f32 %v397_v31  ;;  %v387_v59 = vmul.f32 %v386_v51, %v800_v60 }
  0xc7   :  { %v435_v37 = vadd.f32 0.4994258, %v434_v34  ;;  %v424_v48 = vadd.f32 0.18741608, %v423_v42  ;;  %v410_v54 = vor.u32 1.1754944e-38, %v409_v47 }
  0xc8   :  { %vm408_vm4 = vcmp.eq.f32.partialorder %v407_v49, 8.507059e+37 }
  0xc9   :  { %v436_v38 = vmul.f32 %v435_v37, %v416_v13  ;;  %v425_v55 = vmul.f32 %v424_v48, %v416_v13  ;;  %v364_v13 = vmul.f32 0.5, %v797_v57 }
  0xcb   :  { %v658_v39 = vpop.eup %657  ;;  %v437_v43 = vadd.f32 1.0, %v436_v38  ;;  %v426_v62 = vadd.f32 1.1283791, %v425_v55 }
  0xcc   :  { %v399_v41 = vmul.f32 %v658_v39, %v397_v31  ;;  %vm404_vm1 = vweird.f32 %v658_v39 }
  0xcd   :  { %659 = vrcp.f32 %v437_v43  ;;  %vm405_vm3 = vmor %vm403_vm2, %vm404_vm1  ;;  %v449_v63 = vand.u32 2147483648, %v437_v43  ;;  %v447_v2 = vand.u32 2147483647, %v437_v43  ;;  %vm443_vm6 = vweird.f32 %v437_v43 }
  0xce   :  { %v400_v44 = vsub.f32 1.0, %v399_v41  ;;  %v427_v7 = vmul.f32 %v426_v62, %v807_v8 }
  0xcf   :  { %v450_v4 = vor.u32 1.1754944e-38, %v449_v63  ;;  %vm448_vm8 = vcmp.eq.f32.partialorder %v447_v2, 8.507059e+37 }
  0xd0   :  { %v401_v46 = vmul.f32 %v658_v39, %v400_v44 }
  0xd2   :  { %v402_v50 = vadd.f32 %v658_v39, %v401_v46 }
  0xd3   :  { %v660_v52 = vpop.eup %659 }
  0xd4   :  { %v406_v53 = vsel %vm405_vm3, %v658_v39, %v402_v50  ;;  %v439_v56 = vmul.f32 %v660_v52, %v437_v43  ;;  %vm444_vm5 = vweird.f32 %v660_v52 }
  0xd5   :  { %v411_v58 = vsel %vm408_vm4, %v410_v54, %v406_v53  ;;  %vm445_vm7 = vmor %vm443_vm6, %vm444_vm5 }
  0xd6   :  { %v440_v61 = vsub.f32 1.0, %v439_v56  ;;  %v412_v0 = vmul.f32 %v411_v58, %v387_v59 }
  0xd8   :  { %v441_v1 = vmul.f32 %v660_v52, %v440_v61  ;;  %v611_v6 = vclamps-f32 %v412_v0, 1.0 }
  0xda   :  { %v442_v3 = vadd.f32 %v660_v52, %v441_v1  ;;  %v455_v12 = vadd.f32 1.0, %v611_v6 }
  0xdc   :  { %v446_v9 = vsel %vm445_vm7, %v660_v52, %v442_v3  ;;  %v457_v16 = vmul.f32 %v455_v12, %v364_v13 }
  0xdd   :  { %v451_v10 = vsel %vm448_vm8, %v450_v4, %v446_v9 }
  0xde   :  { %v452_v11 = vmul.f32 %v451_v10, %v427_v7 }
  0xe0   :  { %v612_v60 = vclamps-f32 %v452_v11, 1.0 }
  0xe2   :  { %v456_v15 = vadd.f32 1.0, %v612_v60 }
  0xe4   :  { %v458_v17 = vmul.f32 %v456_v15, %v365_v14 }
  0xe6   :  { %v652_v18 = vpack.c.bf16 %v458_v17, %v457_v16 }
  0xe8   :  { %653 = vst [vmem:[%s820_s2] sm:$0xff] %v652_v18  }

// kernel: cramming_transformer.24
= control target key start
LH: loop header
LB: loop body
LE: loop exit
PB: predicated region body
PF: predicated region fallthrough
CT: control target
= control target key end

     0   :  { %s476_s15 = smov 0   ;;  %s478_s16 = smov 0   ;;  %s523_s0 = inlined_call_operand.vmem [shape: bf16[2,8,128], index: 0, kind: input, shape index: {}]   ;;  %s524_s1 = inlined_call_operand.vmem [shape: bf16[2,8,128], index: 1, kind: input, shape index: {}]   ;;  %s525_s2 = inlined_call_operand.vmem [shape: f32[1,128], index: 2, kind: input, shape index: {}]   ;;  %s526_s3 = inlined_call_operand.vmem [shape: f32[1,128], index: 3, kind: input, shape index: {}]   ;;  %s527_s4 = inlined_call_operand.vmem [shape: bf16[2,8,128], index: 4, kind: output, shape index: {}]  }
   0x1   :  { %s480_s17 = smov 0  }
   0x2 LB: > { %s26_s18 = sadd.s32 1, %s444_s16  ;;  %p389_p0 = scmp.ge.s32.totalorder %s448_s17, 1  ;;  %s448_s17 = sphi %s480_s17, %s14_s17   ;;  %s444_s16 = sphi %s478_s16, %s529_s16   ;;  %s440_s15 = sphi %s476_s15, %s528_s15  }
   0x3   : > { %p28_p1 = scmp.ge.s32.totalorder %s26_s18, 2  ;;  %p194_p2 = scmp.lt.s32.totalorder %s448_s17, 3 }
   0x5   : > { %s531_s18 = smov (%p28_p1, %s26_s18), 0  ;;  %p195_p3 = pnand %p389_p0, %p194_p2 }
   0x6   : > { %p231_p4 = scmp.lt.s32.totalorder (!%p195_p3), %s440_s15, 1 }
   0x7   : > { %198 = sbr.rel (%p195_p3) target bundleno = 290 (0x122), region = 36 }
   0xc   : > { %s533_s15 = smov (!%p231_p4, %s440_s15), 1  ;;  %v450_v5 = vmov 128.0   ;;  %v420_v25 = vld [vmem:[%s525_s2] ss:$0 sm:$0xff] }
   0xd   : > { %s494_s19 = sshll.u32 %s533_s15, 2  ;;  %422 = vrcp.f32 %v450_v5  ;;  %v421_v27 = vld [vmem:[%s526_s3] ss:$0 sm:$0xff] }
   0xe   : > { %s237_s22 = scalar_lea.vmem %s523_s0, %s494_s19  ;;  %s244_s25 = scalar_lea.vmem %s524_s1, %s494_s19 }
   0xf   : > { %v252_v0 = vld [vmem:[%s237_s22] sm:$0xf]  ;;  %s251_s6 = scalar_lea.vmem %s527_s4, %s494_s19 }
  0x10   : > { %v254_v1 = vld [vmem:[%s244_s25] sm:$0xf]  ;;  %v253_v2 = vunpack.c.l.bf16 %v252_v0 }
  0x11   : > { %v255_v3 = vunpack.c.l.bf16 %v254_v1 }
  0x13   : > { %v256_v4 = vadd.f32 %v255_v3, %v253_v2  ;;  %v423_v6 = vpop.eup %422 }
  0x14   : > { %v260_v7 = vmul.f32 128.0, %v423_v6  ;;  %vm264_vm0 = vweird.f32 %v423_v6 }
  0x15   : > { %257 = vadd.xlane.f32.xlu0 %v256_v4 }
  0x16   : > { %v261_v8 = vsub.f32 1.0, %v260_v7 }
  0x18   : > { %v262_v9 = vmul.f32 %v423_v6, %v261_v8 }
  0x1a   : > { %v263_v10 = vadd.f32 %v423_v6, %v262_v9 }
  0x1c   : > { %v265_v11 = vsel %vm264_vm0, %v423_v6, %v263_v10 }
  0x88   : > { %v258_v12 = vpop.xlane.xlu0 %257 }
  0x89   : > { %v266_v13 = vmul.f32 %v265_v11, %v258_v12 }
  0x8b   : > { %v267_v14 = vsub.f32 %v256_v4, %v266_v13 }
  0x8d   : > { %v268_v15 = vmul.f32 %v267_v14, %v267_v14 }
  0x8f   : > { %269 = vadd.xlane.f32.xlu0 %v268_v15 }
 0x102   : > { %v270_v16 = vpop.xlane.xlu0 %269 }
 0x103   : > { %v271_v17 = vmul.f32 %v270_v16, %v265_v11 }
 0x105   : > { %v272_v18 = vadd.f32 1e-05, %v271_v17 }
 0x107   : > { %424 = vrsqrt.f32 %v272_v18  ;;  %vm279_vm2 = vweird.f32 %v272_v18 }
 0x10d   : > { %v425_v19 = vpop.eup %424 }
 0x10e   : > { %v274_v20 = vmul.f32 %v425_v19, %v272_v18  ;;  %vm280_vm1 = vweird.f32 %v425_v19 }
 0x10f   : > { %vm281_vm3 = vmor %vm279_vm2, %vm280_vm1 }
 0x110   : > { %v275_v21 = vmul.f32 %v425_v19, %v274_v20 }
 0x112   : > { %v276_v22 = vmul.f32 0.5, %v275_v21 }
 0x114   : > { %v277_v23 = vsub.f32 1.5, %v276_v22 }
 0x116   : > { %v278_v24 = vmul.f32 %v425_v19, %v277_v23 }
 0x118   : > { %v282_v26 = vsel %vm281_vm3, %v425_v19, %v278_v24 }
 0x119   : > { %v283_v28 = vmul.f32 %v282_v26, %v267_v14 }
 0x11b   : > { %v288_v29 = vmul.f32 %v420_v25, %v283_v28 }
 0x11d   : > { %v293_v30 = vadd.f32 %v421_v27, %v288_v29 }
 0x11f   : > { %v294_v31 = vpack.c.bf16 %v293_v30, %v293_v30 }
 0x121   : > { %295 = vst [vmem:[%s251_s6] sm:$0xf] %v294_v31 }
 0x122 PF: > { %s14_s17 = sadd.s32 1, %s448_s17   ;;  %s528_s15 = smov %s444_s16 }
 0x123   : > { %p11_p5 = scmp.ge.s32.totalorder %s14_s17, 4   ;;  %s529_s16 = smov %s531_s18 }
 0x125   :  { %13 = sbr.rel (!%p11_p5) target bundleno = 2 (0x2), region = 69 }

// kernel: cramming_transformer.22
= control target key start
LH: loop header
LB: loop body
LE: loop exit
PB: predicated region body
PF: predicated region fallthrough
CT: control target
= control target key end

     0   :  { %v900_v3 = vmov 128.0   ;;  %s1379_s0 = inlined_call_operand.vmem [shape: bf16[16,128], index: 0, kind: input, shape index: {}]   ;;  %s1380_s1 = inlined_call_operand.vmem [shape: f32[1,128], index: 1, kind: input, shape index: {}]   ;;  %s1381_s2 = inlined_call_operand.vmem [shape: f32[1,128], index: 2, kind: input, shape index: {}]   ;;  %s1382_s3 = inlined_call_operand.vmem [shape: bf16[128,512], index: 3, kind: input, shape index: {}]   ;;  %s1383_s4 = inlined_call_operand.vmem [shape: bf16[16,512], index: 4, kind: output, shape index: {}]  }
   0x1   :  { %v869_v0 = vld [vmem:[%s1379_s0] sm:$0xff]   ;;  %876 = vrcp.f32 %v900_v3  ;;  %v866_v19 = vld [vmem:[%s1382_s3 + $0xec] sm:$0xf0]  ;;  %v816_v22 = vld [vmem:[%s1382_s3 + $0xf0] sm:$0xf0] }
   0x2   :  { %v870_v1 = vunpack.c.l.bf16 %v869_v0  ;;  %v871_v2 = vunpack.c.h.bf16 %v869_v0  ;;  %v814_v18 = vld [vmem:[%s1382_s3 + $0xe0] sm:$0xf]  ;;  %v864_v20 = vld [vmem:[%s1382_s3 + $0xe4] sm:$0xf]  ;;  %v822_v23 = vld [vmem:[%s1382_s3 + $0xe8] sm:$0xf] }
   0x3   :  { %v815_v21 = vor.u32 %v866_v19, %v814_v18  ;;  %v867_v24 = vld [vmem:[%s1382_s3 + $0xf4] sm:$0xf0]  ;;  %v819_v25 = vor.u32 %v864_v20, %v816_v22  ;;  %v865_v27 = vld [vmem:[%s1382_s3 + $0xec] sm:$0xf]  ;;  %v824_v28 = vld [vmem:[%s1382_s3 + $0xf8] sm:$0xf0] }
   0x4   :  { %21 = vadd.xlane.f32.xlu0 %v870_v1  ;;  %v823_v26 = vor.u32 %v867_v24, %v822_v23  ;;  %v827_v29 = vor.u32 %v865_v27, %v824_v28  ;;  %v798_v30 = vld [vmem:[%s1382_s3 + $0xc0] sm:$0xf]  ;;  %v862_v31 = vld [vmem:[%s1382_s3 + $0xcc] sm:$0xf0]  ;;  %v860_v32 = vld [vmem:[%s1382_s3 + $0xc4] sm:$0xf] }
   0x5   :  { %273 = vmatpush.bf16.msra.mxu0 %v815_v21  ;;  %287 = vmatpush.bf16.msra.mxu1 %v819_v25  ;;  %v799_v33 = vor.u32 %v862_v31, %v798_v30  ;;  %v800_v34 = vld [vmem:[%s1382_s3 + $0xd0] sm:$0xf0]  ;;  %v806_v35 = vld [vmem:[%s1382_s3 + $0xc8] sm:$0xf]  ;;  %v863_v36 = vld [vmem:[%s1382_s3 + $0xd4] sm:$0xf0] }
   0x6   :  { %301 = vmatpush.bf16.msra.mxu2 %v823_v26  ;;  %315 = vmatpush.bf16.msra.mxu3 %v827_v29  ;;  %v803_v37 = vor.u32 %v860_v32, %v800_v34  ;;  %v807_v38 = vor.u32 %v863_v36, %v806_v35  ;;  %v861_v39 = vld [vmem:[%s1382_s3 + $0xcc] sm:$0xf]  ;;  %v808_v40 = vld [vmem:[%s1382_s3 + $0xd8] sm:$0xf0]  ;;  %v782_v42 = vld [vmem:[%s1382_s3 + $0xa0] sm:$0xf] }
   0x7   :  { %v877_v4 = vpop.eup %876  ;;  %v811_v41 = vor.u32 %v861_v39, %v808_v40  ;;  %v858_v43 = vld [vmem:[%s1382_s3 + $0xac] sm:$0xf0]  ;;  %v856_v44 = vld [vmem:[%s1382_s3 + $0xa4] sm:$0xf]  ;;  %v784_v46 = vld [vmem:[%s1382_s3 + $0xb0] sm:$0xf0] }
   0x8   :  { %v26_v5 = vmul.f32 128.0, %v877_v4  ;;  %vm30_vm0 = vweird.f32 %v877_v4  ;;  %v783_v45 = vor.u32 %v858_v43, %v782_v42  ;;  %v790_v47 = vld [vmem:[%s1382_s3 + $0xa8] sm:$0xf]  ;;  %v859_v48 = vld [vmem:[%s1382_s3 + $0xb4] sm:$0xf0]  ;;  %v787_v49 = vor.u32 %v856_v44, %v784_v46 }
   0x9   :  { %274 = vmatpush.bf16.msra.mxu0 %v799_v33  ;;  %288 = vmatpush.bf16.msra.mxu1 %v803_v37  ;;  %v791_v50 = vor.u32 %v859_v48, %v790_v47  ;;  %v857_v51 = vld [vmem:[%s1382_s3 + $0xac] sm:$0xf]  ;;  %v792_v52 = vld [vmem:[%s1382_s3 + $0xb8] sm:$0xf0]  ;;  %v766_v54 = vld [vmem:[%s1382_s3 + $0x80] sm:$0xf] }
   0xa   :  { %v27_v6 = vsub.f32 1.0, %v26_v5  ;;  %302 = vmatpush.bf16.msra.mxu2 %v807_v38  ;;  %316 = vmatpush.bf16.msra.mxu3 %v811_v41  ;;  %v795_v53 = vor.u32 %v857_v51, %v792_v52  ;;  %v854_v55 = vld [vmem:[%s1382_s3 + $0x8c] sm:$0xf0]  ;;  %v852_v56 = vld [vmem:[%s1382_s3 + $0x84] sm:$0xf] }
   0xb   :  { %v767_v57 = vor.u32 %v854_v55, %v766_v54  ;;  %v768_v58 = vld [vmem:[%s1382_s3 + $0x90] sm:$0xf0]  ;;  %v774_v59 = vld [vmem:[%s1382_s3 + $0x88] sm:$0xf]  ;;  %v855_v60 = vld [vmem:[%s1382_s3 + $0x94] sm:$0xf0] }
   0xc   :  { %23 = vadd.xlane.f32.xlu0 %v871_v2  ;;  %v28_v7 = vmul.f32 %v877_v4, %v27_v6  ;;  %v771_v61 = vor.u32 %v852_v56, %v768_v58  ;;  %v775_v62 = vor.u32 %v855_v60, %v774_v59  ;;  %v853_v63 = vld [vmem:[%s1382_s3 + $0x8c] sm:$0xf]  ;;  %v776_v0 = vld [vmem:[%s1382_s3 + $0x98] sm:$0xf0]  ;;  %v850_v3 = vld [vmem:[%s1382_s3 + $0x6c] sm:$0xf0] }
   0xd   :  { %275 = vmatpush.bf16.msra.mxu0 %v783_v45  ;;  %289 = vmatpush.bf16.msra.mxu1 %v787_v49  ;;  %v752_v6 = vld [vmem:[%s1382_s3 + $0x70] sm:$0xf0]  ;;  %v846_v18 = vld [vmem:[%s1382_s3 + $0x4c] sm:$0xf0]  ;;  %v844_v19 = vld [vmem:[%s1382_s3 + $0x44] sm:$0xf] }
   0xe   :  { %v29_v8 = vadd.f32 %v877_v4, %v28_v7  ;;  %303 = vmatpush.bf16.msra.mxu2 %v791_v50  ;;  %317 = vmatpush.bf16.msra.mxu3 %v795_v53  ;;  %v758_v7 = vld [vmem:[%s1382_s3 + $0x68] sm:$0xf]  ;;  %v736_v21 = vld [vmem:[%s1382_s3 + $0x50] sm:$0xf0]  ;;  %v847_v23 = vld [vmem:[%s1382_s3 + $0x54] sm:$0xf0] }
   0xf   :  { %v742_v22 = vld [vmem:[%s1382_s3 + $0x48] sm:$0xf]  ;;  %v739_v24 = vor.u32 %v844_v19, %v736_v21  ;;  %v845_v26 = vld [vmem:[%s1382_s3 + $0x4c] sm:$0xf]  ;;  %v744_v27 = vld [vmem:[%s1382_s3 + $0x58] sm:$0xf0] }
  0x10   :  { %v930_v9 = vsel %vm30_vm0, %v877_v4, %v29_v8  ;;  %v848_v4 = vld [vmem:[%s1382_s3 + $0x64] sm:$0xf]  ;;  %v851_v8 = vld [vmem:[%s1382_s3 + $0x74] sm:$0xf0]  ;;  %v743_v25 = vor.u32 %v847_v23, %v742_v22  ;;  %v747_v28 = vor.u32 %v845_v26, %v744_v27  ;;  %v718_v29 = vld [vmem:[%s1382_s3 + $0x20] sm:$0xf] }
  0x11   :  { %276 = vmatpush.bf16.msra.mxu0 %v767_v57  ;;  %290 = vmatpush.bf16.msra.mxu1 %v771_v61  ;;  %v842_v30 = vld [vmem:[%s1382_s3 + $0x2c] sm:$0xf0]  ;;  %v840_v31 = vld [vmem:[%s1382_s3 + $0x24] sm:$0xf]  ;;  %v720_v33 = vld [vmem:[%s1382_s3 + $0x30] sm:$0xf0] }
  0x12   :  { %304 = vmatpush.bf16.msra.mxu2 %v775_v62  ;;  %v719_v32 = vor.u32 %v842_v30, %v718_v29  ;;  %v726_v34 = vld [vmem:[%s1382_s3 + $0x28] sm:$0xf]  ;;  %v843_v35 = vld [vmem:[%s1382_s3 + $0x34] sm:$0xf0]  ;;  %v723_v36 = vor.u32 %v840_v31, %v720_v33  ;;  %v841_v38 = vld [vmem:[%s1382_s3 + $0x2c] sm:$0xf] }
  0x13   :  { %v727_v37 = vor.u32 %v843_v35, %v726_v34  ;;  %v728_v39 = vld [vmem:[%s1382_s3 + $0x38] sm:$0xf0]  ;;  %v702_v40 = vld [vmem:[%s1382_s3] sm:$0xf]  ;;  %v838_v43 = vld [vmem:[%s1382_s3 + $0xc] sm:$0xf0] }
  0x14   :  { %v731_v42 = vor.u32 %v841_v38, %v728_v39  ;;  %v836_v44 = vld [vmem:[%s1382_s3 + $0x4] sm:$0xf]  ;;  %v704_v45 = vld [vmem:[%s1382_s3 + $0x10] sm:$0xf0]  ;;  %v703_v47 = vor.u32 %v838_v43, %v702_v40  ;;  %v710_v49 = vld [vmem:[%s1382_s3 + $0x8] sm:$0xf] }
  0x15   :  { %v707_v48 = vor.u32 %v836_v44, %v704_v45  ;;  %v839_v50 = vld [vmem:[%s1382_s3 + $0x14] sm:$0xf0]  ;;  %v837_v51 = vld [vmem:[%s1382_s3 + $0xc] sm:$0xf]  ;;  %v712_v53 = vld [vmem:[%s1382_s3 + $0x18] sm:$0xf0] }
  0x16   :  { %v711_v52 = vor.u32 %v839_v50, %v710_v49  ;;  %v715_v55 = vor.u32 %v837_v51, %v712_v53 }
  0x77   :  { %v22_v10 = vpop.xlane.xlu0 %21 }
  0x78   :  { %v32_v11 = vmul.f32 %v930_v9, %v22_v10  ;;  %v755_v10 = vor.u32 %v848_v4, %v752_v6 }
  0x7a   :  { %v933_v12 = vsub.f32 %v870_v1, %v32_v11  ;;  %v779_v1 = vor.u32 %v853_v63, %v776_v0  ;;  %v759_v11 = vor.u32 %v851_v8, %v758_v7  ;;  %291 = vmatpush.bf16.msra.mxu1 %v755_v10  ;;  %v874_v7 = vld [vmem:[%s1380_s1] ss:$0 sm:$0xff] }
  0x7c   :  { %v36_v13 = vmul.f32 %v933_v12, %v933_v12  ;;  %318 = vmatpush.bf16.msra.mxu3 %v779_v1  ;;  %305 = vmatpush.bf16.msra.mxu2 %v759_v11 }
  0x7e   :  { %38 = vadd.xlane.f32.xlu1 %v36_v13  ;;  %v849_v13 = vld [vmem:[%s1382_s3 + $0x6c] sm:$0xf]  ;;  %292 = vmatpush.bf16.msra.mxu1 %v739_v24 }
  0x7f   :  { %v24_v14 = vpop.xlane.xlu0 %23 }
  0x80   :  { %v33_v15 = vmul.f32 %v930_v9, %v24_v14  ;;  %v760_v14 = vld [vmem:[%s1382_s3 + $0x78] sm:$0xf0]  ;;  %306 = vmatpush.bf16.msra.mxu2 %v743_v25 }
  0x82   :  { %v938_v16 = vsub.f32 %v871_v2, %v33_v15  ;;  %v750_v2 = vld [vmem:[%s1382_s3 + $0x60] sm:$0xf]  ;;  %v763_v15 = vor.u32 %v849_v13, %v760_v14  ;;  %293 = vmatpush.bf16.msra.mxu1 %v723_v36 }
  0x83   :  { %v751_v5 = vor.u32 %v850_v3, %v750_v2  ;;  %v875_v14 = vld [vmem:[%s1381_s2] ss:$0 sm:$0xff] }
  0x84   :  { %v37_v17 = vmul.f32 %v938_v16, %v938_v16  ;;  %319 = vmatpush.bf16.msra.mxu3 %v763_v15  ;;  %307 = vmatpush.bf16.msra.mxu2 %v727_v37 }
  0x85   :  { %277 = vmatpush.bf16.msra.mxu0 %v751_v5 }
  0x86   :  { %40 = vadd.xlane.f32.xlu1 %v37_v17  ;;  %v734_v17 = vld [vmem:[%s1382_s3 + $0x40] sm:$0xf]  ;;  %294 = vmatpush.bf16.msra.mxu1 %v707_v48 }
  0x87   :  { %v735_v20 = vor.u32 %v846_v18, %v734_v17 }
  0x88   :  { %320 = vmatpush.bf16.msra.mxu3 %v747_v28  ;;  %308 = vmatpush.bf16.msra.mxu2 %v711_v52 }
  0x89   :  { %278 = vmatpush.bf16.msra.mxu0 %v735_v20 }
  0x8c   :  { %321 = vmatpush.bf16.msra.mxu3 %v731_v42 }
  0x8d   :  { %279 = vmatpush.bf16.msra.mxu0 %v719_v32 }
  0x90   :  { %322 = vmatpush.bf16.msra.mxu3 %v715_v55 }
  0x91   :  { %280 = vmatpush.bf16.msra.mxu0 %v703_v47 }
  0xf1   :  { %v39_v41 = vpop.xlane.xlu1 %38 }
  0xf2   :  { %v42_v46 = vmul.f32 %v39_v41, %v930_v9 }
  0xf4   :  { %v44_v54 = vadd.f32 1e-05, %v42_v46 }
  0xf6   :  { %878 = vrsqrt.f32 %v44_v54  ;;  %vm52_vm2 = vweird.f32 %v44_v54 }
  0xf9   :  { %v41_v56 = vpop.xlane.xlu1 %40 }
  0xfa   :  { %v43_v57 = vmul.f32 %v41_v56, %v930_v9 }
  0xfc   :  { %v879_v58 = vpop.eup %878  ;;  %v45_v59 = vadd.f32 1e-05, %v43_v57 }
  0xfd   :  { %v47_v60 = vmul.f32 %v879_v58, %v44_v54  ;;  %vm53_vm1 = vweird.f32 %v879_v58 }
  0xfe   :  { %880 = vrsqrt.f32 %v45_v59  ;;  %vm54_vm3 = vmor %vm52_vm2, %vm53_vm1  ;;  %vm62_vm5 = vweird.f32 %v45_v59 }
  0xff   :  { %v48_v61 = vmul.f32 %v879_v58, %v47_v60 }
 0x101   :  { %v49_v62 = vmul.f32 0.5, %v48_v61 }
 0x103   :  { %v50_v63 = vsub.f32 1.5, %v49_v62 }
 0x104   :  { %v881_v0 = vpop.eup %880 }
 0x105   :  { %v51_v1 = vmul.f32 %v879_v58, %v50_v63  ;;  %v57_v2 = vmul.f32 %v881_v0, %v45_v59  ;;  %vm63_vm4 = vweird.f32 %v881_v0 }
 0x106   :  { %vm64_vm6 = vmor %vm62_vm5, %vm63_vm4 }
 0x107   :  { %v58_v3 = vmul.f32 %v881_v0, %v57_v2  ;;  %v55_v4 = vsel %vm54_vm3, %v879_v58, %v51_v1 }
 0x108   :  { %v66_v9 = vmul.f32 %v55_v4, %v933_v12  ;;  %v901_v12 = vmov 1.41421  }
 0x109   :  { %v59_v5 = vmul.f32 0.5, %v58_v3  ;;  %882 = vrcp.f32 %v901_v12 }
 0x10a   :  { %v72_v13 = vmul.f32 %v874_v7, %v66_v9 }
 0x10b   :  { %v60_v6 = vsub.f32 1.5, %v59_v5 }
 0x10c   :  { %v78_v17 = vadd.f32 %v875_v14, %v72_v13 }
 0x10d   :  { %v61_v8 = vmul.f32 %v881_v0, %v60_v6 }
 0x10f   :  { %v65_v10 = vsel %vm64_vm6, %v881_v0, %v61_v8  ;;  %v883_v20 = vpop.eup %882 }
 0x110   :  { %v67_v11 = vmul.f32 %v65_v10, %v938_v16  ;;  %v338_v21 = vmul.f32 1.41421, %v883_v20  ;;  %vm342_vm7 = vweird.f32 %v883_v20 }
 0x112   :  { %v73_v15 = vmul.f32 %v874_v7, %v67_v11  ;;  %v339_v22 = vsub.f32 1.0, %v338_v21 }
 0x114   :  { %v79_v18 = vadd.f32 %v875_v14, %v73_v15  ;;  %v340_v23 = vmul.f32 %v883_v20, %v339_v22 }
 0x116   :  { %v80_v19 = vpack.c.bf16 %v79_v18, %v78_v17  ;;  %v341_v16 = vadd.f32 %v883_v20, %v340_v23 }
 0x118   :  { %281 = vmatmul.bf16.vlgmr.msra.gmra.mxu0 %v80_v19  ;;  %295 = vmatmul.bf16.vlgmr.msra.gmra.mxu1 %v80_v19  ;;  %v1144_v24 = vsel %vm342_vm7, %v883_v20, %v341_v16 }
 0x119   :  { %309 = vmatmul.bf16.vlgmr.msra.gmra.mxu2 %v80_v19  ;;  %323 = vmatmul.bf16.vlgmr.msra.gmra.mxu3 %v80_v19 }
 0x195   :  { %v1146_v25 = vpop.f32.mrf.mxu0  ;;  %v1148_v26 = vpop.f32.mrf.mxu1 }
 0x196   :  { %v1152_v27 = vmul.f32 %v1144_v24, %v1146_v25  ;;  %v1156_v28 = vmul.f32 %v1144_v24, %v1148_v26 }
 0x198   :  { %v352_v29 = vmul.f32 %v1152_v27, %v1152_v27  ;;  %v392_v30 = vmul.f32 %v1156_v28, %v1156_v28 }
 0x19a   :  { %v353_v31 = vmin.f32 %v352_v29, 16.0  ;;  %v1162_v32 = vmin.f32 %v392_v30, 16.0 }
 0x19c   :  { %v354_v33 = vmul.f32 2.1237322e-06, %v353_v31  ;;  %v365_v34 = vmul.f32 3.8918573e-05, %v353_v31  ;;  %v394_v35 = vmul.f32 2.1237322e-06, %v1162_v32  ;;  %v1165_v36 = vpop.f32.mrf.mxu2  ;;  %v1167_v37 = vpop.f32.mrf.mxu3 }
 0x19d   :  { %v405_v38 = vmul.f32 3.8918573e-05, %v1162_v32  ;;  %v1172_v39 = vmul.f32 %v1144_v24, %v1165_v36  ;;  %v1176_v43 = vmul.f32 %v1144_v24, %v1167_v37  ;;  %v1197_v13 = vpop.f32.mrf.mxu0 }
 0x19e   :  { %v355_v40 = vadd.f32 0.00028619796, %v354_v33  ;;  %v366_v41 = vadd.f32 0.001143296, %v365_v34  ;;  %v395_v42 = vadd.f32 0.00028619796, %v394_v35  ;;  %v1204_v16 = vmul.f32 %v1144_v24, %v1197_v13 }
 0x19f   :  { %v406_v44 = vadd.f32 0.001143296, %v405_v38  ;;  %v432_v45 = vmul.f32 %v1172_v39, %v1172_v39  ;;  %v472_v49 = vmul.f32 %v1176_v43, %v1176_v43 }
 0x1a0   :  { %v356_v46 = vmul.f32 %v355_v40, %v353_v31  ;;  %v367_v47 = vmul.f32 %v366_v41, %v353_v31  ;;  %v396_v48 = vmul.f32 %v395_v42, %v1162_v32  ;;  %v1208_v40 = vpop.f32.mrf.mxu1 }
 0x1a1   :  { %v407_v50 = vmul.f32 %v406_v44, %v1162_v32  ;;  %v1184_v51 = vmin.f32 %v432_v45, 16.0  ;;  %v1189_v61 = vmin.f32 %v472_v49, 16.0  ;;  %v1222_v49 = vmul.f32 %v1144_v24, %v1208_v40 }
 0x1a2   :  { %v357_v52 = vadd.f32 0.0036580483, %v356_v46  ;;  %v368_v53 = vadd.f32 0.014752088, %v367_v47  ;;  %v397_v54 = vadd.f32 0.0036580483, %v396_v48  ;;  %v512_v47 = vmul.f32 %v1204_v16, %v1204_v16 }
 0x1a3   :  { %v408_v55 = vadd.f32 0.014752088, %v407_v50  ;;  %v434_v56 = vmul.f32 2.1237322e-06, %v1184_v51  ;;  %v445_v57 = vmul.f32 3.8918573e-05, %v1184_v51 }
 0x1a4   :  { %v358_v58 = vmul.f32 %v357_v52, %v353_v31  ;;  %v369_v59 = vmul.f32 %v368_v53, %v353_v31  ;;  %v398_v60 = vmul.f32 %v397_v54, %v1162_v32  ;;  %v474_v9 = vmul.f32 2.1237322e-06, %v1189_v61 }
 0x1a5   :  { %v409_v62 = vmul.f32 %v408_v55, %v1162_v32  ;;  %v435_v63 = vadd.f32 0.00028619796, %v434_v56  ;;  %v446_v0 = vadd.f32 0.001143296, %v445_v57  ;;  %v485_v11 = vmul.f32 3.8918573e-05, %v1189_v61 }
 0x1a6   :  { %v359_v1 = vadd.f32 0.05243302, %v358_v58  ;;  %v370_v2 = vadd.f32 0.112945676, %v369_v59  ;;  %v399_v3 = vadd.f32 0.05243302, %v398_v60 }
 0x1a7   :  { %v410_v4 = vadd.f32 0.112945676, %v409_v62  ;;  %v436_v5 = vmul.f32 %v435_v63, %v1184_v51  ;;  %v447_v6 = vmul.f32 %v446_v0, %v1184_v51  ;;  %v475_v18 = vadd.f32 0.00028619796, %v474_v9 }
 0x1a8   :  { %v360_v7 = vmul.f32 %v359_v1, %v353_v31  ;;  %v371_v8 = vmul.f32 %v370_v2, %v353_v31  ;;  %v400_v10 = vmul.f32 %v399_v3, %v1162_v32  ;;  %v486_v33 = vadd.f32 0.001143296, %v485_v11 }
 0x1a9   :  { %v411_v14 = vmul.f32 %v410_v4, %v1162_v32  ;;  %v437_v15 = vadd.f32 0.0036580483, %v436_v5  ;;  %v448_v17 = vadd.f32 0.014752088, %v447_v6  ;;  %v476_v23 = vmul.f32 %v475_v18, %v1189_v61 }
 0x1aa   :  { %v361_v19 = vadd.f32 0.18741608, %v360_v7  ;;  %v372_v12 = vadd.f32 0.4994258, %v371_v8  ;;  %v401_v20 = vadd.f32 0.18741608, %v400_v10  ;;  %v487_v48 = vmul.f32 %v486_v33, %v1189_v61 }
 0x1ab   :  { %v412_v21 = vadd.f32 0.4994258, %v411_v14  ;;  %v449_v22 = vmul.f32 %v448_v17, %v1184_v51  ;;  %v438_v30 = vmul.f32 %v437_v15, %v1184_v51  ;;  %v477_v44 = vadd.f32 0.0036580483, %v476_v23 }
 0x1ac   :  { %v373_v29 = vmul.f32 %v372_v12, %v353_v31  ;;  %v362_v34 = vmul.f32 %v361_v19, %v353_v31  ;;  %v402_v42 = vmul.f32 %v401_v20, %v1162_v32  ;;  %v1228_v52 = vmul.f32 0.5, %v1146_v25 }
 0x1ad   :  { %v413_v35 = vmul.f32 %v412_v21, %v1162_v32  ;;  %v450_v38 = vadd.f32 0.112945676, %v449_v22  ;;  %v439_v31 = vadd.f32 0.05243302, %v438_v30  ;;  %v1225_v32 = vpop.f32.mrf.mxu2  ;;  %v478_v54 = vmul.f32 %v477_v44, %v1189_v61 }
 0x1ae   :  { %v1210_v41 = vadd.f32 1.0, %v373_v29  ;;  %v363_v50 = vadd.f32 1.1283791, %v362_v34  ;;  %v403_v53 = vadd.f32 1.1283791, %v402_v42  ;;  %v1233_v56 = vmul.f32 0.5, %v1148_v26 }
 0x1af   :  { %v1213_v45 = vadd.f32 1.0, %v413_v35  ;;  %v451_v46 = vmul.f32 %v450_v38, %v1184_v51  ;;  %v1235_v58 = vmin.f32 %v512_v47, 16.0  ;;  %v440_v59 = vmul.f32 %v439_v31, %v1184_v51 }
 0x1b0   :  { %884 = vrcp.f32 %v1210_v41  ;;  %v384_v55 = vand.u32 2147483647, %v1210_v41  ;;  %v488_v60 = vadd.f32 0.014752088, %v487_v48  ;;  %v552_v62 = vmul.f32 %v1222_v49, %v1222_v49 }
 0x1b1   :  { %886 = vrcp.f32 %v1213_v45  ;;  %v452_v57 = vadd.f32 0.4994258, %v451_v46  ;;  %v1242_v25 = vmul.f32 %v1144_v24, %v1225_v32  ;;  %v364_v63 = vmul.f32 %v363_v50, %v1152_v27 }
 0x1b2   :  { %vm380_vm8 = vweird.f32 %v1210_v41  ;;  %v386_v26 = vand.u32 2147483648, %v1210_v41  ;;  %v404_v2 = vmul.f32 %v403_v53, %v1156_v28  ;;  %vm420_vm9 = vweird.f32 %v1213_v45 }
 0x1b3   :  { %v453_v0 = vmul.f32 %v452_v57, %v1184_v51  ;;  %v479_v3 = vadd.f32 0.05243302, %v478_v54  ;;  %v489_v4 = vmul.f32 %v488_v60, %v1189_v61  ;;  %vm1252_vm10 = vcmp.eq.f32.partialorder %v384_v55, 8.507059e+37 }
 0x1b4   :  { %v514_v7 = vmul.f32 2.1237322e-06, %v1235_v58  ;;  %v525_v8 = vmul.f32 3.8918573e-05, %v1235_v58  ;;  %v424_v10 = vand.u32 2147483647, %v1213_v45 }
 0x1b5   :  { %v1256_v27 = vadd.f32 1.0, %v453_v0  ;;  %v490_v11 = vadd.f32 0.112945676, %v489_v4  ;;  %v1262_v14 = vmin.f32 %v552_v62, 16.0  ;;  %v426_v17 = vand.u32 2147483648, %v1213_v45 }
 0x1b6   :  { %v885_v1 = vpop.eup %884  ;;  %v441_v18 = vadd.f32 0.18741608, %v440_v59  ;;  %v387_v19 = vor.u32 1.1754944e-38, %v386_v26  ;;  %v480_v20 = vmul.f32 %v479_v3, %v1189_v61  ;;  %v515_v23 = vadd.f32 0.00028619796, %v514_v7 }
 0x1b7   :  { %v887_v5 = vpop.eup %886  ;;  %v376_v6 = vmul.f32 %v885_v1, %v1210_v41  ;;  %888 = vrcp.f32 %v1256_v27  ;;  %v491_v21 = vmul.f32 %v490_v11, %v1189_v61  ;;  %vm381_vm11 = vweird.f32 %v885_v1 }
 0x1b8   :  { %v416_v28 = vmul.f32 %v887_v5, %v1213_v45  ;;  %v526_v29 = vadd.f32 0.001143296, %v525_v8  ;;  %vm421_vm12 = vweird.f32 %v887_v5  ;;  %v554_v34 = vmul.f32 2.1237322e-06, %v1262_v14  ;;  %vm382_vm14 = vmor %vm380_vm8, %vm381_vm11 }
 0x1b9   :  { %v377_v15 = vsub.f32 1.0, %v376_v6  ;;  %v492_v33 = vadd.f32 0.4994258, %v491_v21  ;;  %vm1269_vm13 = vcmp.eq.f32.partialorder %v424_v10, 8.507059e+37  ;;  %v516_v42 = vmul.f32 %v515_v23, %v1235_v58  ;;  %vm422_vm15 = vmor %vm420_vm9, %vm421_vm12 }
 0x1ba   :  { %v417_v12 = vsub.f32 1.0, %v416_v28  ;;  %v527_v44 = vmul.f32 %v526_v29, %v1235_v58  ;;  %v427_v47 = vor.u32 1.1754944e-38, %v426_v17  ;;  %v442_v31 = vmul.f32 %v441_v18, %v1184_v51 }
 0x1bb   :  { %v378_v22 = vmul.f32 %v885_v1, %v377_v15  ;;  %v493_v48 = vmul.f32 %v492_v33, %v1189_v61  ;;  %v481_v54 = vadd.f32 0.18741608, %v480_v20  ;;  %v565_v57 = vmul.f32 3.8918573e-05, %v1262_v14 }
 0x1bc   :  { %v418_v30 = vmul.f32 %v887_v5, %v417_v12  ;;  %v528_v55 = vadd.f32 0.014752088, %v527_v44  ;;  %v555_v62 = vadd.f32 0.00028619796, %v554_v34  ;;  %v464_v4 = vand.u32 2147483647, %v1256_v27 }
 0x1bd   :  { %v379_v35 = vadd.f32 %v885_v1, %v378_v22  ;;  %v889_v50 = vpop.eup %888  ;;  %v1287_v0 = vadd.f32 1.0, %v493_v48  ;;  %v466_v9 = vand.u32 2147483648, %v1256_v27  ;;  %v443_v11 = vadd.f32 1.1283791, %v442_v31  ;;  %v1306_v31 = vpop.f32.mrf.mxu3 }
 0x1be   :  { %v419_v46 = vadd.f32 %v887_v5, %v418_v30  ;;  %v456_v60 = vmul.f32 %v889_v50, %v1256_v27  ;;  %v529_v6 = vmul.f32 %v528_v55, %v1235_v58  ;;  %vm461_vm0 = vweird.f32 %v889_v50 }
 0x1bf   :  { %v383_v53 = vsel %vm382_vm14, %v885_v1, %v379_v35  ;;  %v517_v1 = vadd.f32 0.0036580483, %v516_v42  ;;  %890 = vrcp.f32 %v1287_v0  ;;  %v556_v28 = vmul.f32 %v555_v62, %v1262_v14 }
 0x1c0   :  { %v388_v59 = vsel %vm1252_vm10, %v387_v19, %v383_v53  ;;  %v423_v41 = vsel %vm422_vm15, %v887_v5, %v419_v46  ;;  %v457_v3 = vsub.f32 1.0, %v456_v60  ;;  %v566_v5 = vadd.f32 0.001143296, %v565_v57 }
 0x1c1   :  { %v389_v26 = vmul.f32 %v388_v59, %v364_v63  ;;  %v428_v51 = vsel %vm1269_vm13, %v427_v47, %v423_v41  ;;  %v530_v15 = vadd.f32 0.112945676, %v529_v6  ;;  %vm460_vm1 = vweird.f32 %v1256_v27 }
 0x1c2   :  { %v429_v45 = vmul.f32 %v428_v51, %v404_v2  ;;  %v458_v63 = vmul.f32 %v889_v50, %v457_v3  ;;  %v518_v2 = vmul.f32 %v517_v1, %v1235_v58  ;;  %v482_v19 = vmul.f32 %v481_v54, %v1189_v61  ;;  %vm462_vm2 = vmor %vm460_vm1, %vm461_vm0 }
 0x1c3   :  { %v828_v7 = vclamps-f32 %v389_v26, 1.0  ;;  %v467_v20 = vor.u32 1.1754944e-38, %v466_v9  ;;  %v531_v21 = vmul.f32 %v530_v15, %v1235_v58  ;;  %v567_v22 = vmul.f32 %v566_v5, %v1262_v14 }
 0x1c4   :  { %v829_v8 = vclamps-f32 %v429_v45, 1.0  ;;  %v459_v18 = vadd.f32 %v889_v50, %v458_v63  ;;  %vm465_vm3 = vcmp.eq.f32.partialorder %v464_v4, 8.507059e+37  ;;  %v557_v30 = vadd.f32 0.0036580483, %v556_v28 }
 0x1c5   :  { %v672_v10 = vadd.f32 1.0, %v828_v7  ;;  %v891_v33 = vpop.eup %890  ;;  %v519_v35 = vadd.f32 0.05243302, %v518_v2  ;;  %v532_v38 = vadd.f32 0.4994258, %v531_v21  ;;  %v444_v61 = vmul.f32 %v443_v11, %v1172_v39 }
 0x1c6   :  { %v673_v17 = vadd.f32 1.0, %v829_v8  ;;  %v463_v29 = vsel %vm462_vm2, %v889_v50, %v459_v18  ;;  %v568_v27 = vadd.f32 0.014752088, %v567_v22  ;;  %v483_v44 = vadd.f32 1.1283791, %v482_v19 }
 0x1c7   :  { %v680_v12 = vmul.f32 %v672_v10, %v1228_v52  ;;  %v468_v34 = vsel %vm465_vm3, %v467_v20, %v463_v29  ;;  %v496_v52 = vmul.f32 %v891_v33, %v1287_v0  ;;  %v504_v46 = vand.u32 2147483647, %v1287_v0 }
 0x1c8   :  { %v681_v23 = vmul.f32 %v673_v17, %v1233_v56  ;;  %v533_v47 = vmul.f32 %v532_v38, %v1235_v58  ;;  %v569_v56 = vmul.f32 %v568_v27, %v1262_v14  ;;  %v469_v48 = vmul.f32 %v468_v34, %v444_v61 }
 0x1c9   :  { %v497_v50 = vsub.f32 1.0, %v496_v52  ;;  %v506_v53 = vand.u32 2147483648, %v1287_v0  ;;  %v592_v39 = vmul.f32 %v1242_v25, %v1242_v25  ;;  %v520_v54 = vmul.f32 %v519_v35, %v1235_v58 }
 0x1ca   :  { %v688_v42 = vpack.c.bf16 %v681_v23, %v680_v12  ;;  %v1315_v55 = vadd.f32 1.0, %v533_v47  ;;  %v558_v57 = vmul.f32 %v557_v30, %v1262_v14  ;;  %v570_v59 = vadd.f32 0.112945676, %v569_v56 }
 0x1cb   :  { %v498_v41 = vmul.f32 %v891_v33, %v497_v50  ;;  %vm501_vm4 = vweird.f32 %v891_v33  ;;  %v1318_v60 = vmin.f32 %v592_v39, 16.0  ;;  %v1322_v62 = vmul.f32 %v1144_v24, %v1306_v31 }
 0x1cc   :  { %692 = vst [vmem:[%s1383_s4] sm:$0xff] %v688_v42  ;;  %v484_v26 = vmul.f32 %v483_v44, %v1176_v43  ;;  %892 = vrcp.f32 %v1315_v55  ;;  %v830_v51 = vclamps-f32 %v469_v48, 1.0  ;;  %vm500_vm5 = vweird.f32 %v1287_v0 }
 0x1cd   :  { %v499_v1 = vadd.f32 %v891_v33, %v498_v41  ;;  %vm505_vm6 = vcmp.eq.f32.partialorder %v504_v46, 8.507059e+37  ;;  %vm502_vm7 = vmor %vm500_vm5, %vm501_vm4  ;;  %v507_v45 = vor.u32 1.1754944e-38, %v506_v53  ;;  %v571_v3 = vmul.f32 %v570_v59, %v1262_v14 }
 0x1ce   :  { %v594_v4 = vmul.f32 2.1237322e-06, %v1318_v60  ;;  %v605_v6 = vmul.f32 3.8918573e-05, %v1318_v60  ;;  %v521_v24 = vadd.f32 0.18741608, %v520_v54  ;;  %v632_v43 = vmul.f32 %v1322_v62, %v1322_v62 }
 0x1cf   :  { %v503_v7 = vsel %vm502_vm7, %v891_v33, %v499_v1  ;;  %v559_v9 = vadd.f32 0.05243302, %v558_v57  ;;  %v572_v8 = vadd.f32 0.4994258, %v571_v3  ;;  %v331_v0 = vmul.f32 0.5, %v1165_v36 }
 0x1d0   :  { %v508_v5 = vsel %vm505_vm6, %v507_v45, %v503_v7  ;;  %v595_v63 = vadd.f32 0.00028619796, %v594_v4  ;;  %v606_v28 = vadd.f32 0.001143296, %v605_v6  ;;  %v674_v10 = vadd.f32 1.0, %v830_v51 }
 0x1d1   :  { %v509_v11 = vmul.f32 %v508_v5, %v484_v26  ;;  %v1333_v2 = vmin.f32 %v632_v43, 16.0  ;;  %v332_v17 = vmul.f32 0.5, %v1167_v37  ;;  %v573_v18 = vmul.f32 %v572_v8, %v1262_v14 }
 0x1d2   :  { %v893_v15 = vpop.eup %892  ;;  %v596_v19 = vmul.f32 %v595_v63, %v1318_v60  ;;  %v607_v12 = vmul.f32 %v606_v28, %v1318_v60  ;;  %v560_v22 = vmul.f32 %v559_v9, %v1262_v14  ;;  %v522_v23 = vmul.f32 %v521_v24, %v1235_v58 }
 0x1d3   :  { %v831_v20 = vclamps-f32 %v509_v11, 1.0  ;;  %v536_v21 = vmul.f32 %v893_v15, %v1315_v55  ;;  %v634_v36 = vmul.f32 2.1237322e-06, %v1333_v2  ;;  %v544_v29 = vand.u32 2147483647, %v1315_v55 }
 0x1d4   :  { %v574_v30 = vadd.f32 1.0, %v573_v18  ;;  %v608_v33 = vadd.f32 0.014752088, %v607_v12  ;;  %v682_v37 = vmul.f32 %v674_v10, %v331_v0  ;;  %v645_v38 = vmul.f32 3.8918573e-05, %v1333_v2 }
 0x1d5   :  { %v675_v34 = vadd.f32 1.0, %v831_v20  ;;  %v537_v35 = vsub.f32 1.0, %v536_v21  ;;  %v546_v27 = vand.u32 2147483648, %v1315_v55  ;;  %v597_v42 = vadd.f32 0.0036580483, %v596_v19 }
 0x1d6   :  { %894 = vrcp.f32 %v574_v30  ;;  %v635_v61 = vadd.f32 0.00028619796, %v634_v36  ;;  %vm541_vm8 = vweird.f32 %v893_v15  ;;  %v609_v46 = vmul.f32 %v608_v33, %v1318_v60 }
 0x1d7   :  { %v683_v52 = vmul.f32 %v675_v34, %v332_v17  ;;  %v538_v44 = vmul.f32 %v893_v15, %v537_v35  ;;  %v523_v58 = vadd.f32 1.1283791, %v522_v23  ;;  %v561_v47 = vadd.f32 0.18741608, %v560_v22 }
 0x1d8   :  { %v646_v56 = vadd.f32 0.001143296, %v645_v38  ;;  %vm540_vm9 = vweird.f32 %v1315_v55  ;;  %v610_v53 = vadd.f32 0.112945676, %v609_v46  ;;  %v547_v39 = vor.u32 1.1754944e-38, %v546_v27 }
 0x1d9   :  { %v689_v48 = vpack.c.bf16 %v683_v52, %v682_v37  ;;  %v539_v50 = vadd.f32 %v893_v15, %v538_v44  ;;  %vm542_vm10 = vmor %vm540_vm9, %vm541_vm8  ;;  %v598_v54 = vmul.f32 %v597_v42, %v1318_v60  ;;  %v636_v57 = vmul.f32 %v635_v61, %v1333_v2 }
 0x1da   :  { %v647_v59 = vmul.f32 %v646_v56, %v1333_v2  ;;  %vm545_vm11 = vcmp.eq.f32.partialorder %v544_v29, 8.507059e+37  ;;  %v611_v26 = vmul.f32 %v610_v53, %v1318_v60  ;;  %v524_v45 = vmul.f32 %v523_v58, %v1204_v16 }
 0x1db   :  { %693 = vst [vmem:[%s1383_s4 + $0x8] sm:$0xff] %v689_v48  ;;  %v543_v41 = vsel %vm542_vm10, %v893_v15, %v539_v50  ;;  %v562_v3 = vmul.f32 %v561_v47, %v1262_v14  ;;  %v599_v6 = vadd.f32 0.05243302, %v598_v54  ;;  %v637_v24 = vadd.f32 0.0036580483, %v636_v57 }
 0x1dc   :  { %v895_v51 = vpop.eup %894  ;;  %v548_v1 = vsel %vm545_vm11, %v547_v39, %v543_v41  ;;  %v648_v55 = vadd.f32 0.014752088, %v647_v59  ;;  %v612_v7 = vadd.f32 0.4994258, %v611_v26  ;;  %v586_v8 = vand.u32 2147483648, %v574_v30 }
 0x1dd   :  { %v576_v4 = vmul.f32 %v895_v51, %v574_v30  ;;  %v549_v43 = vmul.f32 %v548_v1, %v524_v45  ;;  %v563_v0 = vadd.f32 1.1283791, %v562_v3  ;;  %vm581_vm12 = vweird.f32 %v895_v51 }
 0x1de   :  { %v649_v9 = vmul.f32 %v648_v55, %v1333_v2  ;;  %v613_v63 = vmul.f32 %v612_v7, %v1318_v60  ;;  %v584_v11 = vand.u32 2147483647, %v574_v30  ;;  %v600_v16 = vmul.f32 %v599_v6, %v1318_v60 }
 0x1df   :  { %v577_v5 = vsub.f32 1.0, %v576_v4  ;;  %v638_v14 = vmul.f32 %v637_v24, %v1333_v2  ;;  %v832_v18 = vclamps-f32 %v549_v43, 1.0  ;;  %vm580_vm13 = vweird.f32 %v574_v30 }
 0x1e0   :  { %v650_v28 = vadd.f32 0.112945676, %v649_v9  ;;  %v614_v15 = vadd.f32 1.0, %v613_v63  ;;  %vm582_vm14 = vmor %vm580_vm13, %vm581_vm12  ;;  %v587_v12 = vor.u32 1.1754944e-38, %v586_v8  ;;  %v564_v20 = vmul.f32 %v563_v0, %v1222_v49 }
 0x1e1   :  { %v578_v10 = vmul.f32 %v895_v51, %v577_v5  ;;  %vm585_vm15 = vcmp.eq.f32.partialorder %v584_v11, 8.507059e+37  ;;  %v601_v23 = vadd.f32 0.18741608, %v600_v16  ;;  %v639_v29 = vadd.f32 0.05243302, %v638_v14 }
 0x1e2   :  { %v651_v17 = vmul.f32 %v650_v28, %v1333_v2  ;;  %896 = vrcp.f32 %v614_v15  ;;  %v676_v33 = vadd.f32 1.0, %v832_v18  ;;  %v333_v35 = vmul.f32 0.5, %v1197_v13 }
 0x1e3   :  { %v579_v19 = vadd.f32 %v895_v51, %v578_v10  ;;  %v334_v42 = vmul.f32 0.5, %v1208_v40  ;;  %v602_v61 = vmul.f32 %v601_v23, %v1318_v60  ;;  %v640_v49 = vmul.f32 %v639_v29, %v1333_v2 }
 0x1e4   :  { %v652_v22 = vadd.f32 0.4994258, %v651_v17  ;;  %v684_v52 = vmul.f32 %v676_v33, %v333_v35  ;;  %v626_v48 = vand.u32 2147483648, %v614_v15  ;;  %v624_v39 = vand.u32 2147483647, %v614_v15 }
 0x1e5   :  { %v583_v21 = vsel %vm582_vm14, %v895_v51, %v579_v19  ;;  %v603_v56 = vadd.f32 1.1283791, %v602_v61  ;;  %v641_v50 = vadd.f32 0.18741608, %v640_v49  ;;  %vm620_vm1 = vweird.f32 %v614_v15 }
 0x1e6   :  { %v588_v36 = vsel %vm585_vm15, %v587_v12, %v583_v21  ;;  %v653_v34 = vmul.f32 %v652_v22, %v1333_v2  ;;  %v627_v60 = vor.u32 1.1754944e-38, %v626_v48  ;;  %vm625_vm3 = vcmp.eq.f32.partialorder %v624_v39, 8.507059e+37 }
 0x1e7   :  { %v589_v37 = vmul.f32 %v588_v36, %v564_v20  ;;  %v642_v57 = vmul.f32 %v641_v50, %v1333_v2  ;;  %v604_v41 = vmul.f32 %v603_v56, %v1242_v25  ;;  %v335_v63 = vmul.f32 0.5, %v1225_v32 }
 0x1e8   :  { %v654_v27 = vadd.f32 1.0, %v653_v34  ;;  %v897_v30 = vpop.eup %896  ;;  %v336_v10 = vmul.f32 0.5, %v1306_v31 }
 0x1e9   :  { %v833_v38 = vclamps-f32 %v589_v37, 1.0  ;;  %v616_v46 = vmul.f32 %v897_v30, %v614_v15  ;;  %vm621_vm0 = vweird.f32 %v897_v30  ;;  %v643_v3 = vadd.f32 1.1283791, %v642_v57 }
 0x1ea   :  { %898 = vrcp.f32 %v654_v27  ;;  %vm622_vm2 = vmor %vm620_vm1, %vm621_vm0  ;;  %v666_v45 = vand.u32 2147483648, %v654_v27  ;;  %v664_v6 = vand.u32 2147483647, %v654_v27  ;;  %vm660_vm5 = vweird.f32 %v654_v27 }
 0x1eb   :  { %v677_v44 = vadd.f32 1.0, %v833_v38  ;;  %v617_v47 = vsub.f32 1.0, %v616_v46  ;;  %v644_v2 = vmul.f32 %v643_v3, %v1322_v62 }
 0x1ec   :  { %v667_v9 = vor.u32 1.1754944e-38, %v666_v45  ;;  %vm665_vm7 = vcmp.eq.f32.partialorder %v664_v6, 8.507059e+37 }
 0x1ed   :  { %v685_v58 = vmul.f32 %v677_v44, %v334_v42  ;;  %v618_v13 = vmul.f32 %v897_v30, %v617_v47 }
 0x1ef   :  { %v690_v53 = vpack.c.bf16 %v685_v58, %v684_v52  ;;  %v619_v40 = vadd.f32 %v897_v30, %v618_v13 }
 0x1f0   :  { %v899_v54 = vpop.eup %898 }
 0x1f1   :  { %694 = vst [vmem:[%s1383_s4 + $0x10] sm:$0xff] %v690_v53  ;;  %v656_v59 = vmul.f32 %v899_v54, %v654_v27  ;;  %v623_v26 = vsel %vm622_vm2, %v897_v30, %v619_v40  ;;  %vm661_vm4 = vweird.f32 %v899_v54 }
 0x1f2   :  { %v628_v51 = vsel %vm625_vm3, %v627_v60, %v623_v26  ;;  %vm662_vm6 = vmor %vm660_vm5, %vm661_vm4 }
 0x1f3   :  { %v657_v1 = vsub.f32 1.0, %v656_v59  ;;  %v629_v55 = vmul.f32 %v628_v51, %v604_v41 }
 0x1f5   :  { %v658_v4 = vmul.f32 %v899_v54, %v657_v1  ;;  %v834_v7 = vclamps-f32 %v629_v55, 1.0 }
 0x1f7   :  { %v659_v24 = vadd.f32 %v899_v54, %v658_v4  ;;  %v678_v5 = vadd.f32 1.0, %v834_v7 }
 0x1f9   :  { %v663_v43 = vsel %vm662_vm6, %v899_v54, %v659_v24  ;;  %v686_v0 = vmul.f32 %v678_v5, %v335_v63 }
 0x1fa   :  { %v668_v25 = vsel %vm665_vm7, %v667_v9, %v663_v43 }
 0x1fb   :  { %v669_v8 = vmul.f32 %v668_v25, %v644_v2 }
 0x1fd   :  { %v835_v28 = vclamps-f32 %v669_v8, 1.0 }
 0x1ff   :  { %v679_v11 = vadd.f32 1.0, %v835_v28 }
 0x201   :  { %v687_v16 = vmul.f32 %v679_v11, %v336_v10 }
 0x203   :  { %v691_v15 = vpack.c.bf16 %v687_v16, %v686_v0 }
 0x205   :  { %695 = vst [vmem:[%s1383_s4 + $0x18] sm:$0xff] %v691_v15 }

// kernel: cramming_transformer.21
= control target key start
LH: loop header
LB: loop body
LE: loop exit
PB: predicated region body
PF: predicated region fallthrough
CT: control target
= control target key end

     0   :  { %s357_s9 = smov 0   ;;  %s359_s10 = smov 0   ;;  %s381_s0 = inlined_call_operand.vmem [shape: bf16[2,8,128], index: 0, kind: input, shape index: {}]   ;;  %s382_s1 = inlined_call_operand.vmem [shape: bf16[8,128], index: 1, kind: input, shape index: {}]   ;;  %s383_s2 = inlined_call_operand.vmem [shape: bf16[2,8,128], index: 2, kind: output, shape index: {}]  }
   0x1   :  { %s361_s11 = smov 0  }
   0x2 LB: > { %s24_s12 = sadd.s32 1, %s336_s10  ;;  %p289_p0 = scmp.ge.s32.totalorder %s340_s11, 1  ;;  %s340_s11 = sphi %s361_s11, %s12_s11   ;;  %s336_s10 = sphi %s359_s10, %s385_s10   ;;  %s332_s9 = sphi %s357_s9, %s384_s9  }
   0x3   : > { %p26_p1 = scmp.ge.s32.totalorder %s24_s12, 2  ;;  %p139_p2 = scmp.lt.s32.totalorder %s340_s11, 3 }
   0x5   : > { %s387_s12 = smov (%p26_p1, %s24_s12), 0  ;;  %p140_p3 = pnand %p289_p0, %p139_p2 }
   0x6   : > { %p169_p4 = scmp.lt.s32.totalorder (!%p140_p3), %s332_s9, 1 }
   0x7   : > { %143 = sbr.rel (%p140_p3) target bundleno = 23 (0x17), region = 28 }
   0xc   : > { %s389_s9 = smov (!%p169_p4, %s332_s9), 1  ;;  %v189_v0 = vld [vmem:[%s382_s1] sm:$0xf] }
   0xd   : > { %s290_s15 = sshll.u32 %s389_s9, 2  ;;  %v190_v1 = vunpack.c.l.bf16 %v189_v0 }
   0xe   : > { %s175_s18 = scalar_lea.vmem %s381_s0, %s290_s15  ;;  %s186_s21 = scalar_lea.vmem %s383_s2, %s290_s15 }
   0xf   : > { %v187_v2 = vld [vmem:[%s175_s18] sm:$0xf] }
  0x10   : > { %v188_v3 = vunpack.c.l.bf16 %v187_v2 }
  0x12   : > { %v191_v4 = vadd.f32 %v190_v1, %v188_v3 }
  0x14   : > { %v192_v5 = vpack.c.bf16 %v191_v4, %v191_v4 }
  0x16   : > { %193 = vst [vmem:[%s186_s21] sm:$0xf] %v192_v5 }
  0x17 PF: > { %s12_s11 = sadd.s32 1, %s340_s11   ;;  %s384_s9 = smov %s336_s10 }
  0x18   : > { %p9_p5 = scmp.ge.s32.totalorder %s12_s11, 4   ;;  %s385_s10 = smov %s387_s12 }
  0x1a   :  { %11 = sbr.rel (!%p9_p5) target bundleno = 2 (0x2), region = 61 }

// kernel: cramming_transformer.25
= control target key start
LH: loop header
LB: loop body
LE: loop exit
PB: predicated region body
PF: predicated region fallthrough
CT: control target
= control target key end

     0   :  { %v391_v2 = vmov 128.0   ;;  %s585_s0 = inlined_call_operand.vmem [shape: bf16[2,8,128], index: 0, kind: input, shape index: {}]   ;;  %s586_s3 = inlined_call_operand.vmem [shape: bf16[128,384], index: 3, kind: input, shape index: {}]   ;;  %s587_s1 = inlined_call_operand.vmem [shape: f32[1,128], index: 1, kind: input, shape index: {}]   ;;  %s588_s2 = inlined_call_operand.vmem [shape: f32[1,128], index: 2, kind: input, shape index: {}]   ;;  %s589_s4 = inlined_call_operand.vmem [shape: bf16[8,384], index: 4, kind: output, shape index: {}]  }
   0x1   :  { %v17_v0 = vld [vmem:[%s585_s0] sm:$0xf]  ;;  %387 = vrcp.f32 %v391_v2  ;;  %v350_v3 = vld [vmem:[%s586_s3 + $0xa8] sm:$0xf]  ;;  %v382_v4 = vld [vmem:[%s586_s3 + $0xb0] sm:$0xf0] }
   0x2   :  { %v18_v1 = vunpack.c.l.bf16 %v17_v0  ;;  %v381_v5 = vld [vmem:[%s586_s3 + $0xac] sm:$0xf]  ;;  %v351_v6 = vor.u32 %v382_v4, %v350_v3  ;;  %v352_v7 = vld [vmem:[%s586_s3 + $0xb4] sm:$0xf0]  ;;  %v358_v8 = vld [vmem:[%s586_s3 + $0xb0] sm:$0xf] }
   0x3   :  { %v383_v9 = vld [vmem:[%s586_s3 + $0xb8] sm:$0xf0]  ;;  %v355_v10 = vor.u32 %v381_v5, %v352_v7  ;;  %v338_v22 = vld [vmem:[%s586_s3 + $0x90] sm:$0xf]  ;;  %v378_v24 = vld [vmem:[%s586_s3 + $0x94] sm:$0xf] }
   0x4   :  { %19 = vadd.xlane.f32.xlu0 %v18_v1  ;;  %v359_v11 = vor.u32 %v383_v9, %v358_v8  ;;  %217 = vmatpush.bf16.msra.mxu0 %v351_v6  ;;  %v379_v23 = vld [vmem:[%s586_s3 + $0x98] sm:$0xf0]  ;;  %v340_v26 = vld [vmem:[%s586_s3 + $0x9c] sm:$0xf0]  ;;  %v346_v27 = vld [vmem:[%s586_s3 + $0x98] sm:$0xf] }
   0x5   :  { %230 = vmatpush.bf16.msra.mxu1 %v355_v10  ;;  %v339_v25 = vor.u32 %v379_v23, %v338_v22  ;;  %v380_v28 = vld [vmem:[%s586_s3 + $0xa0] sm:$0xf0]  ;;  %v343_v29 = vor.u32 %v378_v24, %v340_v26  ;;  %v326_v31 = vld [vmem:[%s586_s3 + $0x78] sm:$0xf]  ;;  %v375_v33 = vld [vmem:[%s586_s3 + $0x7c] sm:$0xf] }
   0x6   :  { %243 = vmatpush.bf16.msra.mxu2 %v359_v11  ;;  %v347_v30 = vor.u32 %v380_v28, %v346_v27  ;;  %v376_v32 = vld [vmem:[%s586_s3 + $0x80] sm:$0xf0]  ;;  %v328_v35 = vld [vmem:[%s586_s3 + $0x84] sm:$0xf0]  ;;  %v334_v36 = vld [vmem:[%s586_s3 + $0x80] sm:$0xf] }
   0x7   :  { %v388_v12 = vpop.eup %387  ;;  %v327_v34 = vor.u32 %v376_v32, %v326_v31  ;;  %v377_v37 = vld [vmem:[%s586_s3 + $0x88] sm:$0xf0]  ;;  %v331_v38 = vor.u32 %v375_v33, %v328_v35  ;;  %v314_v40 = vld [vmem:[%s586_s3 + $0x60] sm:$0xf]  ;;  %v372_v42 = vld [vmem:[%s586_s3 + $0x64] sm:$0xf] }
   0x8   :  { %v22_v13 = vmul.f32 128.0, %v388_v12  ;;  %vm26_vm0 = vweird.f32 %v388_v12  ;;  %218 = vmatpush.bf16.msra.mxu0 %v339_v25  ;;  %v335_v39 = vor.u32 %v377_v37, %v334_v36  ;;  %v373_v41 = vld [vmem:[%s586_s3 + $0x68] sm:$0xf0]  ;;  %v316_v44 = vld [vmem:[%s586_s3 + $0x6c] sm:$0xf0] }
   0x9   :  { %231 = vmatpush.bf16.msra.mxu1 %v343_v29  ;;  %v315_v43 = vor.u32 %v373_v41, %v314_v40  ;;  %v322_v45 = vld [vmem:[%s586_s3 + $0x68] sm:$0xf]  ;;  %v374_v46 = vld [vmem:[%s586_s3 + $0x70] sm:$0xf0]  ;;  %v319_v47 = vor.u32 %v372_v42, %v316_v44  ;;  %v369_v51 = vld [vmem:[%s586_s3 + $0x4c] sm:$0xf] }
   0xa   :  { %v23_v14 = vsub.f32 1.0, %v22_v13  ;;  %244 = vmatpush.bf16.msra.mxu2 %v347_v30  ;;  %v323_v48 = vor.u32 %v374_v46, %v322_v45  ;;  %v302_v49 = vld [vmem:[%s586_s3 + $0x48] sm:$0xf]  ;;  %v370_v50 = vld [vmem:[%s586_s3 + $0x50] sm:$0xf0] }
   0xb   :  { %v303_v52 = vor.u32 %v370_v50, %v302_v49  ;;  %v304_v53 = vld [vmem:[%s586_s3 + $0x54] sm:$0xf0]  ;;  %v310_v54 = vld [vmem:[%s586_s3 + $0x50] sm:$0xf]  ;;  %v371_v55 = vld [vmem:[%s586_s3 + $0x58] sm:$0xf0] }
   0xc   :  { %v24_v15 = vmul.f32 %v388_v12, %v23_v14  ;;  %219 = vmatpush.bf16.msra.mxu0 %v327_v34  ;;  %v307_v56 = vor.u32 %v369_v51, %v304_v53  ;;  %v311_v57 = vor.u32 %v371_v55, %v310_v54  ;;  %v290_v58 = vld [vmem:[%s586_s3 + $0x30] sm:$0xf]  ;;  %v367_v59 = vld [vmem:[%s586_s3 + $0x38] sm:$0xf0]  ;;  %v366_v60 = vld [vmem:[%s586_s3 + $0x34] sm:$0xf] }
   0xd   :  { %232 = vmatpush.bf16.msra.mxu1 %v331_v38  ;;  %v291_v61 = vor.u32 %v367_v59, %v290_v58  ;;  %v292_v62 = vld [vmem:[%s586_s3 + $0x3c] sm:$0xf0]  ;;  %v298_v63 = vld [vmem:[%s586_s3 + $0x38] sm:$0xf]  ;;  %v368_v0 = vld [vmem:[%s586_s3 + $0x40] sm:$0xf0] }
   0xe   :  { %v25_v16 = vadd.f32 %v388_v12, %v24_v15  ;;  %245 = vmatpush.bf16.msra.mxu2 %v335_v39  ;;  %v299_v2 = vor.u32 %v368_v0, %v298_v63  ;;  %v278_v3 = vld [vmem:[%s586_s3 + $0x18] sm:$0xf]  ;;  %v364_v4 = vld [vmem:[%s586_s3 + $0x20] sm:$0xf0]  ;;  %v363_v5 = vld [vmem:[%s586_s3 + $0x1c] sm:$0xf] }
   0xf   :  { %v279_v6 = vor.u32 %v364_v4, %v278_v3  ;;  %v280_v7 = vld [vmem:[%s586_s3 + $0x24] sm:$0xf0]  ;;  %v286_v8 = vld [vmem:[%s586_s3 + $0x20] sm:$0xf]  ;;  %v365_v9 = vld [vmem:[%s586_s3 + $0x28] sm:$0xf0] }
  0x10   :  { %v438_v17 = vsel %vm26_vm0, %v388_v12, %v25_v16  ;;  %220 = vmatpush.bf16.msra.mxu0 %v315_v43  ;;  %v283_v10 = vor.u32 %v363_v5, %v280_v7  ;;  %v287_v11 = vor.u32 %v365_v9, %v286_v8  ;;  %v266_v12 = vld [vmem:[%s586_s3] sm:$0xf]  ;;  %v361_v13 = vld [vmem:[%s586_s3 + $0x8] sm:$0xf0]  ;;  %v360_v14 = vld [vmem:[%s586_s3 + $0x4] sm:$0xf] }
  0x11   :  { %233 = vmatpush.bf16.msra.mxu1 %v319_v47  ;;  %v267_v15 = vor.u32 %v361_v13, %v266_v12  ;;  %v268_v16 = vld [vmem:[%s586_s3 + $0xc] sm:$0xf0]  ;;  %v385_v32 = vld [vmem:[%s587_s1] ss:$0 sm:$0xff] }
  0x12   :  { %246 = vmatpush.bf16.msra.mxu2 %v323_v48 }
  0x14   :  { %221 = vmatpush.bf16.msra.mxu0 %v303_v52 }
  0x15   :  { %234 = vmatpush.bf16.msra.mxu1 %v307_v56 }
  0x16   :  { %247 = vmatpush.bf16.msra.mxu2 %v311_v57 }
  0x18   :  { %222 = vmatpush.bf16.msra.mxu0 %v291_v61 }
  0x1a   :  { %248 = vmatpush.bf16.msra.mxu2 %v299_v2 }
  0x1c   :  { %223 = vmatpush.bf16.msra.mxu0 %v279_v6 }
  0x1e   :  { %249 = vmatpush.bf16.msra.mxu2 %v287_v11 }
  0x20   :  { %224 = vmatpush.bf16.msra.mxu0 %v267_v15 }
  0x77   :  { %v20_v18 = vpop.xlane.xlu0 %19 }
  0x78   :  { %v28_v19 = vmul.f32 %v438_v17, %v20_v18  ;;  %v274_v18 = vld [vmem:[%s586_s3 + $0x8] sm:$0xf] }
  0x7a   :  { %v441_v20 = vsub.f32 %v18_v1, %v28_v19  ;;  %v295_v1 = vor.u32 %v366_v60, %v292_v62  ;;  %v362_v19 = vld [vmem:[%s586_s3 + $0x10] sm:$0xf0] }
  0x7b   :  { %v275_v22 = vor.u32 %v362_v19, %v274_v18 }
  0x7c   :  { %v30_v21 = vmul.f32 %v441_v20, %v441_v20  ;;  %235 = vmatpush.bf16.msra.mxu1 %v295_v1 }
  0x7d   :  { %250 = vmatpush.bf16.msra.mxu2 %v275_v22 }
  0x7e   :  { %31 = vadd.xlane.f32.xlu0 %v30_v21  ;;  %v271_v21 = vor.u32 %v360_v14, %v268_v16 }
  0x80   :  { %236 = vmatpush.bf16.msra.mxu1 %v283_v10 }
  0x84   :  { %237 = vmatpush.bf16.msra.mxu1 %v271_v21 }
  0xf1   :  { %v32_v23 = vpop.xlane.xlu0 %31 }
  0xf2   :  { %v33_v24 = vmul.f32 %v32_v23, %v438_v17  ;;  %v386_v17 = vld [vmem:[%s588_s2] ss:$0 sm:$0xff] }
  0xf4   :  { %v34_v25 = vadd.f32 1e-05, %v33_v24 }
  0xf6   :  { %389 = vrsqrt.f32 %v34_v25  ;;  %vm41_vm2 = vweird.f32 %v34_v25 }
  0xfc   :  { %v390_v26 = vpop.eup %389 }
  0xfd   :  { %v36_v27 = vmul.f32 %v390_v26, %v34_v25  ;;  %vm42_vm1 = vweird.f32 %v390_v26 }
  0xfe   :  { %vm43_vm3 = vmor %vm41_vm2, %vm42_vm1 }
  0xff   :  { %v37_v28 = vmul.f32 %v390_v26, %v36_v27 }
 0x101   :  { %v38_v29 = vmul.f32 0.5, %v37_v28 }
 0x103   :  { %v39_v30 = vsub.f32 1.5, %v38_v29 }
 0x105   :  { %v40_v31 = vmul.f32 %v390_v26, %v39_v30 }
 0x107   :  { %v44_v33 = vsel %vm43_vm3, %v390_v26, %v40_v31 }
 0x108   :  { %v45_v34 = vmul.f32 %v44_v33, %v441_v20 }
 0x10a   :  { %v50_v35 = vmul.f32 %v385_v32, %v45_v34 }
 0x10c   :  { %v55_v36 = vadd.f32 %v386_v17, %v50_v35 }
 0x10e   :  { %v56_v37 = vpack.c.bf16 %v55_v36, %v55_v36 }
 0x110   :  { %225 = vmatmul.bf16.vlgmr.msra.gmra.mxu0 %v56_v37  ;;  %238 = vmatmul.bf16.vlgmr.msra.gmra.mxu1 %v56_v37 }
 0x111   :  { %251 = vmatmul.bf16.vlgmr.msra.gmra.mxu2 %v56_v37 }
 0x18d   :  { %v226_v38 = vpop.f32.mrf.mxu0  ;;  %v239_v39 = vpop.f32.mrf.mxu1 }
 0x18e   :  { %v256_v40 = vpack.c.bf16 %v239_v39, %v226_v38 }
 0x190   :  { %258 = vst [vmem:[%s589_s4] sm:$0xff] %v256_v40 }
 0x194   :  { %v252_v41 = vpop.f32.mrf.mxu2 }
 0x195   :  { %v257_v42 = vpack.c.bf16 %v252_v41, %v252_v41  ;;  %v228_v20 = vpop.f32.mrf.mxu0  ;;  %v241_v43 = vpop.f32.mrf.mxu1 }
 0x197   :  { %259 = vst [vmem:[%s589_s4 + $0x8] sm:$0xf] %v257_v42 }
 0x19c   :  { %v254_v44 = vpop.f32.mrf.mxu2 }

// kernel: cramming_transformer.32
= control target key start
LH: loop header
LB: loop body
LE: loop exit
PB: predicated region body
PF: predicated region fallthrough
CT: control target
= control target key end

     0   :  { %s884_s1 = inlined_call_operand.vmem [shape: bf16[128,512], index: 1, kind: input, shape index: {}]   ;;  %s885_s0 = inlined_call_operand.vmem [shape: bf16[16,128], index: 0, kind: input, shape index: {}]   ;;  %s886_s2 = inlined_call_operand.vmem [shape: f32[1,512], index: 2, kind: input, shape index: {}]   ;;  %s887_s3 = inlined_call_operand.vmem [shape: f32[1,512], index: 3, kind: input, shape index: {}]   ;;  %s888_s4 = inlined_call_operand.vmem [shape: bf16[16,512], index: 4, kind: output, shape index: {}]  }
   0x1   :  { %v571_v0 = vld [vmem:[%s884_s1 + $0xe0] sm:$0xf]  ;;  %v616_v1 = vld [vmem:[%s884_s1 + $0xec] sm:$0xf0]  ;;  %v614_v2 = vld [vmem:[%s884_s1 + $0xe4] sm:$0xf] }
   0x2   :  { %v572_v3 = vor.u32 %v616_v1, %v571_v0  ;;  %v573_v4 = vld [vmem:[%s884_s1 + $0xf0] sm:$0xf0]  ;;  %v579_v5 = vld [vmem:[%s884_s1 + $0xe8] sm:$0xf]  ;;  %v617_v6 = vld [vmem:[%s884_s1 + $0xf4] sm:$0xf0] }
   0x3   :  { %v576_v7 = vor.u32 %v614_v2, %v573_v4  ;;  %v580_v8 = vor.u32 %v617_v6, %v579_v5  ;;  %v615_v9 = vld [vmem:[%s884_s1 + $0xec] sm:$0xf]  ;;  %v581_v10 = vld [vmem:[%s884_s1 + $0xf8] sm:$0xf0]  ;;  %v555_v11 = vld [vmem:[%s884_s1 + $0xc0] sm:$0xf] }
   0x4   :  { %237 = vmatpush.bf16.msra.mxu0 %v572_v3  ;;  %v584_v12 = vor.u32 %v615_v9, %v581_v10  ;;  %v612_v13 = vld [vmem:[%s884_s1 + $0xcc] sm:$0xf0]  ;;  %v610_v14 = vld [vmem:[%s884_s1 + $0xc4] sm:$0xf]  ;;  %v557_v15 = vld [vmem:[%s884_s1 + $0xd0] sm:$0xf0] }
   0x5   :  { %251 = vmatpush.bf16.msra.mxu1 %v576_v7  ;;  %265 = vmatpush.bf16.msra.mxu2 %v580_v8  ;;  %v556_v16 = vor.u32 %v612_v13, %v555_v11  ;;  %v560_v17 = vor.u32 %v610_v14, %v557_v15  ;;  %v563_v18 = vld [vmem:[%s884_s1 + $0xc8] sm:$0xf]  ;;  %v613_v19 = vld [vmem:[%s884_s1 + $0xd4] sm:$0xf0]  ;;  %v611_v20 = vld [vmem:[%s884_s1 + $0xcc] sm:$0xf] }
   0x6   :  { %279 = vmatpush.bf16.msra.mxu3 %v584_v12  ;;  %v564_v21 = vor.u32 %v613_v19, %v563_v18  ;;  %v565_v22 = vld [vmem:[%s884_s1 + $0xd8] sm:$0xf0]  ;;  %v539_v23 = vld [vmem:[%s884_s1 + $0xa0] sm:$0xf]  ;;  %v608_v24 = vld [vmem:[%s884_s1 + $0xac] sm:$0xf0] }
   0x7   :  { %v568_v25 = vor.u32 %v611_v20, %v565_v22  ;;  %v606_v26 = vld [vmem:[%s884_s1 + $0xa4] sm:$0xf]  ;;  %v541_v27 = vld [vmem:[%s884_s1 + $0xb0] sm:$0xf0]  ;;  %v547_v28 = vld [vmem:[%s884_s1 + $0xa8] sm:$0xf]  ;;  %v540_v29 = vor.u32 %v608_v24, %v539_v23 }
   0x8   :  { %238 = vmatpush.bf16.msra.mxu0 %v556_v16  ;;  %v609_v30 = vld [vmem:[%s884_s1 + $0xb4] sm:$0xf0]  ;;  %v607_v31 = vld [vmem:[%s884_s1 + $0xac] sm:$0xf]  ;;  %v549_v32 = vld [vmem:[%s884_s1 + $0xb8] sm:$0xf0]  ;;  %v544_v33 = vor.u32 %v606_v26, %v541_v27 }
   0x9   :  { %252 = vmatpush.bf16.msra.mxu1 %v560_v17  ;;  %266 = vmatpush.bf16.msra.mxu2 %v564_v21  ;;  %v548_v34 = vor.u32 %v609_v30, %v547_v28  ;;  %v523_v35 = vld [vmem:[%s884_s1 + $0x80] sm:$0xf]  ;;  %v604_v36 = vld [vmem:[%s884_s1 + $0x8c] sm:$0xf0]  ;;  %v602_v37 = vld [vmem:[%s884_s1 + $0x84] sm:$0xf]  ;;  %v552_v38 = vor.u32 %v607_v31, %v549_v32 }
   0xa   :  { %280 = vmatpush.bf16.msra.mxu3 %v568_v25  ;;  %v525_v39 = vld [vmem:[%s884_s1 + $0x90] sm:$0xf0]  ;;  %v531_v40 = vld [vmem:[%s884_s1 + $0x88] sm:$0xf]  ;;  %v605_v41 = vld [vmem:[%s884_s1 + $0x94] sm:$0xf0]  ;;  %v524_v44 = vor.u32 %v604_v36, %v523_v35 }
   0xb   :  { %v603_v42 = vld [vmem:[%s884_s1 + $0x8c] sm:$0xf]  ;;  %v533_v43 = vld [vmem:[%s884_s1 + $0x98] sm:$0xf0]  ;;  %v528_v45 = vor.u32 %v602_v37, %v525_v39  ;;  %v532_v46 = vor.u32 %v605_v41, %v531_v40  ;;  %v507_v47 = vld [vmem:[%s884_s1 + $0x60] sm:$0xf] }
   0xc   :  { %239 = vmatpush.bf16.msra.mxu0 %v540_v29  ;;  %v600_v48 = vld [vmem:[%s884_s1 + $0x6c] sm:$0xf0]  ;;  %v598_v49 = vld [vmem:[%s884_s1 + $0x64] sm:$0xf]  ;;  %v536_v50 = vor.u32 %v603_v42, %v533_v43  ;;  %v509_v51 = vld [vmem:[%s884_s1 + $0x70] sm:$0xf0] }
   0xd   :  { %253 = vmatpush.bf16.msra.mxu1 %v544_v33  ;;  %267 = vmatpush.bf16.msra.mxu2 %v548_v34  ;;  %v515_v52 = vld [vmem:[%s884_s1 + $0x68] sm:$0xf]  ;;  %v601_v53 = vld [vmem:[%s884_s1 + $0x74] sm:$0xf0]  ;;  %v599_v54 = vld [vmem:[%s884_s1 + $0x6c] sm:$0xf]  ;;  %v508_v56 = vor.u32 %v600_v48, %v507_v47  ;;  %v512_v57 = vor.u32 %v598_v49, %v509_v51 }
   0xe   :  { %281 = vmatpush.bf16.msra.mxu3 %v552_v38  ;;  %v517_v55 = vld [vmem:[%s884_s1 + $0x78] sm:$0xf0]  ;;  %v516_v58 = vor.u32 %v601_v53, %v515_v52  ;;  %v491_v59 = vld [vmem:[%s884_s1 + $0x40] sm:$0xf]  ;;  %v596_v60 = vld [vmem:[%s884_s1 + $0x4c] sm:$0xf0] }
   0xf   :  { %v594_v61 = vld [vmem:[%s884_s1 + $0x44] sm:$0xf]  ;;  %v520_v62 = vor.u32 %v599_v54, %v517_v55  ;;  %v493_v63 = vld [vmem:[%s884_s1 + $0x50] sm:$0xf0]  ;;  %v499_v0 = vld [vmem:[%s884_s1 + $0x48] sm:$0xf]  ;;  %v492_v4 = vor.u32 %v596_v60, %v491_v59 }
  0x10   :  { %240 = vmatpush.bf16.msra.mxu0 %v524_v44  ;;  %v597_v1 = vld [vmem:[%s884_s1 + $0x54] sm:$0xf0]  ;;  %v595_v2 = vld [vmem:[%s884_s1 + $0x4c] sm:$0xf]  ;;  %v501_v3 = vld [vmem:[%s884_s1 + $0x58] sm:$0xf0]  ;;  %v496_v5 = vor.u32 %v594_v61, %v493_v63 }
  0x11   :  { %254 = vmatpush.bf16.msra.mxu1 %v528_v45  ;;  %268 = vmatpush.bf16.msra.mxu2 %v532_v46  ;;  %v500_v6 = vor.u32 %v597_v1, %v499_v0  ;;  %v475_v7 = vld [vmem:[%s884_s1 + $0x20] sm:$0xf]  ;;  %v592_v8 = vld [vmem:[%s884_s1 + $0x2c] sm:$0xf0]  ;;  %v590_v9 = vld [vmem:[%s884_s1 + $0x24] sm:$0xf]  ;;  %v504_v10 = vor.u32 %v595_v2, %v501_v3 }
  0x12   :  { %282 = vmatpush.bf16.msra.mxu3 %v536_v50  ;;  %v477_v11 = vld [vmem:[%s884_s1 + $0x30] sm:$0xf0]  ;;  %v483_v12 = vld [vmem:[%s884_s1 + $0x28] sm:$0xf]  ;;  %v593_v13 = vld [vmem:[%s884_s1 + $0x34] sm:$0xf0]  ;;  %v476_v16 = vor.u32 %v592_v8, %v475_v7 }
  0x13   :  { %v591_v14 = vld [vmem:[%s884_s1 + $0x2c] sm:$0xf]  ;;  %v485_v15 = vld [vmem:[%s884_s1 + $0x38] sm:$0xf0]  ;;  %v480_v17 = vor.u32 %v590_v9, %v477_v11  ;;  %v484_v18 = vor.u32 %v593_v13, %v483_v12  ;;  %v459_v19 = vld [vmem:[%s884_s1] sm:$0xf] }
  0x14   :  { %241 = vmatpush.bf16.msra.mxu0 %v508_v56  ;;  %v588_v20 = vld [vmem:[%s884_s1 + $0xc] sm:$0xf0]  ;;  %v586_v21 = vld [vmem:[%s884_s1 + $0x4] sm:$0xf]  ;;  %v488_v22 = vor.u32 %v591_v14, %v485_v15  ;;  %v461_v23 = vld [vmem:[%s884_s1 + $0x10] sm:$0xf0] }
  0x15   :  { %255 = vmatpush.bf16.msra.mxu1 %v512_v57  ;;  %269 = vmatpush.bf16.msra.mxu2 %v516_v58  ;;  %v467_v24 = vld [vmem:[%s884_s1 + $0x8] sm:$0xf]  ;;  %v589_v25 = vld [vmem:[%s884_s1 + $0x14] sm:$0xf0]  ;;  %v587_v26 = vld [vmem:[%s884_s1 + $0xc] sm:$0xf]  ;;  %v460_v28 = vor.u32 %v588_v20, %v459_v19  ;;  %v464_v29 = vor.u32 %v586_v21, %v461_v23 }
  0x16   :  { %283 = vmatpush.bf16.msra.mxu3 %v520_v62  ;;  %v469_v27 = vld [vmem:[%s884_s1 + $0x18] sm:$0xf0]  ;;  %v468_v30 = vor.u32 %v589_v25, %v467_v24  ;;  %v585_v32 = vld [vmem:[%s885_s0] sm:$0xff]  ;;  %v625_v47 = vmov 512.0  }
  0x17   :  { %v472_v31 = vor.u32 %v587_v26, %v469_v27  ;;  %619 = vrcp.f32 %v625_v47  ;;  %v397_v25 = vld [vmem:[%s886_s2] sm:$0xf] }
  0x18   :  { %242 = vmatpush.bf16.msra.mxu0 %v492_v4  ;;  %v415_v27 = vld [vmem:[%s887_s3] sm:$0xf] }
  0x19   :  { %256 = vmatpush.bf16.msra.mxu1 %v496_v5  ;;  %270 = vmatpush.bf16.msra.mxu2 %v500_v6 }
  0x1a   :  { %284 = vmatpush.bf16.msra.mxu3 %v504_v10 }
  0x1c   :  { %243 = vmatpush.bf16.msra.mxu0 %v476_v16 }
  0x1d   :  { %257 = vmatpush.bf16.msra.mxu1 %v480_v17  ;;  %271 = vmatpush.bf16.msra.mxu2 %v484_v18  ;;  %v620_v48 = vpop.eup %619 }
  0x1e   :  { %285 = vmatpush.bf16.msra.mxu3 %v488_v22  ;;  %v331_v49 = vmul.f32 512.0, %v620_v48  ;;  %vm335_vm0 = vweird.f32 %v620_v48 }
  0x20   :  { %244 = vmatpush.bf16.msra.mxu0 %v460_v28  ;;  %v332_v50 = vsub.f32 1.0, %v331_v49 }
  0x21   :  { %258 = vmatpush.bf16.msra.mxu1 %v464_v29  ;;  %272 = vmatpush.bf16.msra.mxu2 %v468_v30  ;;  %v399_v30 = vperm.slane %v397_v25, 0 }
  0x22   :  { %286 = vmatpush.bf16.msra.mxu3 %v472_v31  ;;  %v333_v51 = vmul.f32 %v620_v48, %v332_v50  ;;  %v400_v31 = vperm.slane %v397_v25, 1 }
  0x23   :  { %245 = vmatmul.bf16.vlgmr.msra.gmra.mxu0 %v585_v32 }
  0x24   :  { %259 = vmatmul.bf16.vlgmr.msra.gmra.mxu1 %v585_v32  ;;  %273 = vmatmul.bf16.vlgmr.msra.gmra.mxu2 %v585_v32  ;;  %v334_v52 = vadd.f32 %v620_v48, %v333_v51 }
  0x25   :  { %287 = vmatmul.bf16.vlgmr.msra.gmra.mxu3 %v585_v32 }
  0x26   :  { %v336_v53 = vsel %vm335_vm0, %v620_v48, %v334_v52 }
  0xa0   :  { %v246_v33 = vpop.f32.mrf.mxu0 }
  0xa1   :  { %v260_v34 = vpop.f32.mrf.mxu1 }
  0xa2   :  { %v320_v35 = vadd.f32 %v260_v34, %v246_v33 }
  0xa7   :  { %v274_v36 = vpop.f32.mrf.mxu2 }
  0xa8   :  { %v321_v37 = vadd.f32 %v320_v35, %v274_v36  ;;  %v288_v38 = vpop.f32.mrf.mxu3  ;;  %v248_v40 = vpop.f32.mrf.mxu0  ;;  %v402_v35 = vperm.slane %v397_v25, 3 }
  0xa9   :  { %v262_v41 = vpop.f32.mrf.mxu1 }
  0xaa   :  { %v322_v39 = vadd.f32 %v321_v37, %v288_v38  ;;  %v325_v42 = vadd.f32 %v262_v41, %v248_v40  ;;  %v418_v37 = vperm.slane %v415_v27, 1 }
  0xac   :  { %323 = vadd.xlane.f32.xlu0 %v322_v39  ;;  %v420_v39 = vperm.slane %v415_v27, 3 }
  0xaf   :  { %v276_v43 = vpop.f32.mrf.mxu2 }
  0xb0   :  { %v326_v44 = vadd.f32 %v325_v42, %v276_v43  ;;  %v290_v45 = vpop.f32.mrf.mxu3 }
  0xb2   :  { %v327_v46 = vadd.f32 %v326_v44, %v290_v45 }
  0xb4   :  { %328 = vadd.xlane.f32.xlu0 %v327_v46 }
 0x11f   :  { %v324_v54 = vpop.xlane.xlu0 %323 }
 0x120   :  { %v337_v55 = vmul.f32 %v336_v53, %v324_v54 }
 0x122   :  { %v339_v56 = vsub.f32 %v246_v33, %v337_v55  ;;  %v340_v57 = vsub.f32 %v260_v34, %v337_v55  ;;  %v341_v58 = vsub.f32 %v274_v36, %v337_v55  ;;  %v342_v59 = vsub.f32 %v288_v38, %v337_v55 }
 0x123   :  { %v401_v34 = vperm.slane %v397_v25, 2  ;;  %v417_v36 = vperm.slane %v415_v27, 0  ;;  %v419_v38 = vperm.slane %v415_v27, 2 }
 0x124   :  { %v347_v60 = vmul.f32 %v339_v56, %v339_v56  ;;  %v348_v61 = vmul.f32 %v340_v57, %v340_v57  ;;  %v349_v62 = vmul.f32 %v341_v58, %v341_v58  ;;  %v350_v2 = vmul.f32 %v342_v59, %v342_v59 }
 0x126   :  { %v355_v63 = vadd.f32 %v348_v61, %v347_v60 }
 0x127   :  { %v329_v0 = vpop.xlane.xlu0 %328 }
 0x128   :  { %v338_v1 = vmul.f32 %v336_v53, %v329_v0  ;;  %v356_v3 = vadd.f32 %v355_v63, %v349_v62 }
 0x12a   :  { %v846_v4 = vsub.f32 %v248_v40, %v338_v1  ;;  %v848_v5 = vsub.f32 %v262_v41, %v338_v1  ;;  %v357_v6 = vadd.f32 %v356_v3, %v350_v2  ;;  %v850_v7 = vsub.f32 %v276_v43, %v338_v1 }
 0x12b   :  { %v852_v8 = vsub.f32 %v290_v45, %v338_v1 }
 0x12c   :  { %358 = vadd.xlane.f32.xlu1 %v357_v6  ;;  %v351_v9 = vmul.f32 %v846_v4, %v846_v4  ;;  %v352_v10 = vmul.f32 %v848_v5, %v848_v5  ;;  %v353_v11 = vmul.f32 %v850_v7, %v850_v7 }
 0x12d   :  { %v354_v13 = vmul.f32 %v852_v8, %v852_v8 }
 0x12e   :  { %v360_v12 = vadd.f32 %v352_v10, %v351_v9 }
 0x130   :  { %v361_v14 = vadd.f32 %v360_v12, %v353_v11 }
 0x132   :  { %v362_v15 = vadd.f32 %v361_v14, %v354_v13 }
 0x134   :  { %363 = vadd.xlane.f32.xlu1 %v362_v15 }
 0x19f   :  { %v359_v16 = vpop.xlane.xlu1 %358 }
 0x1a0   :  { %v365_v17 = vmul.f32 %v359_v16, %v336_v53 }
 0x1a2   :  { %v367_v18 = vadd.f32 1e-05, %v365_v17 }
 0x1a4   :  { %621 = vrsqrt.f32 %v367_v18  ;;  %vm375_vm2 = vweird.f32 %v367_v18 }
 0x1a7   :  { %v364_v19 = vpop.xlane.xlu1 %363 }
 0x1a8   :  { %v366_v20 = vmul.f32 %v364_v19, %v336_v53 }
 0x1aa   :  { %v622_v21 = vpop.eup %621  ;;  %v368_v22 = vadd.f32 1e-05, %v366_v20 }
 0x1ab   :  { %v370_v23 = vmul.f32 %v622_v21, %v367_v18  ;;  %vm376_vm1 = vweird.f32 %v622_v21 }
 0x1ac   :  { %623 = vrsqrt.f32 %v368_v22  ;;  %vm377_vm3 = vmor %vm375_vm2, %vm376_vm1  ;;  %vm385_vm5 = vweird.f32 %v368_v22 }
 0x1ad   :  { %v371_v24 = vmul.f32 %v622_v21, %v370_v23 }
 0x1af   :  { %v372_v26 = vmul.f32 0.5, %v371_v24 }
 0x1b1   :  { %v373_v28 = vsub.f32 1.5, %v372_v26 }
 0x1b2   :  { %v624_v29 = vpop.eup %623 }
 0x1b3   :  { %v374_v32 = vmul.f32 %v622_v21, %v373_v28  ;;  %v380_v33 = vmul.f32 %v624_v29, %v368_v22  ;;  %vm386_vm4 = vweird.f32 %v624_v29 }
 0x1b4   :  { %vm387_vm6 = vmor %vm385_vm5, %vm386_vm4 }
 0x1b5   :  { %v378_v40 = vsel %vm377_vm3, %v622_v21, %v374_v32  ;;  %v381_v41 = vmul.f32 %v624_v29, %v380_v33 }
 0x1b6   :  { %v389_v42 = vmul.f32 %v378_v40, %v339_v56  ;;  %v390_v43 = vmul.f32 %v378_v40, %v340_v57  ;;  %v391_v44 = vmul.f32 %v378_v40, %v341_v58  ;;  %v392_v45 = vmul.f32 %v378_v40, %v342_v59 }
 0x1b7   :  { %v382_v46 = vmul.f32 0.5, %v381_v41 }
 0x1b8   :  { %v407_v47 = vmul.f32 %v399_v30, %v389_v42  ;;  %v408_v48 = vmul.f32 %v400_v31, %v390_v43  ;;  %v409_v49 = vmul.f32 %v401_v34, %v391_v44  ;;  %v410_v50 = vmul.f32 %v402_v35, %v392_v45 }
 0x1b9   :  { %v383_v51 = vsub.f32 1.5, %v382_v46 }
 0x1ba   :  { %v425_v52 = vadd.f32 %v417_v36, %v407_v47  ;;  %v426_v53 = vadd.f32 %v418_v37, %v408_v48  ;;  %v427_v54 = vadd.f32 %v419_v38, %v409_v49  ;;  %v428_v55 = vadd.f32 %v420_v39, %v410_v50 }
 0x1bb   :  { %v384_v60 = vmul.f32 %v624_v29, %v383_v51 }
 0x1bc   :  { %v433_v61 = vmax.f32 %v425_v52, 0.0  ;;  %v434_v62 = vmax.f32 %v426_v53, 0.0  ;;  %v435_v63 = vmax.f32 %v427_v54, 0.0  ;;  %v436_v56 = vmax.f32 %v428_v55, 0.0 }
 0x1bd   :  { %v388_v57 = vsel %vm387_vm6, %v624_v29, %v384_v60 }
 0x1be   :  { %v441_v58 = vpack.c.bf16 %v434_v62, %v433_v61  ;;  %v442_v59 = vpack.c.bf16 %v436_v56, %v435_v63  ;;  %v393_v0 = vmul.f32 %v388_v57, %v846_v4  ;;  %v394_v1 = vmul.f32 %v388_v57, %v848_v5 }
 0x1bf   :  { %v395_v2 = vmul.f32 %v388_v57, %v850_v7  ;;  %v396_v3 = vmul.f32 %v388_v57, %v852_v8 }
 0x1c0   :  { %445 = vst [vmem:[%s888_s4] sm:$0xff] %v441_v58  ;;  %v411_v6 = vmul.f32 %v399_v30, %v393_v0  ;;  %v412_v9 = vmul.f32 %v400_v31, %v394_v1 }
 0x1c1   :  { %446 = vst [vmem:[%s888_s4 + $0x8] sm:$0xff] %v442_v59  ;;  %v413_v10 = vmul.f32 %v401_v34, %v395_v2  ;;  %v414_v11 = vmul.f32 %v402_v35, %v396_v3 }
 0x1c2   :  { %v429_v12 = vadd.f32 %v417_v36, %v411_v6  ;;  %v430_v4 = vadd.f32 %v418_v37, %v412_v9 }
 0x1c3   :  { %v431_v13 = vadd.f32 %v419_v38, %v413_v10  ;;  %v432_v5 = vadd.f32 %v420_v39, %v414_v11 }
 0x1c4   :  { %v437_v14 = vmax.f32 %v429_v12, 0.0  ;;  %v438_v7 = vmax.f32 %v430_v4, 0.0 }
 0x1c5   :  { %v439_v15 = vmax.f32 %v431_v13, 0.0  ;;  %v440_v8 = vmax.f32 %v432_v5, 0.0 }
 0x1c6   :  { %v443_v16 = vpack.c.bf16 %v438_v7, %v437_v14 }
 0x1c7   :  { %v444_v17 = vpack.c.bf16 %v440_v8, %v439_v15 }
 0x1c8   :  { %447 = vst [vmem:[%s888_s4 + $0x10] sm:$0xff] %v443_v16 }
 0x1c9   :  { %448 = vst [vmem:[%s888_s4 + $0x18] sm:$0xff] %v444_v17 }

// kernel: cramming_transformer.33
= control target key start
LH: loop header
LB: loop body
LE: loop exit
PB: predicated region body
PF: predicated region fallthrough
CT: control target
= control target key end

     0   :  { %s745_s0 = inlined_call_operand.vmem [shape: bf16[16,512], index: 0, kind: input, shape index: {}]   ;;  %s746_s1 = inlined_call_operand.vmem [shape: bf16[512,32], index: 1, kind: input, shape index: {}]   ;;  %s747_s2 = inlined_call_operand.hbm [shape: f32[16,32], index: 2, kind: output, shape index: {}]  }
   0x1   :  { %v542_v0 = vld [vmem:[%s746_s1 + $0x38] sm:$0xff]  ;;  %v541_v4 = vld [vmem:[%s746_s1 + $0x30] sm:$0xff]  ;;  %v540_v8 = vld [vmem:[%s746_s1 + $0x28] sm:$0xff] }
   0x2   :  { %v550_v1 = vld [vmem:[%s746_s1 + $0x78] sm:$0xff]  ;;  %301 = vmatpush.bf16.msra.mxu0 %v542_v0  ;;  %v549_v5 = vld [vmem:[%s746_s1 + $0x70] sm:$0xff]  ;;  %v548_v9 = vld [vmem:[%s746_s1 + $0x68] sm:$0xff] }
   0x3   :  { %v558_v2 = vld [vmem:[%s746_s1 + $0xb8] sm:$0xff]  ;;  %315 = vmatpush.bf16.msra.mxu1 %v550_v1  ;;  %v557_v6 = vld [vmem:[%s746_s1 + $0xb0] sm:$0xff]  ;;  %v556_v10 = vld [vmem:[%s746_s1 + $0xa8] sm:$0xff] }
   0x4   :  { %v566_v3 = vld [vmem:[%s746_s1 + $0xf8] sm:$0xff]  ;;  %329 = vmatpush.bf16.msra.mxu2 %v558_v2  ;;  %v565_v7 = vld [vmem:[%s746_s1 + $0xf0] sm:$0xff]  ;;  %v564_v11 = vld [vmem:[%s746_s1 + $0xe8] sm:$0xff] }
   0x5   :  { %343 = vmatpush.bf16.msra.mxu3 %v566_v3  ;;  %v539_v12 = vld [vmem:[%s746_s1 + $0x20] sm:$0xff] }
   0x6   :  { %302 = vmatpush.bf16.msra.mxu0 %v541_v4  ;;  %v547_v13 = vld [vmem:[%s746_s1 + $0x60] sm:$0xff] }
   0x7   :  { %316 = vmatpush.bf16.msra.mxu1 %v549_v5  ;;  %v555_v14 = vld [vmem:[%s746_s1 + $0xa0] sm:$0xff] }
   0x8   :  { %330 = vmatpush.bf16.msra.mxu2 %v557_v6  ;;  %v563_v15 = vld [vmem:[%s746_s1 + $0xe0] sm:$0xff] }
   0x9   :  { %344 = vmatpush.bf16.msra.mxu3 %v565_v7 }
   0xa   :  { %303 = vmatpush.bf16.msra.mxu0 %v540_v8 }
   0xb   :  { %317 = vmatpush.bf16.msra.mxu1 %v548_v9 }
   0xc   :  { %331 = vmatpush.bf16.msra.mxu2 %v556_v10 }
   0xd   :  { %345 = vmatpush.bf16.msra.mxu3 %v564_v11 }
   0xe   :  { %7 = vsyncpa [#allocation4], 0  ;;  %304 = vmatpush.bf16.msra.mxu0 %v539_v12  ;;  %v538_v16 = vld [vmem:[%s746_s1 + $0x18] sm:$0xff]  ;;  %v537_v20 = vld [vmem:[%s746_s1 + $0x10] sm:$0xff]  ;;  %vm16_vm0 = vcmask 261120   ;;  %v597_v44 = vmov 0.0  }
   0xf   :  { %318 = vmatpush.bf16.msra.mxu1 %v547_v13  ;;  %v546_v17 = vld [vmem:[%s746_s1 + $0x58] sm:$0xff]  ;;  %v545_v21 = vld [vmem:[%s746_s1 + $0x50] sm:$0xff]  ;;  %v536_v24 = vld [vmem:[%s746_s1 + $0x8] sm:$0xff]  ;;  %17 = vst.msk [vmem:[#allocation2] sm:$0xff] %vm16_vm0, %v597_v44  ;;  %s375_s7 = sshll.u32 %s747_s2, 4  ;;  %s599_s8 = smov 128   ;;  %s376_s7 = int_to_ptr.hbm [resolvable:$true] %s375_s7 }
  0x10   :  { %332 = vmatpush.bf16.msra.mxu2 %v555_v14  ;;  %v554_v18 = vld [vmem:[%s746_s1 + $0x98] sm:$0xff]  ;;  %v553_v22 = vld [vmem:[%s746_s1 + $0x90] sm:$0xff]  ;;  %v544_v25 = vld [vmem:[%s746_s1 + $0x48] sm:$0xff]  ;;  %18 = vst.msk [vmem:[#allocation2 + $0x8] sm:$0xff] %vm16_vm0, %v597_v44  ;;  %s600_s9 = smov 8  }
  0x11   :  { %346 = vmatpush.bf16.msra.mxu3 %v563_v15  ;;  %v562_v19 = vld [vmem:[%s746_s1 + $0xd8] sm:$0xff]  ;;  %v561_v23 = vld [vmem:[%s746_s1 + $0xd0] sm:$0xff]  ;;  %v552_v26 = vld [vmem:[%s746_s1 + $0x88] sm:$0xff] }
  0x12   :  { %305 = vmatpush.bf16.msra.mxu0 %v538_v16  ;;  %v560_v27 = vld [vmem:[%s746_s1 + $0xc8] sm:$0xff]  ;;  %v535_v28 = vld [vmem:[%s746_s1] sm:$0xff]  ;;  %v533_v33 = vld [vmem:[%s745_s0 + $0xc] sm:$0xf0] }
  0x13   :  { %319 = vmatpush.bf16.msra.mxu1 %v546_v17  ;;  %v543_v29 = vld [vmem:[%s746_s1 + $0x40] sm:$0xff]  ;;  %v391_v35 = vld [vmem:[%s745_s0 + $0x10] sm:$0xf0]  ;;  %v397_v36 = vld [vmem:[%s745_s0 + $0x8] sm:$0xf] }
  0x14   :  { %333 = vmatpush.bf16.msra.mxu2 %v554_v18  ;;  %v551_v30 = vld [vmem:[%s746_s1 + $0x80] sm:$0xff]  ;;  %v534_v37 = vld [vmem:[%s745_s0 + $0x14] sm:$0xf0]  ;;  %v532_v38 = vld [vmem:[%s745_s0 + $0xc] sm:$0xf] }
  0x15   :  { %347 = vmatpush.bf16.msra.mxu3 %v562_v19  ;;  %v559_v31 = vld [vmem:[%s746_s1 + $0xc0] sm:$0xff]  ;;  %v399_v39 = vld [vmem:[%s745_s0 + $0x18] sm:$0xf0]  ;;  %v398_v42 = vor.u32 %v534_v37, %v397_v36 }
  0x16   :  { %306 = vmatpush.bf16.msra.mxu0 %v537_v20  ;;  %v389_v32 = vld [vmem:[%s745_s0] sm:$0xf]  ;;  %v531_v34 = vld [vmem:[%s745_s0 + $0x4] sm:$0xf]  ;;  %v402_v43 = vor.u32 %v532_v38, %v399_v39  ;;  %s598_s0 = smov [#allocation3]  }
  0x17   :  { %320 = vmatpush.bf16.msra.mxu1 %v545_v21  ;;  %v390_v40 = vor.u32 %v533_v33, %v389_v32  ;;  %v394_v41 = vor.u32 %v531_v34, %v391_v35  ;;  %v19_v51 = vld [vmem:[#allocation2] sm:$0xff]  ;;  %v20_v59 = vld [vmem:[#allocation2 + $0x8] sm:$0xff]  ;;  %s373_s4 = sshll.u32 %s598_s0, 4  ;;  %s374_s4 = int_to_ptr.vmem [resolvable:$true] %s373_s4 }
  0x18   :  { %334 = vmatpush.bf16.msra.mxu2 %v553_v22 }
  0x19   :  { %348 = vmatpush.bf16.msra.mxu3 %v561_v23 }
  0x1a   :  { %307 = vmatpush.bf16.msra.mxu0 %v536_v24 }
  0x1b   :  { %321 = vmatpush.bf16.msra.mxu1 %v544_v25 }
  0x1c   :  { %335 = vmatpush.bf16.msra.mxu2 %v552_v26 }
  0x1d   :  { %349 = vmatpush.bf16.msra.mxu3 %v560_v27 }
  0x1e   :  { %308 = vmatpush.bf16.msra.mxu0 %v535_v28 }
  0x1f   :  { %322 = vmatpush.bf16.msra.mxu1 %v543_v29 }
  0x20   :  { %336 = vmatpush.bf16.msra.mxu2 %v551_v30 }
  0x21   :  { %350 = vmatpush.bf16.msra.mxu3 %v559_v31  ;;  %309 = vmatmul.bf16.vlgmr.msra.gmra.mxu0 %v390_v40 }
  0x22   :  { %323 = vmatmul.bf16.vlgmr.msra.gmra.mxu1 %v394_v41 }
  0x23   :  { %337 = vmatmul.bf16.vlgmr.msra.gmra.mxu2 %v398_v42 }
  0x24   :  { %351 = vmatmul.bf16.vlgmr.msra.gmra.mxu3 %v402_v43 }
  0x9e   :  { %v310_v45 = vpop.f32.mrf.mxu0 }
  0x9f   :  { %v324_v46 = vpop.f32.mrf.mxu1 }
  0xa0   :  { %v325_v47 = vadd.f32 %v324_v46, %v310_v45 }
  0xa6   :  { %v338_v48 = vpop.f32.mrf.mxu2  ;;  %v312_v53 = vpop.f32.mrf.mxu0 }
  0xa7   :  { %v352_v49 = vpop.f32.mrf.mxu3  ;;  %v339_v50 = vadd.f32 %v338_v48, %v325_v47  ;;  %v326_v54 = vpop.f32.mrf.mxu1 }
  0xa8   :  { %v327_v56 = vadd.f32 %v326_v54, %v312_v53 }
  0xa9   :  { %v353_v52 = vadd.f32 %v352_v49, %v339_v50 }
  0xab   :  { %v357_v55 = vadd.f32 %v353_v52, %v19_v51 }
  0xad   :  { %360 = vst.msk [vmem:[#allocation2] sm:$0xff] %vm16_vm0, %v357_v55 }
  0xae   :  { %v340_v57 = vpop.f32.mrf.mxu2 }
  0xaf   :  { %v341_v58 = vadd.f32 %v340_v57, %v327_v56  ;;  %v354_v60 = vpop.f32.mrf.mxu3 }
  0xb1   :  { %v355_v61 = vadd.f32 %v354_v60, %v341_v58 }
  0xb3   :  { %v358_v62 = vadd.f32 %v355_v61, %v20_v59 }
  0xb4   :  { %v365_v63 = vld [vmem:[#allocation2] sm:$0xff] }
  0xb5   :  { %361 = vst.msk [vmem:[#allocation2 + $0x8] sm:$0xff] %vm16_vm0, %v358_v62 }
  0xb6   :  { %367 = vst.msk [vmem:[#allocation3] sm:$0xff] %vm16_vm0, %v365_v63 }
  0xbc   :  { %v366_v0 = vld [vmem:[#allocation2 + $0x8] sm:$0xff] }
  0xbd   :  { %368 = vst.msk [vmem:[#allocation3 + $0x8] sm:$0xff] %vm16_vm0, %v366_v0 }
  0xbe   :  { %381 = dma.vmem_to_hbm [thread:$0]  %s374_s4, 256, %s376_s7, [#allocation4], %s599_s8, %s599_s8, %s600_s9  }
  0xbf   :  { %595 = dma.done.wait [#allocation4], 256  }
  0xc0   :  { %596 = vsyncadd [#allocation4], 4294967040 }
  0xc1   :  { %386 = vsyncpa [#allocation4], 1 }

</bundles_post_ra>
